<compile_context>
chip_gen: v6e
topology: v6e:2x2x1
jax: 0.10.0
libtpu: 0.0.40
codegen_flags: <defaults>
</compile_context>

<pallas_src>
import functools

import jax
import jax.numpy as jnp
from jax import lax
from jax.experimental import pallas as pl
from jax.experimental.pallas import tpu as pltpu


def _round_up(x, m):
    return ((x + m - 1) // m) * m


def _permute_gates_ifog(w):
    """PyTorch LSTM gate order (i,f,g,o) -> (i,f,o,g) along the leading 4H axis."""
    wi, wf, wg, wo = jnp.split(w, 4, axis=0)
    return jnp.concatenate([wi, wf, wo, wg], axis=0)


# ---------------------------------------------------------------------------
# Fused, interleaved bidirectional LSTM recurrence.  The grid iterates
# sequentially over time chunks; VMEM scratch carries (h, c) for both
# directions across grid steps.  Each chunk runs ONE loop that advances the
# forward chain (local step s) and the backward chain (local step TC-1-s)
# together, so their MXU / VPU / EUP work overlaps.
# ---------------------------------------------------------------------------
def _make_bilstm_kernel(T_pad, B_pad, H, TC, NC, UNROLL):
    def kernel(sched_ref, xf_ref, xb_ref, lens_ref, whhf_ref, whhb_ref,
               outf_ref, outb_ref, hNf_ref, cNf_ref, hNb_ref, cNb_ref,
               hf_scr, cf_scr, hb_scr, cb_scr):
        c = pl.program_id(0)

        @pl.when(c == 0)
        def _init():
            hf_scr[...] = jnp.zeros_like(hf_scr)
            cf_scr[...] = jnp.zeros_like(cf_scr)
            hb_scr[...] = jnp.zeros_like(hb_scr)
            cb_scr[...] = jnp.zeros_like(cb_scr)

        max_len = sched_ref[0]                 # SMEM scalar: max sequence length
        t0_f = c * TC                          # first global time of the fwd chunk
        t0_b = (NC - 1 - c) * TC               # first global time of the bwd chunk
        any_active = jnp.logical_or(t0_f < max_len, t0_b < max_len)

        def lstm_cell(gates, c_prev):
            # gate order (i, f, o, g): one contiguous sigmoid slice + one tanh slice
            sig = jax.nn.sigmoid(gates[:, :3 * H])
            gi = sig[:, 0 * H:1 * H]
            gf = sig[:, 1 * H:2 * H]
            go = sig[:, 2 * H:3 * H]
            gg = jnp.tanh(gates[:, 3 * H:])
            c_new = gf * c_prev + gi * gg
            h_new = go * jnp.tanh(c_new)
            return h_new, c_new

        @pl.when(any_active)
        def _run():
            lens = lens_ref[...]               # (B_pad, 1) int32
            lim_f = lens - t0_f                # hoisted: per-step mask is one compare
            lim_b = lens - t0_b
            whhf = whhf_ref[...]               # (H, 4H) resident
            whhb = whhb_ref[...]

            def step(s, carry):
                hf, cf, hb, cb = carry
                j = TC - 1 - s                 # bwd walks its chunk back-to-front
                # two independent recurrent matmuls -> their chains interleave
                rec_f = jnp.dot(hf, whhf, preferred_element_type=jnp.float32)
                rec_b = jnp.dot(hb, whhb, preferred_element_type=jnp.float32)
                gates_f = xf_ref[s] + rec_f
                gates_b = xb_ref[j] + rec_b
                hf_new, cf_new = lstm_cell(gates_f, cf)
                hb_new, cb_new = lstm_cell(gates_b, cb)
                mf = s < lim_f                 # (B_pad, 1) bool, off the dep chain
                mb = j < lim_b
                outf_ref[s] = jnp.where(mf, hf_new, 0.0)   # packed: pad steps -> 0
                outb_ref[j] = jnp.where(mb, hb_new, 0.0)
                return (jnp.where(mf, hf_new, hf), jnp.where(mf, cf_new, cf),
                        jnp.where(mb, hb_new, hb), jnp.where(mb, cb_new, cb))

            def outer(o, carry):               # partial unroll: UNROLL steps / iter
                base = pl.multiple_of(o * UNROLL, UNROLL)
                for u in range(UNROLL):
                    carry = step(base + u, carry)
                return carry

            hf, cf, hb, cb = lax.fori_loop(
                0, TC // UNROLL, outer,
                (hf_scr[...], cf_scr[...], hb_scr[...], cb_scr[...]))
            hf_scr[...] = hf
            cf_scr[...] = cf
            hb_scr[...] = hb
            cb_scr[...] = cb

        @pl.when(jnp.logical_not(any_active))
        def _skip():                           # chunk fully past all sequence ends
            outf_ref[...] = jnp.zeros_like(outf_ref)
            outb_ref[...] = jnp.zeros_like(outb_ref)

        @pl.when(c == NC - 1)
        def _final():
            hNf_ref[...] = hf_scr[...]
            cNf_ref[...] = cf_scr[...]
            hNb_ref[...] = hb_scr[...]
            cNb_ref[...] = cb_scr[...]

    # index maps get the scalar-prefetch ref as a trailing positional arg
    fwd_x = lambda c, sched: (c, 0, 0)             # fwd half of xproj (last-axis blk 0)
    bwd_x = lambda c, sched: (NC - 1 - c, 0, 1)    # bwd half of xproj (last-axis blk 1)
    fwd_o = lambda c, sched: (c, 0, 0)
    bwd_o = lambda c, sched: (NC - 1 - c, 0, 0)
    const2 = lambda c, sched: (0, 0)

    return pl.pallas_call(
        kernel,
        out_shape=(
            jax.ShapeDtypeStruct((T_pad, B_pad, H), jnp.float32),   # out fwd
            jax.ShapeDtypeStruct((T_pad, B_pad, H), jnp.float32),   # out bwd
            jax.ShapeDtypeStruct((B_pad, H), jnp.float32),          # h_N fwd
            jax.ShapeDtypeStruct((B_pad, H), jnp.float32),          # c_N fwd
            jax.ShapeDtypeStruct((B_pad, H), jnp.float32),          # h_N bwd
            jax.ShapeDtypeStruct((B_pad, H), jnp.float32),          # c_N bwd
        ),
        grid_spec=pltpu.PrefetchScalarGridSpec(
            num_scalar_prefetch=1,                                  # [max_len] in SMEM
            grid=(NC,),
            in_specs=[
                pl.BlockSpec((TC, B_pad, 4 * H), fwd_x),            # x-proj fwd chunk
                pl.BlockSpec((TC, B_pad, 4 * H), bwd_x),            # x-proj bwd chunk
                pl.BlockSpec((B_pad, 1), const2),                   # lengths
                pl.BlockSpec((H, 4 * H), const2),                   # W_hh_f^T
                pl.BlockSpec((H, 4 * H), const2),                   # W_hh_b^T
            ],
            out_specs=(
                pl.BlockSpec((TC, B_pad, H), fwd_o),
                pl.BlockSpec((TC, B_pad, H), bwd_o),
                pl.BlockSpec((B_pad, H), const2),
                pl.BlockSpec((B_pad, H), const2),
                pl.BlockSpec((B_pad, H), const2),
                pl.BlockSpec((B_pad, H), const2),
            ),
            scratch_shapes=[pltpu.VMEM((B_pad, H), jnp.float32)] * 4,
        ),
        compiler_params=pltpu.CompilerParams(
            dimension_semantics=("arbitrary",),          # state carried across chunks
            vmem_limit_bytes=32 * 1024 * 1024),
        # TODO(synk): on v7x split the two directions across the 2 TensorCores
        # (pl.core_map over pltpu.create_tensorcore_mesh) instead of in-core
        # interleave; kept single-core here for v5e/v6e portability.
    )


# ---------------------------------------------------------------------------
# Wrapper: embedding lookup + hoisted input projection (one big GEMM) + fused
# interleaved bidirectional recurrence kernel + PyTorch-style state reshaping.
# ---------------------------------------------------------------------------
@functools.partial(jax.jit, static_argnames=("t_chunk", "unroll"))
def rnn_encoder_forward(params, token_ids, lengths, *, t_chunk=32, unroll=8):
    T, B = token_ids.shape
    E = params["embedding"].shape[1]
    H = params["w_hh_f"].shape[1]               # w_hh: (4H, H)
    TC = _round_up(min(t_chunk, _round_up(T, unroll)), unroll)
    T_pad = _round_up(T, TC)
    B_pad = _round_up(max(B, 8), 8)             # f32 sublane multiple
    NC = T_pad // TC

    # pad token ids BEFORE the gather (avoids a padded copy of the (T,B,E) slab);
    # padded positions use row 0 of the table and are masked inside the kernel.
    ids = jnp.pad(token_ids, ((0, T_pad - T), (0, B_pad - B)))
    embs = jnp.take(params["embedding"], ids, axis=0)                     # (T_pad, B_pad, E)

    # hoisted input projection: one (T_pad*B_pad, E) x (E, 8H) GEMM, both dirs,
    # gate order permuted to (i, f, o, g).
    # TODO(synk): cast this GEMM / the xproj stream to bf16 on v6e/v7x (keep the
    # in-kernel cell math in f32); kept f32 here for the tight 1e-5 ref check.
    wih = jnp.concatenate([_permute_gates_ifog(params["w_ih_f"]),
                           _permute_gates_ifog(params["w_ih_b"])], axis=0)  # (8H, E)
    bias = jnp.concatenate(
        [_permute_gates_ifog(params["b_ih_f"] + params["b_hh_f"]),
         _permute_gates_ifog(params["b_ih_b"] + params["b_hh_b"])])          # (8H,)
    xproj = (embs.reshape(T_pad * B_pad, E) @ wih.T + bias)
    xproj = xproj.reshape(T_pad, B_pad, 8 * H)
    # TODO(synk): for production T*B, fold this projection into the kernel per
    # chunk (stream E-wide embeddings instead of the 8H-wide xproj).

    whh_f_t = _permute_gates_ifog(params["w_hh_f"]).T                      # (H, 4H)
    whh_b_t = _permute_gates_ifog(params["w_hh_b"]).T

    lens = lengths.astype(jnp.int32)
    lens_p = jnp.pad(lens, (0, B_pad - B)).reshape(B_pad, 1)
    sched = jnp.max(lens).reshape(1).astype(jnp.int32)   # SMEM scalar: whole-chunk skip

    call = _make_bilstm_kernel(T_pad, B_pad, H, TC, NC, unroll)
    # xproj is passed twice; the two BlockSpecs pick the fwd / bwd 4H halves.
    out_f, out_b, h_f, c_f, h_b, c_b = call(sched, xproj, xproj, lens_p,
                                            whh_f_t, whh_b_t)

    # fwd/bwd chunks land in different time blocks per grid step, so they are two
    # H-wide outputs; concat to (T, B, 2H) here (cheap at these sizes).
    outputs = jnp.concatenate([out_f[:T, :B], out_b[:T, :B]], axis=-1)     # (T,B,2H)
    h_state = jnp.concatenate([h_f[:B], h_b[:B]], axis=-1)[None]           # (1,B,2H)
    c_state = jnp.concatenate([c_f[:B], c_b[:B]], axis=-1)[None]
    return outputs, (h_state, c_state)
    # TODO(synk): num_layers>1 stacking and inter-layer dropout not implemented
    # (config: num_layers=1, dropout=0.0).


# ---------------------------------------------------------------------------
# Pure-JAX reference (lax.scan, PyTorch i,f,g,o order) for correctness checks.
# ---------------------------------------------------------------------------
def _lstm_ref(embs, lengths, w_ih_t, w_hh_t, b, reverse):
    T, B, _ = embs.shape
    H = w_hh_t.shape[0]
    times = jnp.arange(T)
    if reverse:
        embs, times = embs[::-1], times[::-1]

    def step(carry, xs):
        h, c = carry
        x, tt = xs
        gates = x @ w_ih_t + h @ w_hh_t + b
        i = jax.nn.sigmoid(gates[:, :H])
        f = jax.nn.sigmoid(gates[:, H:2 * H])
        g = jnp.tanh(gates[:, 2 * H:3 * H])
        o = jax.nn.sigmoid(gates[:, 3 * H:])
        c_new = f * c + i * g
        h_new = o * jnp.tanh(c_new)
        m = lengths[:, None] > tt
        return (jnp.where(m, h_new, h), jnp.where(m, c_new, c)), jnp.where(m, h_new, 0.0)

    (hN, cN), outs = jax.lax.scan(
        step, (jnp.zeros((B, H)), jnp.zeros((B, H))), (embs, times))
    if reverse:
        outs = outs[::-1]
    return outs, hN, cN


if __name__ == "__main__":
    # config: emb_size=32, encoder_hidden_size=32, num_layers=1, dropout=0.0, bidirec=True
    VOCAB, E, H = 50, 32, 32
    B = 4

    key = jax.random.PRNGKey(0)
    ks = jax.random.split(key, 12)
    s = 0.1
    params = {
        "embedding": jax.random.normal(ks[0], (VOCAB, E), jnp.float32) * s,
        "w_ih_f": jax.random.normal(ks[1], (4 * H, E), jnp.float32) * s,
        "w_hh_f": jax.random.normal(ks[2], (4 * H, H), jnp.float32) * s,
        "b_ih_f": jax.random.normal(ks[3], (4 * H,), jnp.float32) * s,
        "b_hh_f": jax.random.normal(ks[4], (4 * H,), jnp.float32) * s,
        "w_ih_b": jax.random.normal(ks[5], (4 * H, E), jnp.float32) * s,
        "w_hh_b": jax.random.normal(ks[6], (4 * H, H), jnp.float32) * s,
        "b_ih_b": jax.random.normal(ks[7], (4 * H,), jnp.float32) * s,
        "b_hh_b": jax.random.normal(ks[8], (4 * H,), jnp.float32) * s,
    }

    def check(T, lengths, tok_key):
        token_ids = jax.random.randint(tok_key, (T, B), 0, VOCAB, jnp.int32)
        lengths = jnp.asarray(lengths, jnp.int32)
        outputs, (h_state, c_state) = rnn_encoder_forward(params, token_ids, lengths)
        jax.block_until_ready((outputs, h_state, c_state))

        embs = jnp.take(params["embedding"], token_ids, axis=0)
        of, hf, cf = _lstm_ref(embs, lengths, params["w_ih_f"].T, params["w_hh_f"].T,
                               params["b_ih_f"] + params["b_hh_f"], reverse=False)
        ob, hb, cb = _lstm_ref(embs, lengths, params["w_ih_b"].T, params["w_hh_b"].T,
                               params["b_ih_b"] + params["b_hh_b"], reverse=True)
        ref_out = jnp.concatenate([of, ob], axis=-1)
        ref_h = jnp.concatenate([hf, hb], axis=-1)[None]
        ref_c = jnp.concatenate([cf, cb], axis=-1)[None]

        assert outputs.shape == (T, B, 2 * H), outputs.shape
        assert h_state.shape == (1, B, 2 * H) and c_state.shape == (1, B, 2 * H)
        assert jnp.allclose(outputs, ref_out, atol=1e-5), \
            float(jnp.abs(outputs - ref_out).max())
        assert jnp.allclose(h_state, ref_h, atol=1e-5)
        assert jnp.allclose(c_state, ref_c, atol=1e-5)

    # lengths sorted descending (pack() requirement); first case spans full T
    check(16, [16, 9, 5, 3], ks[9])     # single chunk, both direction chains interleaved
    check(16, [6, 5, 3, 2], ks[10])     # per-step masking of dead steps inside a chunk
    check(80, [20, 13, 7, 2], ks[11])   # NC=3: middle chunk dead for BOTH dirs (full skip)
    print("KERNEL_OK")
</pallas_src>

<mosaic_0001>
module attributes {stable_mosaic.version = 11 : i64} {
  func.func @kernel(%arg0: i32, %arg1: memref<1xi32, #tpu.memory_space<smem>>, %arg2: memref<16x8x128xf32, #tpu.memory_space<vmem>>, %arg3: memref<16x8x128xf32, #tpu.memory_space<vmem>>, %arg4: memref<8x1xi32, #tpu.memory_space<vmem>>, %arg5: memref<32x128xf32, #tpu.memory_space<vmem>>, %arg6: memref<32x128xf32, #tpu.memory_space<vmem>>, %arg7: memref<16x8x32xf32, #tpu.memory_space<vmem>>, %arg8: memref<16x8x32xf32, #tpu.memory_space<vmem>>, %arg9: memref<8x32xf32, #tpu.memory_space<vmem>>, %arg10: memref<8x32xf32, #tpu.memory_space<vmem>>, %arg11: memref<8x32xf32, #tpu.memory_space<vmem>>, %arg12: memref<8x32xf32, #tpu.memory_space<vmem>>, %arg13: memref<8x32xf32, #tpu.memory_space<vmem>>, %arg14: memref<8x32xf32, #tpu.memory_space<vmem>>, %arg15: memref<8x32xf32, #tpu.memory_space<vmem>>, %arg16: memref<8x32xf32, #tpu.memory_space<vmem>>) attributes {dimension_semantics = [#tpu.dimension_semantics<arbitrary>], iteration_bounds = array<i64: 1>, scalar_prefetch = 1 : i64, scratch_operands = 4 : i64, tpu.core_type = #tpu.core_type<tc>, window_params = [{transform_indices = @transform_0, window_bounds = array<i64: 16, 8, 128>}, {transform_indices = @transform_1, window_bounds = array<i64: 16, 8, 128>}, {pipeline_mode = #tpu.pipeline_mode<synchronous>, transform_indices = @transform_2, window_bounds = array<i64: 8, 1>}, {pipeline_mode = #tpu.pipeline_mode<synchronous>, transform_indices = @transform_3, window_bounds = array<i64: 32, 128>}, {pipeline_mode = #tpu.pipeline_mode<synchronous>, transform_indices = @transform_4, window_bounds = array<i64: 32, 128>}, {transform_indices = @transform_5, window_bounds = array<i64: 16, 8, 32>}, {transform_indices = @transform_6, window_bounds = array<i64: 16, 8, 32>}, {pipeline_mode = #tpu.pipeline_mode<synchronous>, transform_indices = @transform_7, window_bounds = array<i64: 8, 32>}, {pipeline_mode = #tpu.pipeline_mode<synchronous>, transform_indices = @transform_8, window_bounds = array<i64: 8, 32>}, {pipeline_mode = #tpu.pipeline_mode<synchronous>, transform_indices = @transform_9, window_bounds = array<i64: 8, 32>}, {pipeline_mode = #tpu.pipeline_mode<synchronous>, transform_indices = @transform_10, window_bounds = array<i64: 8, 32>}]} {
    %c0_i32 = arith.constant 0 : i32
    %0 = arith.cmpi eq, %arg0, %c0_i32 : i32
    %1 = arith.extui %0 : i1 to i32
    %c0_i32_0 = arith.constant 0 : i32
    %2 = arith.cmpi ne, %1, %c0_i32_0 : i32
    scf.if %2 {
      %cst = arith.constant 0.000000e+00 : f32
      %18 = vector.broadcast %cst : f32 to vector<8x32xf32>
      %c0_7 = arith.constant 0 : index
      %c0_8 = arith.constant 0 : index
      %19 = vector.load %arg13[%c0_7, %c0_8] : memref<8x32xf32, #tpu.memory_space<vmem>>, vector<8x32xf32>
      tpu.vector_store %arg13[%c0_7, %c0_8], %18 {strides = array<i32>} : memref<8x32xf32, #tpu.memory_space<vmem>>, vector<8x32xf32>,
      %cst_9 = arith.constant 0.000000e+00 : f32
      %20 = vector.broadcast %cst_9 : f32 to vector<8x32xf32>
      %c0_10 = arith.constant 0 : index
      %c0_11 = arith.constant 0 : index
      %21 = vector.load %arg14[%c0_10, %c0_11] : memref<8x32xf32, #tpu.memory_space<vmem>>, vector<8x32xf32>
      tpu.vector_store %arg14[%c0_10, %c0_11], %20 {strides = array<i32>} : memref<8x32xf32, #tpu.memory_space<vmem>>, vector<8x32xf32>,
      %cst_12 = arith.constant 0.000000e+00 : f32
      %22 = vector.broadcast %cst_12 : f32 to vector<8x32xf32>
      %c0_13 = arith.constant 0 : index
      %c0_14 = arith.constant 0 : index
      %23 = vector.load %arg15[%c0_13, %c0_14] : memref<8x32xf32, #tpu.memory_space<vmem>>, vector<8x32xf32>
      tpu.vector_store %arg15[%c0_13, %c0_14], %22 {strides = array<i32>} : memref<8x32xf32, #tpu.memory_space<vmem>>, vector<8x32xf32>,
      %cst_15 = arith.constant 0.000000e+00 : f32
      %24 = vector.broadcast %cst_15 : f32 to vector<8x32xf32>
      %c0_16 = arith.constant 0 : index
      %c0_17 = arith.constant 0 : index
      %25 = vector.load %arg16[%c0_16, %c0_17] : memref<8x32xf32, #tpu.memory_space<vmem>>, vector<8x32xf32>
      tpu.vector_store %arg16[%c0_16, %c0_17], %24 {strides = array<i32>} : memref<8x32xf32, #tpu.memory_space<vmem>>, vector<8x32xf32>,
    } else {
    }
    %c0 = arith.constant 0 : index
    %3 = memref.load %arg1[%c0] : memref<1xi32, #tpu.memory_space<smem>>
    %c16_i32 = arith.constant 16 : i32
    %4 = arith.muli %arg0, %c16_i32 : i32
    %c0_i32_1 = arith.constant 0 : i32
    %5 = arith.subi %c0_i32_1, %arg0 : i32
    %c16_i32_2 = arith.constant 16 : i32
    %6 = arith.muli %5, %c16_i32_2 : i32
    %7 = arith.cmpi slt, %4, %3 : i32
    %8 = arith.cmpi slt, %6, %3 : i32
    %9 = arith.ori %7, %8 : i1
    %10 = arith.extui %9 : i1 to i32
    %c0_i32_3 = arith.constant 0 : i32
    %11 = arith.cmpi ne, %10, %c0_i32_3 : i32
    scf.if %11 {
      %c0_7 = arith.constant 0 : index
      %c0_8 = arith.constant 0 : index
      %18 = vector.load %arg4[%c0_7, %c0_8] : memref<8x1xi32, #tpu.memory_space<vmem>>, vector<8x1xi32>
      %19 = vector.broadcast %4 : i32 to vector<8x1xi32>
      %20 = arith.subi %18, %19 : vector<8x1xi32>
      %21 = vector.broadcast %6 : i32 to vector<8x1xi32>
      %22 = arith.subi %18, %21 : vector<8x1xi32>
      %c0_9 = arith.constant 0 : index
      %c0_10 = arith.constant 0 : index
      %23 = vector.load %arg5[%c0_9, %c0_10] : memref<32x128xf32, #tpu.memory_space<vmem>>, vector<32x128xf32>
      %c0_11 = arith.constant 0 : index
      %c0_12 = arith.constant 0 : index
      %24 = vector.load %arg6[%c0_11, %c0_12] : memref<32x128xf32, #tpu.memory_space<vmem>>, vector<32x128xf32>
      %c0_13 = arith.constant 0 : index
      %c0_14 = arith.constant 0 : index
      %25 = vector.load %arg13[%c0_13, %c0_14] : memref<8x32xf32, #tpu.memory_space<vmem>>, vector<8x32xf32>
      %c0_15 = arith.constant 0 : index
      %c0_16 = arith.constant 0 : index
      %26 = vector.load %arg14[%c0_15, %c0_16] : memref<8x32xf32, #tpu.memory_space<vmem>>, vector<8x32xf32>
      %c0_17 = arith.constant 0 : index
      %c0_18 = arith.constant 0 : index
      %27 = vector.load %arg15[%c0_17, %c0_18] : memref<8x32xf32, #tpu.memory_space<vmem>>, vector<8x32xf32>
      %c0_19 = arith.constant 0 : index
      %c0_20 = arith.constant 0 : index
      %28 = vector.load %arg16[%c0_19, %c0_20] : memref<8x32xf32, #tpu.memory_space<vmem>>, vector<8x32xf32>
      %c0_i32_21 = arith.constant 0 : i32
      %c2_i32 = arith.constant 2 : i32
      %29 = arith.addi %c0_i32_21, %c2_i32 : i32
      %c1_i32 = arith.constant 1 : i32
      %30:4 = scf.for %arg17 = %c0_i32_21 to %29 step %c1_i32 iter_args(%arg18 = %25, %arg19 = %26, %arg20 = %27, %arg21 = %28) -> (vector<8x32xf32>, vector<8x32xf32>, vector<8x32xf32>, vector<8x32xf32>)  : i32 {
        %c8_i32 = arith.constant 8 : i32
        %35 = arith.muli %arg17, %c8_i32 : i32
        %36 = tpu.assume_multiple %35, 8 : i32
        %c0_i32_31 = arith.constant 0 : i32
        %37 = arith.addi %36, %c0_i32_31 : i32
        %c15_i32 = arith.constant 15 : i32
        %38 = arith.subi %c15_i32, %37 : i32
        %cst = arith.constant dense<0.000000e+00> : vector<8x128xf32>
        %39 = tpu.matmul %arg18, %23, %cst {dimension_numbers = #tpu.dot_dimension_numbers<[1], [0], [0], [1], [0, 0, 1, 1], [], []>} : vector<8x32xf32>, vector<32x128xf32>, vector<8x128xf32> -> vector<8x128xf32>
        %cst_32 = arith.constant dense<0.000000e+00> : vector<8x128xf32>
        %40 = tpu.matmul %arg20, %24, %cst_32 {dimension_numbers = #tpu.dot_dimension_numbers<[1], [0], [0], [1], [0, 0, 1, 1], [], []>} : vector<8x32xf32>, vector<32x128xf32>, vector<8x128xf32> -> vector<8x128xf32>
        %41 = arith.index_cast %37 : i32 to index
        %c0_33 = arith.constant 0 : index
        %c0_34 = arith.constant 0 : index
        %42 = vector.load %arg2[%41, %c0_33, %c0_34] : memref<16x8x128xf32, #tpu.memory_space<vmem>>, vector<1x8x128xf32>
        %43 = vector.shape_cast %42 : vector<1x8x128xf32> to vector<8x128xf32>
        %44 = arith.addf %43, %39 : vector<8x128xf32>
        %45 = arith.index_cast %38 : i32 to index
        %c0_35 = arith.constant 0 : index
        %c0_36 = arith.constant 0 : index
        %46 = vector.load %arg3[%45, %c0_35, %c0_36] : memref<16x8x128xf32, #tpu.memory_space<vmem>>, vector<1x8x128xf32>
        %47 = vector.shape_cast %46 : vector<1x8x128xf32> to vector<8x128xf32>
        %48 = arith.addf %47, %40 : vector<8x128xf32>
        %49 = vector.extract_strided_slice %44 {offsets = [0, 0], sizes = [8, 96], strides = [1, 1]} : vector<8x128xf32> to vector<8x96xf32>
        %50 = arith.negf %49 : vector<8x96xf32>
        %51 = math.exp %50 : vector<8x96xf32>
        %cst_37 = arith.constant 1.000000e+00 : f32
        %52 = vector.broadcast %cst_37 : f32 to vector<8x96xf32>
        %53 = arith.addf %52, %51 : vector<8x96xf32>
        %54 = arith.divf %52, %53 : vector<8x96xf32>
        %55 = vector.extract_strided_slice %54 {offsets = [0, 0], sizes = [8, 32], strides = [1, 1]} : vector<8x96xf32> to vector<8x32xf32>
        %56 = vector.extract_strided_slice %54 {offsets = [0, 32], sizes = [8, 32], strides = [1, 1]} : vector<8x96xf32> to vector<8x32xf32>
        %57 = vector.extract_strided_slice %54 {offsets = [0, 64], sizes = [8, 32], strides = [1, 1]} : vector<8x96xf32> to vector<8x32xf32>
        %58 = vector.extract_strided_slice %44 {offsets = [0, 96], sizes = [8, 32], strides = [1, 1]} : vector<8x128xf32> to vector<8x32xf32>
        %59 = math.tanh %58 : vector<8x32xf32>
        %60 = arith.mulf %56, %arg19 : vector<8x32xf32>
        %61 = arith.mulf %55, %59 : vector<8x32xf32>
        %62 = arith.addf %60, %61 : vector<8x32xf32>
        %63 = math.tanh %62 : vector<8x32xf32>
        %64 = arith.mulf %57, %63 : vector<8x32xf32>
        %65 = vector.extract_strided_slice %48 {offsets = [0, 0], sizes = [8, 96], strides = [1, 1]} : vector<8x128xf32> to vector<8x96xf32>
        %66 = arith.negf %65 : vector<8x96xf32>
        %67 = math.exp %66 : vector<8x96xf32>
        %cst_38 = arith.constant 1.000000e+00 : f32
        %68 = vector.broadcast %cst_38 : f32 to vector<8x96xf32>
        %69 = arith.addf %68, %67 : vector<8x96xf32>
        %70 = arith.divf %68, %69 : vector<8x96xf32>
        %71 = vector.extract_strided_slice %70 {offsets = [0, 0], sizes = [8, 32], strides = [1, 1]} : vector<8x96xf32> to vector<8x32xf32>
        %72 = vector.extract_strided_slice %70 {offsets = [0, 32], sizes = [8, 32], strides = [1, 1]} : vector<8x96xf32> to vector<8x32xf32>
        %73 = vector.extract_strided_slice %70 {offsets = [0, 64], sizes = [8, 32], strides = [1, 1]} : vector<8x96xf32> to vector<8x32xf32>
        %74 = vector.extract_strided_slice %48 {offsets = [0, 96], sizes = [8, 32], strides = [1, 1]} : vector<8x128xf32> to vector<8x32xf32>
        %75 = math.tanh %74 : vector<8x32xf32>
        %76 = arith.mulf %72, %arg21 : vector<8x32xf32>
        %77 = arith.mulf %71, %75 : vector<8x32xf32>
        %78 = arith.addf %76, %77 : vector<8x32xf32>
        %79 = math.tanh %78 : vector<8x32xf32>
        %80 = arith.mulf %73, %79 : vector<8x32xf32>
        %81 = vector.broadcast %37 : i32 to vector<8x1xi32>
        %82 = arith.cmpi slt, %81, %20 : vector<8x1xi32>
        %83 = vector.broadcast %38 : i32 to vector<8x1xi32>
        %84 = arith.cmpi slt, %83, %22 : vector<8x1xi32>
        %cst_39 = arith.constant 0.000000e+00 : f32
        %85 = vector.shape_cast %82 : vector<8x1xi1> to vector<8x1xi1>
        %86 = vector.broadcast %85 : vector<8x1xi1> to vector<8x32xi1>
        %87 = vector.broadcast %cst_39 : f32 to vector<8x32xf32>
        %88 = arith.select %86, %64, %87 : vector<8x32xi1>, vector<8x32xf32>
        %89 = arith.index_cast %37 : i32 to index
        %c0_40 = arith.constant 0 : index
        %c0_41 = arith.constant 0 : index
        %90 = vector.load %arg7[%89, %c0_40, %c0_41] : memref<16x8x32xf32, #tpu.memory_space<vmem>>, vector<1x8x32xf32>
        %91 = vector.shape_cast %90 : vector<1x8x32xf32> to vector<8x32xf32>
        %92 = vector.shape_cast %88 : vector<8x32xf32> to vector<1x8x32xf32>
        tpu.vector_store %arg7[%89, %c0_40, %c0_41], %92 {strides = array<i32>} : memref<16x8x32xf32, #tpu.memory_space<vmem>>, vector<1x8x32xf32>,
        %cst_42 = arith.constant 0.000000e+00 : f32
        %93 = vector.shape_cast %84 : vector<8x1xi1> to vector<8x1xi1>
        %94 = vector.broadcast %93 : vector<8x1xi1> to vector<8x32xi1>
        %95 = vector.broadcast %cst_42 : f32 to vector<8x32xf32>
        %96 = arith.select %94, %80, %95 : vector<8x32xi1>, vector<8x32xf32>
        %97 = arith.index_cast %38 : i32 to index
        %c0_43 = arith.constant 0 : index
        %c0_44 = arith.constant 0 : index
        %98 = vector.load %arg8[%97, %c0_43, %c0_44] : memref<16x8x32xf32, #tpu.memory_space<vmem>>, vector<1x8x32xf32>
        %99 = vector.shape_cast %98 : vector<1x8x32xf32> to vector<8x32xf32>
        %100 = vector.shape_cast %96 : vector<8x32xf32> to vector<1x8x32xf32>
        tpu.vector_store %arg8[%97, %c0_43, %c0_44], %100 {strides = array<i32>} : memref<16x8x32xf32, #tpu.memory_space<vmem>>, vector<1x8x32xf32>,
        %101 = vector.shape_cast %82 : vector<8x1xi1> to vector<8x1xi1>
        %102 = vector.broadcast %101 : vector<8x1xi1> to vector<8x32xi1>
        %103 = arith.select %102, %64, %arg18 : vector<8x32xi1>, vector<8x32xf32>
        %104 = vector.shape_cast %82 : vector<8x1xi1> to vector<8x1xi1>
        %105 = vector.broadcast %104 : vector<8x1xi1> to vector<8x32xi1>
        %106 = arith.select %105, %62, %arg19 : vector<8x32xi1>, vector<8x32xf32>
        %107 = vector.shape_cast %84 : vector<8x1xi1> to vector<8x1xi1>
        %108 = vector.broadcast %107 : vector<8x1xi1> to vector<8x32xi1>
        %109 = arith.select %108, %80, %arg20 : vector<8x32xi1>, vector<8x32xf32>
        %110 = vector.shape_cast %84 : vector<8x1xi1> to vector<8x1xi1>
        %111 = vector.broadcast %110 : vector<8x1xi1> to vector<8x32xi1>
        %112 = arith.select %111, %78, %arg21 : vector<8x32xi1>, vector<8x32xf32>
        %c1_i32_45 = arith.constant 1 : i32
        %113 = arith.addi %36, %c1_i32_45 : i32
        %c15_i32_46 = arith.constant 15 : i32
        %114 = arith.subi %c15_i32_46, %113 : i32
        %cst_47 = arith.constant dense<0.000000e+00> : vector<8x128xf32>
        %115 = tpu.matmul %103, %23, %cst_47 {dimension_numbers = #tpu.dot_dimension_numbers<[1], [0], [0], [1], [0, 0, 1, 1], [], []>} : vector<8x32xf32>, vector<32x128xf32>, vector<8x128xf32> -> vector<8x128xf32>
        %cst_48 = arith.constant dense<0.000000e+00> : vector<8x128xf32>
        %116 = tpu.matmul %109, %24, %cst_48 {dimension_numbers = #tpu.dot_dimension_numbers<[1], [0], [0], [1], [0, 0, 1, 1], [], []>} : vector<8x32xf32>, vector<32x128xf32>, vector<8x128xf32> -> vector<8x128xf32>
        %117 = arith.index_cast %113 : i32 to index
        %c0_49 = arith.constant 0 : index
        %c0_50 = arith.constant 0 : index
        %118 = vector.load %arg2[%117, %c0_49, %c0_50] : memref<16x8x128xf32, #tpu.memory_space<vmem>>, vector<1x8x128xf32>
        %119 = vector.shape_cast %118 : vector<1x8x128xf32> to vector<8x128xf32>
        %120 = arith.addf %119, %115 : vector<8x128xf32>
        %121 = arith.index_cast %114 : i32 to index
        %c0_51 = arith.constant 0 : index
        %c0_52 = arith.constant 0 : index
        %122 = vector.load %arg3[%121, %c0_51, %c0_52] : memref<16x8x128xf32, #tpu.memory_space<vmem>>, vector<1x8x128xf32>
        %123 = vector.shape_cast %122 : vector<1x8x128xf32> to vector<8x128xf32>
        %124 = arith.addf %123, %116 : vector<8x128xf32>
        %125 = vector.extract_strided_slice %120 {offsets = [0, 0], sizes = [8, 96], strides = [1, 1]} : vector<8x128xf32> to vector<8x96xf32>
        %126 = arith.negf %125 : vector<8x96xf32>
        %127 = math.exp %126 : vector<8x96xf32>
        %cst_53 = arith.constant 1.000000e+00 : f32
        %128 = vector.broadcast %cst_53 : f32 to vector<8x96xf32>
        %129 = arith.addf %128, %127 : vector<8x96xf32>
        %130 = arith.divf %128, %129 : vector<8x96xf32>
        %131 = vector.extract_strided_slice %130 {offsets = [0, 0], sizes = [8, 32], strides = [1, 1]} : vector<8x96xf32> to vector<8x32xf32>
        %132 = vector.extract_strided_slice %130 {offsets = [0, 32], sizes = [8, 32], strides = [1, 1]} : vector<8x96xf32> to vector<8x32xf32>
        %133 = vector.extract_strided_slice %130 {offsets = [0, 64], sizes = [8, 32], strides = [1, 1]} : vector<8x96xf32> to vector<8x32xf32>
        %134 = vector.extract_strided_slice %120 {offsets = [0, 96], sizes = [8, 32], strides = [1, 1]} : vector<8x128xf32> to vector<8x32xf32>
        %135 = math.tanh %134 : vector<8x32xf32>
        %136 = arith.mulf %132, %106 : vector<8x32xf32>
        %137 = arith.mulf %131, %135 : vector<8x32xf32>
        %138 = arith.addf %136, %137 : vector<8x32xf32>
        %139 = math.tanh %138 : vector<8x32xf32>
        %140 = arith.mulf %133, %139 : vector<8x32xf32>
        %141 = vector.extract_strided_slice %124 {offsets = [0, 0], sizes = [8, 96], strides = [1, 1]} : vector<8x128xf32> to vector<8x96xf32>
        %142 = arith.negf %141 : vector<8x96xf32>
        %143 = math.exp %142 : vector<8x96xf32>
        %cst_54 = arith.constant 1.000000e+00 : f32
        %144 = vector.broadcast %cst_54 : f32 to vector<8x96xf32>
        %145 = arith.addf %144, %143 : vector<8x96xf32>
        %146 = arith.divf %144, %145 : vector<8x96xf32>
        %147 = vector.extract_strided_slice %146 {offsets = [0, 0], sizes = [8, 32], strides = [1, 1]} : vector<8x96xf32> to vector<8x32xf32>
        %148 = vector.extract_strided_slice %146 {offsets = [0, 32], sizes = [8, 32], strides = [1, 1]} : vector<8x96xf32> to vector<8x32xf32>
        %149 = vector.extract_strided_slice %146 {offsets = [0, 64], sizes = [8, 32], strides = [1, 1]} : vector<8x96xf32> to vector<8x32xf32>
        %150 = vector.extract_strided_slice %124 {offsets = [0, 96], sizes = [8, 32], strides = [1, 1]} : vector<8x128xf32> to vector<8x32xf32>
        %151 = math.tanh %150 : vector<8x32xf32>
        %152 = arith.mulf %148, %112 : vector<8x32xf32>
        %153 = arith.mulf %147, %151 : vector<8x32xf32>
        %154 = arith.addf %152, %153 : vector<8x32xf32>
        %155 = math.tanh %154 : vector<8x32xf32>
        %156 = arith.mulf %149, %155 : vector<8x32xf32>
        %157 = vector.broadcast %113 : i32 to vector<8x1xi32>
        %158 = arith.cmpi slt, %157, %20 : vector<8x1xi32>
        %159 = vector.broadcast %114 : i32 to vector<8x1xi32>
        %160 = arith.cmpi slt, %159, %22 : vector<8x1xi32>
        %cst_55 = arith.constant 0.000000e+00 : f32
        %161 = vector.shape_cast %158 : vector<8x1xi1> to vector<8x1xi1>
        %162 = vector.broadcast %161 : vector<8x1xi1> to vector<8x32xi1>
        %163 = vector.broadcast %cst_55 : f32 to vector<8x32xf32>
        %164 = arith.select %162, %140, %163 : vector<8x32xi1>, vector<8x32xf32>
        %165 = arith.index_cast %113 : i32 to index
        %c0_56 = arith.constant 0 : index
        %c0_57 = arith.constant 0 : index
        %166 = vector.load %arg7[%165, %c0_56, %c0_57] : memref<16x8x32xf32, #tpu.memory_space<vmem>>, vector<1x8x32xf32>
        %167 = vector.shape_cast %166 : vector<1x8x32xf32> to vector<8x32xf32>
        %168 = vector.shape_cast %164 : vector<8x32xf32> to vector<1x8x32xf32>
        tpu.vector_store %arg7[%165, %c0_56, %c0_57], %168 {strides = array<i32>} : memref<16x8x32xf32, #tpu.memory_space<vmem>>, vector<1x8x32xf32>,
        %cst_58 = arith.constant 0.000000e+00 : f32
        %169 = vector.shape_cast %160 : vector<8x1xi1> to vector<8x1xi1>
        %170 = vector.broadcast %169 : vector<8x1xi1> to vector<8x32xi1>
        %171 = vector.broadcast %cst_58 : f32 to vector<8x32xf32>
        %172 = arith.select %170, %156, %171 : vector<8x32xi1>, vector<8x32xf32>
        %173 = arith.index_cast %114 : i32 to index
        %c0_59 = arith.constant 0 : index
        %c0_60 = arith.constant 0 : index
        %174 = vector.load %arg8[%173, %c0_59, %c0_60] : memref<16x8x32xf32, #tpu.memory_space<vmem>>, vector<1x8x32xf32>
        %175 = vector.shape_cast %174 : vector<1x8x32xf32> to vector<8x32xf32>
        %176 = vector.shape_cast %172 : vector<8x32xf32> to vector<1x8x32xf32>
        tpu.vector_store %arg8[%173, %c0_59, %c0_60], %176 {strides = array<i32>} : memref<16x8x32xf32, #tpu.memory_space<vmem>>, vector<1x8x32xf32>,
        %177 = vector.shape_cast %158 : vector<8x1xi1> to vector<8x1xi1>
        %178 = vector.broadcast %177 : vector<8x1xi1> to vector<8x32xi1>
        %179 = arith.select %178, %140, %103 : vector<8x32xi1>, vector<8x32xf32>
        %180 = vector.shape_cast %158 : vector<8x1xi1> to vector<8x1xi1>
        %181 = vector.broadcast %180 : vector<8x1xi1> to vector<8x32xi1>
        %182 = arith.select %181, %138, %106 : vector<8x32xi1>, vector<8x32xf32>
        %183 = vector.shape_cast %160 : vector<8x1xi1> to vector<8x1xi1>
        %184 = vector.broadcast %183 : vector<8x1xi1> to vector<8x32xi1>
        %185 = arith.select %184, %156, %109 : vector<8x32xi1>, vector<8x32xf32>
        %186 = vector.shape_cast %160 : vector<8x1xi1> to vector<8x1xi1>
        %187 = vector.broadcast %186 : vector<8x1xi1> to vector<8x32xi1>
        %188 = arith.select %187, %154, %112 : vector<8x32xi1>, vector<8x32xf32>
        %c2_i32_61 = arith.constant 2 : i32
        %189 = arith.addi %36, %c2_i32_61 : i32
        %c15_i32_62 = arith.constant 15 : i32
        %190 = arith.subi %c15_i32_62, %189 : i32
        %cst_63 = arith.constant dense<0.000000e+00> : vector<8x128xf32>
        %191 = tpu.matmul %179, %23, %cst_63 {dimension_numbers = #tpu.dot_dimension_numbers<[1], [0], [0], [1], [0, 0, 1, 1], [], []>} : vector<8x32xf32>, vector<32x128xf32>, vector<8x128xf32> -> vector<8x128xf32>
        %cst_64 = arith.constant dense<0.000000e+00> : vector<8x128xf32>
        %192 = tpu.matmul %185, %24, %cst_64 {dimension_numbers = #tpu.dot_dimension_numbers<[1], [0], [0], [1], [0, 0, 1, 1], [], []>} : vector<8x32xf32>, vector<32x128xf32>, vector<8x128xf32> -> vector<8x128xf32>
        %193 = arith.index_cast %189 : i32 to index
        %c0_65 = arith.constant 0 : index
        %c0_66 = arith.constant 0 : index
        %194 = vector.load %arg2[%193, %c0_65, %c0_66] : memref<16x8x128xf32, #tpu.memory_space<vmem>>, vector<1x8x128xf32>
        %195 = vector.shape_cast %194 : vector<1x8x128xf32> to vector<8x128xf32>
        %196 = arith.addf %195, %191 : vector<8x128xf32>
        %197 = arith.index_cast %190 : i32 to index
        %c0_67 = arith.constant 0 : index
        %c0_68 = arith.constant 0 : index
        %198 = vector.load %arg3[%197, %c0_67, %c0_68] : memref<16x8x128xf32, #tpu.memory_space<vmem>>, vector<1x8x128xf32>
        %199 = vector.shape_cast %198 : vector<1x8x128xf32> to vector<8x128xf32>
        %200 = arith.addf %199, %192 : vector<8x128xf32>
        %201 = vector.extract_strided_slice %196 {offsets = [0, 0], sizes = [8, 96], strides = [1, 1]} : vector<8x128xf32> to vector<8x96xf32>
        %202 = arith.negf %201 : vector<8x96xf32>
        %203 = math.exp %202 : vector<8x96xf32>
        %cst_69 = arith.constant 1.000000e+00 : f32
        %204 = vector.broadcast %cst_69 : f32 to vector<8x96xf32>
        %205 = arith.addf %204, %203 : vector<8x96xf32>
        %206 = arith.divf %204, %205 : vector<8x96xf32>
        %207 = vector.extract_strided_slice %206 {offsets = [0, 0], sizes = [8, 32], strides = [1, 1]} : vector<8x96xf32> to vector<8x32xf32>
        %208 = vector.extract_strided_slice %206 {offsets = [0, 32], sizes = [8, 32], strides = [1, 1]} : vector<8x96xf32> to vector<8x32xf32>
        %209 = vector.extract_strided_slice %206 {offsets = [0, 64], sizes = [8, 32], strides = [1, 1]} : vector<8x96xf32> to vector<8x32xf32>
        %210 = vector.extract_strided_slice %196 {offsets = [0, 96], sizes = [8, 32], strides = [1, 1]} : vector<8x128xf32> to vector<8x32xf32>
        %211 = math.tanh %210 : vector<8x32xf32>
        %212 = arith.mulf %208, %182 : vector<8x32xf32>
        %213 = arith.mulf %207, %211 : vector<8x32xf32>
        %214 = arith.addf %212, %213 : vector<8x32xf32>
        %215 = math.tanh %214 : vector<8x32xf32>
        %216 = arith.mulf %209, %215 : vector<8x32xf32>
        %217 = vector.extract_strided_slice %200 {offsets = [0, 0], sizes = [8, 96], strides = [1, 1]} : vector<8x128xf32> to vector<8x96xf32>
        %218 = arith.negf %217 : vector<8x96xf32>
        %219 = math.exp %218 : vector<8x96xf32>
        %cst_70 = arith.constant 1.000000e+00 : f32
        %220 = vector.broadcast %cst_70 : f32 to vector<8x96xf32>
        %221 = arith.addf %220, %219 : vector<8x96xf32>
        %222 = arith.divf %220, %221 : vector<8x96xf32>
        %223 = vector.extract_strided_slice %222 {offsets = [0, 0], sizes = [8, 32], strides = [1, 1]} : vector<8x96xf32> to vector<8x32xf32>
        %224 = vector.extract_strided_slice %222 {offsets = [0, 32], sizes = [8, 32], strides = [1, 1]} : vector<8x96xf32> to vector<8x32xf32>
        %225 = vector.extract_strided_slice %222 {offsets = [0, 64], sizes = [8, 32], strides = [1, 1]} : vector<8x96xf32> to vector<8x32xf32>
        %226 = vector.extract_strided_slice %200 {offsets = [0, 96], sizes = [8, 32], strides = [1, 1]} : vector<8x128xf32> to vector<8x32xf32>
        %227 = math.tanh %226 : vector<8x32xf32>
        %228 = arith.mulf %224, %188 : vector<8x32xf32>
        %229 = arith.mulf %223, %227 : vector<8x32xf32>
        %230 = arith.addf %228, %229 : vector<8x32xf32>
        %231 = math.tanh %230 : vector<8x32xf32>
        %232 = arith.mulf %225, %231 : vector<8x32xf32>
        %233 = vector.broadcast %189 : i32 to vector<8x1xi32>
        %234 = arith.cmpi slt, %233, %20 : vector<8x1xi32>
        %235 = vector.broadcast %190 : i32 to vector<8x1xi32>
        %236 = arith.cmpi slt, %235, %22 : vector<8x1xi32>
        %cst_71 = arith.constant 0.000000e+00 : f32
        %237 = vector.shape_cast %234 : vector<8x1xi1> to vector<8x1xi1>
        %238 = vector.broadcast %237 : vector<8x1xi1> to vector<8x32xi1>
        %239 = vector.broadcast %cst_71 : f32 to vector<8x32xf32>
        %240 = arith.select %238, %216, %239 : vector<8x32xi1>, vector<8x32xf32>
        %241 = arith.index_cast %189 : i32 to index
        %c0_72 = arith.constant 0 : index
        %c0_73 = arith.constant 0 : index
        %242 = vector.load %arg7[%241, %c0_72, %c0_73] : memref<16x8x32xf32, #tpu.memory_space<vmem>>, vector<1x8x32xf32>
        %243 = vector.shape_cast %242 : vector<1x8x32xf32> to vector<8x32xf32>
        %244 = vector.shape_cast %240 : vector<8x32xf32> to vector<1x8x32xf32>
        tpu.vector_store %arg7[%241, %c0_72, %c0_73], %244 {strides = array<i32>} : memref<16x8x32xf32, #tpu.memory_space<vmem>>, vector<1x8x32xf32>,
        %cst_74 = arith.constant 0.000000e+00 : f32
        %245 = vector.shape_cast %236 : vector<8x1xi1> to vector<8x1xi1>
        %246 = vector.broadcast %245 : vector<8x1xi1> to vector<8x32xi1>
        %247 = vector.broadcast %cst_74 : f32 to vector<8x32xf32>
        %248 = arith.select %246, %232, %247 : vector<8x32xi1>, vector<8x32xf32>
        %249 = arith.index_cast %190 : i32 to index
        %c0_75 = arith.constant 0 : index
        %c0_76 = arith.constant 0 : index
        %250 = vector.load %arg8[%249, %c0_75, %c0_76] : memref<16x8x32xf32, #tpu.memory_space<vmem>>, vector<1x8x32xf32>
        %251 = vector.shape_cast %250 : vector<1x8x32xf32> to vector<8x32xf32>
        %252 = vector.shape_cast %248 : vector<8x32xf32> to vector<1x8x32xf32>
        tpu.vector_store %arg8[%249, %c0_75, %c0_76], %252 {strides = array<i32>} : memref<16x8x32xf32, #tpu.memory_space<vmem>>, vector<1x8x32xf32>,
        %253 = vector.shape_cast %234 : vector<8x1xi1> to vector<8x1xi1>
        %254 = vector.broadcast %253 : vector<8x1xi1> to vector<8x32xi1>
        %255 = arith.select %254, %216, %179 : vector<8x32xi1>, vector<8x32xf32>
        %256 = vector.shape_cast %234 : vector<8x1xi1> to vector<8x1xi1>
        %257 = vector.broadcast %256 : vector<8x1xi1> to vector<8x32xi1>
        %258 = arith.select %257, %214, %182 : vector<8x32xi1>, vector<8x32xf32>
        %259 = vector.shape_cast %236 : vector<8x1xi1> to vector<8x1xi1>
        %260 = vector.broadcast %259 : vector<8x1xi1> to vector<8x32xi1>
        %261 = arith.select %260, %232, %185 : vector<8x32xi1>, vector<8x32xf32>
        %262 = vector.shape_cast %236 : vector<8x1xi1> to vector<8x1xi1>
        %263 = vector.broadcast %262 : vector<8x1xi1> to vector<8x32xi1>
        %264 = arith.select %263, %230, %188 : vector<8x32xi1>, vector<8x32xf32>
        %c3_i32 = arith.constant 3 : i32
        %265 = arith.addi %36, %c3_i32 : i32
        %c15_i32_77 = arith.constant 15 : i32
        %266 = arith.subi %c15_i32_77, %265 : i32
        %cst_78 = arith.constant dense<0.000000e+00> : vector<8x128xf32>
        %267 = tpu.matmul %255, %23, %cst_78 {dimension_numbers = #tpu.dot_dimension_numbers<[1], [0], [0], [1], [0, 0, 1, 1], [], []>} : vector<8x32xf32>, vector<32x128xf32>, vector<8x128xf32> -> vector<8x128xf32>
        %cst_79 = arith.constant dense<0.000000e+00> : vector<8x128xf32>
        %268 = tpu.matmul %261, %24, %cst_79 {dimension_numbers = #tpu.dot_dimension_numbers<[1], [0], [0], [1], [0, 0, 1, 1], [], []>} : vector<8x32xf32>, vector<32x128xf32>, vector<8x128xf32> -> vector<8x128xf32>
        %269 = arith.index_cast %265 : i32 to index
        %c0_80 = arith.constant 0 : index
        %c0_81 = arith.constant 0 : index
        %270 = vector.load %arg2[%269, %c0_80, %c0_81] : memref<16x8x128xf32, #tpu.memory_space<vmem>>, vector<1x8x128xf32>
        %271 = vector.shape_cast %270 : vector<1x8x128xf32> to vector<8x128xf32>
        %272 = arith.addf %271, %267 : vector<8x128xf32>
        %273 = arith.index_cast %266 : i32 to index
        %c0_82 = arith.constant 0 : index
        %c0_83 = arith.constant 0 : index
        %274 = vector.load %arg3[%273, %c0_82, %c0_83] : memref<16x8x128xf32, #tpu.memory_space<vmem>>, vector<1x8x128xf32>
        %275 = vector.shape_cast %274 : vector<1x8x128xf32> to vector<8x128xf32>
        %276 = arith.addf %275, %268 : vector<8x128xf32>
        %277 = vector.extract_strided_slice %272 {offsets = [0, 0], sizes = [8, 96], strides = [1, 1]} : vector<8x128xf32> to vector<8x96xf32>
        %278 = arith.negf %277 : vector<8x96xf32>
        %279 = math.exp %278 : vector<8x96xf32>
        %cst_84 = arith.constant 1.000000e+00 : f32
        %280 = vector.broadcast %cst_84 : f32 to vector<8x96xf32>
        %281 = arith.addf %280, %279 : vector<8x96xf32>
        %282 = arith.divf %280, %281 : vector<8x96xf32>
        %283 = vector.extract_strided_slice %282 {offsets = [0, 0], sizes = [8, 32], strides = [1, 1]} : vector<8x96xf32> to vector<8x32xf32>
        %284 = vector.extract_strided_slice %282 {offsets = [0, 32], sizes = [8, 32], strides = [1, 1]} : vector<8x96xf32> to vector<8x32xf32>
        %285 = vector.extract_strided_slice %282 {offsets = [0, 64], sizes = [8, 32], strides = [1, 1]} : vector<8x96xf32> to vector<8x32xf32>
        %286 = vector.extract_strided_slice %272 {offsets = [0, 96], sizes = [8, 32], strides = [1, 1]} : vector<8x128xf32> to vector<8x32xf32>
        %287 = math.tanh %286 : vector<8x32xf32>
        %288 = arith.mulf %284, %258 : vector<8x32xf32>
        %289 = arith.mulf %283, %287 : vector<8x32xf32>
        %290 = arith.addf %288, %289 : vector<8x32xf32>
        %291 = math.tanh %290 : vector<8x32xf32>
        %292 = arith.mulf %285, %291 : vector<8x32xf32>
        %293 = vector.extract_strided_slice %276 {offsets = [0, 0], sizes = [8, 96], strides = [1, 1]} : vector<8x128xf32> to vector<8x96xf32>
        %294 = arith.negf %293 : vector<8x96xf32>
        %295 = math.exp %294 : vector<8x96xf32>
        %cst_85 = arith.constant 1.000000e+00 : f32
        %296 = vector.broadcast %cst_85 : f32 to vector<8x96xf32>
        %297 = arith.addf %296, %295 : vector<8x96xf32>
        %298 = arith.divf %296, %297 : vector<8x96xf32>
        %299 = vector.extract_strided_slice %298 {offsets = [0, 0], sizes = [8, 32], strides = [1, 1]} : vector<8x96xf32> to vector<8x32xf32>
        %300 = vector.extract_strided_slice %298 {offsets = [0, 32], sizes = [8, 32], strides = [1, 1]} : vector<8x96xf32> to vector<8x32xf32>
        %301 = vector.extract_strided_slice %298 {offsets = [0, 64], sizes = [8, 32], strides = [1, 1]} : vector<8x96xf32> to vector<8x32xf32>
        %302 = vector.extract_strided_slice %276 {offsets = [0, 96], sizes = [8, 32], strides = [1, 1]} : vector<8x128xf32> to vector<8x32xf32>
        %303 = math.tanh %302 : vector<8x32xf32>
        %304 = arith.mulf %300, %264 : vector<8x32xf32>
        %305 = arith.mulf %299, %303 : vector<8x32xf32>
        %306 = arith.addf %304, %305 : vector<8x32xf32>
        %307 = math.tanh %306 : vector<8x32xf32>
        %308 = arith.mulf %301, %307 : vector<8x32xf32>
        %309 = vector.broadcast %265 : i32 to vector<8x1xi32>
        %310 = arith.cmpi slt, %309, %20 : vector<8x1xi32>
        %311 = vector.broadcast %266 : i32 to vector<8x1xi32>
        %312 = arith.cmpi slt, %311, %22 : vector<8x1xi32>
        %cst_86 = arith.constant 0.000000e+00 : f32
        %313 = vector.shape_cast %310 : vector<8x1xi1> to vector<8x1xi1>
        %314 = vector.broadcast %313 : vector<8x1xi1> to vector<8x32xi1>
        %315 = vector.broadcast %cst_86 : f32 to vector<8x32xf32>
        %316 = arith.select %314, %292, %315 : vector<8x32xi1>, vector<8x32xf32>
        %317 = arith.index_cast %265 : i32 to index
        %c0_87 = arith.constant 0 : index
        %c0_88 = arith.constant 0 : index
        %318 = vector.load %arg7[%317, %c0_87, %c0_88] : memref<16x8x32xf32, #tpu.memory_space<vmem>>, vector<1x8x32xf32>
        %319 = vector.shape_cast %318 : vector<1x8x32xf32> to vector<8x32xf32>
        %320 = vector.shape_cast %316 : vector<8x32xf32> to vector<1x8x32xf32>
        tpu.vector_store %arg7[%317, %c0_87, %c0_88], %320 {strides = array<i32>} : memref<16x8x32xf32, #tpu.memory_space<vmem>>, vector<1x8x32xf32>,
        %cst_89 = arith.constant 0.000000e+00 : f32
        %321 = vector.shape_cast %312 : vector<8x1xi1> to vector<8x1xi1>
        %322 = vector.broadcast %321 : vector<8x1xi1> to vector<8x32xi1>
        %323 = vector.broadcast %cst_89 : f32 to vector<8x32xf32>
        %324 = arith.select %322, %308, %323 : vector<8x32xi1>, vector<8x32xf32>
        %325 = arith.index_cast %266 : i32 to index
        %c0_90 = arith.constant 0 : index
        %c0_91 = arith.constant 0 : index
        %326 = vector.load %arg8[%325, %c0_90, %c0_91] : memref<16x8x32xf32, #tpu.memory_space<vmem>>, vector<1x8x32xf32>
        %327 = vector.shape_cast %326 : vector<1x8x32xf32> to vector<8x32xf32>
        %328 = vector.shape_cast %324 : vector<8x32xf32> to vector<1x8x32xf32>
        tpu.vector_store %arg8[%325, %c0_90, %c0_91], %328 {strides = array<i32>} : memref<16x8x32xf32, #tpu.memory_space<vmem>>, vector<1x8x32xf32>,
        %329 = vector.shape_cast %310 : vector<8x1xi1> to vector<8x1xi1>
        %330 = vector.broadcast %329 : vector<8x1xi1> to vector<8x32xi1>
        %331 = arith.select %330, %292, %255 : vector<8x32xi1>, vector<8x32xf32>
        %332 = vector.shape_cast %310 : vector<8x1xi1> to vector<8x1xi1>
        %333 = vector.broadcast %332 : vector<8x1xi1> to vector<8x32xi1>
        %334 = arith.select %333, %290, %258 : vector<8x32xi1>, vector<8x32xf32>
        %335 = vector.shape_cast %312 : vector<8x1xi1> to vector<8x1xi1>
        %336 = vector.broadcast %335 : vector<8x1xi1> to vector<8x32xi1>
        %337 = arith.select %336, %308, %261 : vector<8x32xi1>, vector<8x32xf32>
        %338 = vector.shape_cast %312 : vector<8x1xi1> to vector<8x1xi1>
        %339 = vector.broadcast %338 : vector<8x1xi1> to vector<8x32xi1>
        %340 = arith.select %339, %306, %264 : vector<8x32xi1>, vector<8x32xf32>
        %c4_i32 = arith.constant 4 : i32
        %341 = arith.addi %36, %c4_i32 : i32
        %c15_i32_92 = arith.constant 15 : i32
        %342 = arith.subi %c15_i32_92, %341 : i32
        %cst_93 = arith.constant dense<0.000000e+00> : vector<8x128xf32>
        %343 = tpu.matmul %331, %23, %cst_93 {dimension_numbers = #tpu.dot_dimension_numbers<[1], [0], [0], [1], [0, 0, 1, 1], [], []>} : vector<8x32xf32>, vector<32x128xf32>, vector<8x128xf32> -> vector<8x128xf32>
        %cst_94 = arith.constant dense<0.000000e+00> : vector<8x128xf32>
        %344 = tpu.matmul %337, %24, %cst_94 {dimension_numbers = #tpu.dot_dimension_numbers<[1], [0], [0], [1], [0, 0, 1, 1], [], []>} : vector<8x32xf32>, vector<32x128xf32>, vector<8x128xf32> -> vector<8x128xf32>
        %345 = arith.index_cast %341 : i32 to index
        %c0_95 = arith.constant 0 : index
        %c0_96 = arith.constant 0 : index
        %346 = vector.load %arg2[%345, %c0_95, %c0_96] : memref<16x8x128xf32, #tpu.memory_space<vmem>>, vector<1x8x128xf32>
        %347 = vector.shape_cast %346 : vector<1x8x128xf32> to vector<8x128xf32>
        %348 = arith.addf %347, %343 : vector<8x128xf32>
        %349 = arith.index_cast %342 : i32 to index
        %c0_97 = arith.constant 0 : index
        %c0_98 = arith.constant 0 : index
        %350 = vector.load %arg3[%349, %c0_97, %c0_98] : memref<16x8x128xf32, #tpu.memory_space<vmem>>, vector<1x8x128xf32>
        %351 = vector.shape_cast %350 : vector<1x8x128xf32> to vector<8x128xf32>
        %352 = arith.addf %351, %344 : vector<8x128xf32>
        %353 = vector.extract_strided_slice %348 {offsets = [0, 0], sizes = [8, 96], strides = [1, 1]} : vector<8x128xf32> to vector<8x96xf32>
        %354 = arith.negf %353 : vector<8x96xf32>
        %355 = math.exp %354 : vector<8x96xf32>
        %cst_99 = arith.constant 1.000000e+00 : f32
        %356 = vector.broadcast %cst_99 : f32 to vector<8x96xf32>
        %357 = arith.addf %356, %355 : vector<8x96xf32>
        %358 = arith.divf %356, %357 : vector<8x96xf32>
        %359 = vector.extract_strided_slice %358 {offsets = [0, 0], sizes = [8, 32], strides = [1, 1]} : vector<8x96xf32> to vector<8x32xf32>
        %360 = vector.extract_strided_slice %358 {offsets = [0, 32], sizes = [8, 32], strides = [1, 1]} : vector<8x96xf32> to vector<8x32xf32>
        %361 = vector.extract_strided_slice %358 {offsets = [0, 64], sizes = [8, 32], strides = [1, 1]} : vector<8x96xf32> to vector<8x32xf32>
        %362 = vector.extract_strided_slice %348 {offsets = [0, 96], sizes = [8, 32], strides = [1, 1]} : vector<8x128xf32> to vector<8x32xf32>
        %363 = math.tanh %362 : vector<8x32xf32>
        %364 = arith.mulf %360, %334 : vector<8x32xf32>
        %365 = arith.mulf %359, %363 : vector<8x32xf32>
        %366 = arith.addf %364, %365 : vector<8x32xf32>
        %367 = math.tanh %366 : vector<8x32xf32>
        %368 = arith.mulf %361, %367 : vector<8x32xf32>
        %369 = vector.extract_strided_slice %352 {offsets = [0, 0], sizes = [8, 96], strides = [1, 1]} : vector<8x128xf32> to vector<8x96xf32>
        %370 = arith.negf %369 : vector<8x96xf32>
        %371 = math.exp %370 : vector<8x96xf32>
        %cst_100 = arith.constant 1.000000e+00 : f32
        %372 = vector.broadcast %cst_100 : f32 to vector<8x96xf32>
        %373 = arith.addf %372, %371 : vector<8x96xf32>
        %374 = arith.divf %372, %373 : vector<8x96xf32>
        %375 = vector.extract_strided_slice %374 {offsets = [0, 0], sizes = [8, 32], strides = [1, 1]} : vector<8x96xf32> to vector<8x32xf32>
        %376 = vector.extract_strided_slice %374 {offsets = [0, 32], sizes = [8, 32], strides = [1, 1]} : vector<8x96xf32> to vector<8x32xf32>
        %377 = vector.extract_strided_slice %374 {offsets = [0, 64], sizes = [8, 32], strides = [1, 1]} : vector<8x96xf32> to vector<8x32xf32>
        %378 = vector.extract_strided_slice %352 {offsets = [0, 96], sizes = [8, 32], strides = [1, 1]} : vector<8x128xf32> to vector<8x32xf32>
        %379 = math.tanh %378 : vector<8x32xf32>
        %380 = arith.mulf %376, %340 : vector<8x32xf32>
        %381 = arith.mulf %375, %379 : vector<8x32xf32>
        %382 = arith.addf %380, %381 : vector<8x32xf32>
        %383 = math.tanh %382 : vector<8x32xf32>
        %384 = arith.mulf %377, %383 : vector<8x32xf32>
        %385 = vector.broadcast %341 : i32 to vector<8x1xi32>
        %386 = arith.cmpi slt, %385, %20 : vector<8x1xi32>
        %387 = vector.broadcast %342 : i32 to vector<8x1xi32>
        %388 = arith.cmpi slt, %387, %22 : vector<8x1xi32>
        %cst_101 = arith.constant 0.000000e+00 : f32
        %389 = vector.shape_cast %386 : vector<8x1xi1> to vector<8x1xi1>
        %390 = vector.broadcast %389 : vector<8x1xi1> to vector<8x32xi1>
        %391 = vector.broadcast %cst_101 : f32 to vector<8x32xf32>
        %392 = arith.select %390, %368, %391 : vector<8x32xi1>, vector<8x32xf32>
        %393 = arith.index_cast %341 : i32 to index
        %c0_102 = arith.constant 0 : index
        %c0_103 = arith.constant 0 : index
        %394 = vector.load %arg7[%393, %c0_102, %c0_103] : memref<16x8x32xf32, #tpu.memory_space<vmem>>, vector<1x8x32xf32>
        %395 = vector.shape_cast %394 : vector<1x8x32xf32> to vector<8x32xf32>
        %396 = vector.shape_cast %392 : vector<8x32xf32> to vector<1x8x32xf32>
        tpu.vector_store %arg7[%393, %c0_102, %c0_103], %396 {strides = array<i32>} : memref<16x8x32xf32, #tpu.memory_space<vmem>>, vector<1x8x32xf32>,
        %cst_104 = arith.constant 0.000000e+00 : f32
        %397 = vector.shape_cast %388 : vector<8x1xi1> to vector<8x1xi1>
        %398 = vector.broadcast %397 : vector<8x1xi1> to vector<8x32xi1>
        %399 = vector.broadcast %cst_104 : f32 to vector<8x32xf32>
        %400 = arith.select %398, %384, %399 : vector<8x32xi1>, vector<8x32xf32>
        %401 = arith.index_cast %342 : i32 to index
        %c0_105 = arith.constant 0 : index
        %c0_106 = arith.constant 0 : index
        %402 = vector.load %arg8[%401, %c0_105, %c0_106] : memref<16x8x32xf32, #tpu.memory_space<vmem>>, vector<1x8x32xf32>
        %403 = vector.shape_cast %402 : vector<1x8x32xf32> to vector<8x32xf32>
        %404 = vector.shape_cast %400 : vector<8x32xf32> to vector<1x8x32xf32>
        tpu.vector_store %arg8[%401, %c0_105, %c0_106], %404 {strides = array<i32>} : memref<16x8x32xf32, #tpu.memory_space<vmem>>, vector<1x8x32xf32>,
        %405 = vector.shape_cast %386 : vector<8x1xi1> to vector<8x1xi1>
        %406 = vector.broadcast %405 : vector<8x1xi1> to vector<8x32xi1>
        %407 = arith.select %406, %368, %331 : vector<8x32xi1>, vector<8x32xf32>
        %408 = vector.shape_cast %386 : vector<8x1xi1> to vector<8x1xi1>
        %409 = vector.broadcast %408 : vector<8x1xi1> to vector<8x32xi1>
        %410 = arith.select %409, %366, %334 : vector<8x32xi1>, vector<8x32xf32>
        %411 = vector.shape_cast %388 : vector<8x1xi1> to vector<8x1xi1>
        %412 = vector.broadcast %411 : vector<8x1xi1> to vector<8x32xi1>
        %413 = arith.select %412, %384, %337 : vector<8x32xi1>, vector<8x32xf32>
        %414 = vector.shape_cast %388 : vector<8x1xi1> to vector<8x1xi1>
        %415 = vector.broadcast %414 : vector<8x1xi1> to vector<8x32xi1>
        %416 = arith.select %415, %382, %340 : vector<8x32xi1>, vector<8x32xf32>
        %c5_i32 = arith.constant 5 : i32
        %417 = arith.addi %36, %c5_i32 : i32
        %c15_i32_107 = arith.constant 15 : i32
        %418 = arith.subi %c15_i32_107, %417 : i32
        %cst_108 = arith.constant dense<0.000000e+00> : vector<8x128xf32>
        %419 = tpu.matmul %407, %23, %cst_108 {dimension_numbers = #tpu.dot_dimension_numbers<[1], [0], [0], [1], [0, 0, 1, 1], [], []>} : vector<8x32xf32>, vector<32x128xf32>, vector<8x128xf32> -> vector<8x128xf32>
        %cst_109 = arith.constant dense<0.000000e+00> : vector<8x128xf32>
        %420 = tpu.matmul %413, %24, %cst_109 {dimension_numbers = #tpu.dot_dimension_numbers<[1], [0], [0], [1], [0, 0, 1, 1], [], []>} : vector<8x32xf32>, vector<32x128xf32>, vector<8x128xf32> -> vector<8x128xf32>
        %421 = arith.index_cast %417 : i32 to index
        %c0_110 = arith.constant 0 : index
        %c0_111 = arith.constant 0 : index
        %422 = vector.load %arg2[%421, %c0_110, %c0_111] : memref<16x8x128xf32, #tpu.memory_space<vmem>>, vector<1x8x128xf32>
        %423 = vector.shape_cast %422 : vector<1x8x128xf32> to vector<8x128xf32>
        %424 = arith.addf %423, %419 : vector<8x128xf32>
        %425 = arith.index_cast %418 : i32 to index
        %c0_112 = arith.constant 0 : index
        %c0_113 = arith.constant 0 : index
        %426 = vector.load %arg3[%425, %c0_112, %c0_113] : memref<16x8x128xf32, #tpu.memory_space<vmem>>, vector<1x8x128xf32>
        %427 = vector.shape_cast %426 : vector<1x8x128xf32> to vector<8x128xf32>
        %428 = arith.addf %427, %420 : vector<8x128xf32>
        %429 = vector.extract_strided_slice %424 {offsets = [0, 0], sizes = [8, 96], strides = [1, 1]} : vector<8x128xf32> to vector<8x96xf32>
        %430 = arith.negf %429 : vector<8x96xf32>
        %431 = math.exp %430 : vector<8x96xf32>
        %cst_114 = arith.constant 1.000000e+00 : f32
        %432 = vector.broadcast %cst_114 : f32 to vector<8x96xf32>
        %433 = arith.addf %432, %431 : vector<8x96xf32>
        %434 = arith.divf %432, %433 : vector<8x96xf32>
        %435 = vector.extract_strided_slice %434 {offsets = [0, 0], sizes = [8, 32], strides = [1, 1]} : vector<8x96xf32> to vector<8x32xf32>
        %436 = vector.extract_strided_slice %434 {offsets = [0, 32], sizes = [8, 32], strides = [1, 1]} : vector<8x96xf32> to vector<8x32xf32>
        %437 = vector.extract_strided_slice %434 {offsets = [0, 64], sizes = [8, 32], strides = [1, 1]} : vector<8x96xf32> to vector<8x32xf32>
        %438 = vector.extract_strided_slice %424 {offsets = [0, 96], sizes = [8, 32], strides = [1, 1]} : vector<8x128xf32> to vector<8x32xf32>
        %439 = math.tanh %438 : vector<8x32xf32>
        %440 = arith.mulf %436, %410 : vector<8x32xf32>
        %441 = arith.mulf %435, %439 : vector<8x32xf32>
        %442 = arith.addf %440, %441 : vector<8x32xf32>
        %443 = math.tanh %442 : vector<8x32xf32>
        %444 = arith.mulf %437, %443 : vector<8x32xf32>
        %445 = vector.extract_strided_slice %428 {offsets = [0, 0], sizes = [8, 96], strides = [1, 1]} : vector<8x128xf32> to vector<8x96xf32>
        %446 = arith.negf %445 : vector<8x96xf32>
        %447 = math.exp %446 : vector<8x96xf32>
        %cst_115 = arith.constant 1.000000e+00 : f32
        %448 = vector.broadcast %cst_115 : f32 to vector<8x96xf32>
        %449 = arith.addf %448, %447 : vector<8x96xf32>
        %450 = arith.divf %448, %449 : vector<8x96xf32>
        %451 = vector.extract_strided_slice %450 {offsets = [0, 0], sizes = [8, 32], strides = [1, 1]} : vector<8x96xf32> to vector<8x32xf32>
        %452 = vector.extract_strided_slice %450 {offsets = [0, 32], sizes = [8, 32], strides = [1, 1]} : vector<8x96xf32> to vector<8x32xf32>
        %453 = vector.extract_strided_slice %450 {offsets = [0, 64], sizes = [8, 32], strides = [1, 1]} : vector<8x96xf32> to vector<8x32xf32>
        %454 = vector.extract_strided_slice %428 {offsets = [0, 96], sizes = [8, 32], strides = [1, 1]} : vector<8x128xf32> to vector<8x32xf32>
        %455 = math.tanh %454 : vector<8x32xf32>
        %456 = arith.mulf %452, %416 : vector<8x32xf32>
        %457 = arith.mulf %451, %455 : vector<8x32xf32>
        %458 = arith.addf %456, %457 : vector<8x32xf32>
        %459 = math.tanh %458 : vector<8x32xf32>
        %460 = arith.mulf %453, %459 : vector<8x32xf32>
        %461 = vector.broadcast %417 : i32 to vector<8x1xi32>
        %462 = arith.cmpi slt, %461, %20 : vector<8x1xi32>
        %463 = vector.broadcast %418 : i32 to vector<8x1xi32>
        %464 = arith.cmpi slt, %463, %22 : vector<8x1xi32>
        %cst_116 = arith.constant 0.000000e+00 : f32
        %465 = vector.shape_cast %462 : vector<8x1xi1> to vector<8x1xi1>
        %466 = vector.broadcast %465 : vector<8x1xi1> to vector<8x32xi1>
        %467 = vector.broadcast %cst_116 : f32 to vector<8x32xf32>
        %468 = arith.select %466, %444, %467 : vector<8x32xi1>, vector<8x32xf32>
        %469 = arith.index_cast %417 : i32 to index
        %c0_117 = arith.constant 0 : index
        %c0_118 = arith.constant 0 : index
        %470 = vector.load %arg7[%469, %c0_117, %c0_118] : memref<16x8x32xf32, #tpu.memory_space<vmem>>, vector<1x8x32xf32>
        %471 = vector.shape_cast %470 : vector<1x8x32xf32> to vector<8x32xf32>
        %472 = vector.shape_cast %468 : vector<8x32xf32> to vector<1x8x32xf32>
        tpu.vector_store %arg7[%469, %c0_117, %c0_118], %472 {strides = array<i32>} : memref<16x8x32xf32, #tpu.memory_space<vmem>>, vector<1x8x32xf32>,
        %cst_119 = arith.constant 0.000000e+00 : f32
        %473 = vector.shape_cast %464 : vector<8x1xi1> to vector<8x1xi1>
        %474 = vector.broadcast %473 : vector<8x1xi1> to vector<8x32xi1>
        %475 = vector.broadcast %cst_119 : f32 to vector<8x32xf32>
        %476 = arith.select %474, %460, %475 : vector<8x32xi1>, vector<8x32xf32>
        %477 = arith.index_cast %418 : i32 to index
        %c0_120 = arith.constant 0 : index
        %c0_121 = arith.constant 0 : index
        %478 = vector.load %arg8[%477, %c0_120, %c0_121] : memref<16x8x32xf32, #tpu.memory_space<vmem>>, vector<1x8x32xf32>
        %479 = vector.shape_cast %478 : vector<1x8x32xf32> to vector<8x32xf32>
        %480 = vector.shape_cast %476 : vector<8x32xf32> to vector<1x8x32xf32>
        tpu.vector_store %arg8[%477, %c0_120, %c0_121], %480 {strides = array<i32>} : memref<16x8x32xf32, #tpu.memory_space<vmem>>, vector<1x8x32xf32>,
        %481 = vector.shape_cast %462 : vector<8x1xi1> to vector<8x1xi1>
        %482 = vector.broadcast %481 : vector<8x1xi1> to vector<8x32xi1>
        %483 = arith.select %482, %444, %407 : vector<8x32xi1>, vector<8x32xf32>
        %484 = vector.shape_cast %462 : vector<8x1xi1> to vector<8x1xi1>
        %485 = vector.broadcast %484 : vector<8x1xi1> to vector<8x32xi1>
        %486 = arith.select %485, %442, %410 : vector<8x32xi1>, vector<8x32xf32>
        %487 = vector.shape_cast %464 : vector<8x1xi1> to vector<8x1xi1>
        %488 = vector.broadcast %487 : vector<8x1xi1> to vector<8x32xi1>
        %489 = arith.select %488, %460, %413 : vector<8x32xi1>, vector<8x32xf32>
        %490 = vector.shape_cast %464 : vector<8x1xi1> to vector<8x1xi1>
        %491 = vector.broadcast %490 : vector<8x1xi1> to vector<8x32xi1>
        %492 = arith.select %491, %458, %416 : vector<8x32xi1>, vector<8x32xf32>
        %c6_i32 = arith.constant 6 : i32
        %493 = arith.addi %36, %c6_i32 : i32
        %c15_i32_122 = arith.constant 15 : i32
        %494 = arith.subi %c15_i32_122, %493 : i32
        %cst_123 = arith.constant dense<0.000000e+00> : vector<8x128xf32>
        %495 = tpu.matmul %483, %23, %cst_123 {dimension_numbers = #tpu.dot_dimension_numbers<[1], [0], [0], [1], [0, 0, 1, 1], [], []>} : vector<8x32xf32>, vector<32x128xf32>, vector<8x128xf32> -> vector<8x128xf32>
        %cst_124 = arith.constant dense<0.000000e+00> : vector<8x128xf32>
        %496 = tpu.matmul %489, %24, %cst_124 {dimension_numbers = #tpu.dot_dimension_numbers<[1], [0], [0], [1], [0, 0, 1, 1], [], []>} : vector<8x32xf32>, vector<32x128xf32>, vector<8x128xf32> -> vector<8x128xf32>
        %497 = arith.index_cast %493 : i32 to index
        %c0_125 = arith.constant 0 : index
        %c0_126 = arith.constant 0 : index
        %498 = vector.load %arg2[%497, %c0_125, %c0_126] : memref<16x8x128xf32, #tpu.memory_space<vmem>>, vector<1x8x128xf32>
        %499 = vector.shape_cast %498 : vector<1x8x128xf32> to vector<8x128xf32>
        %500 = arith.addf %499, %495 : vector<8x128xf32>
        %501 = arith.index_cast %494 : i32 to index
        %c0_127 = arith.constant 0 : index
        %c0_128 = arith.constant 0 : index
        %502 = vector.load %arg3[%501, %c0_127, %c0_128] : memref<16x8x128xf32, #tpu.memory_space<vmem>>, vector<1x8x128xf32>
        %503 = vector.shape_cast %502 : vector<1x8x128xf32> to vector<8x128xf32>
        %504 = arith.addf %503, %496 : vector<8x128xf32>
        %505 = vector.extract_strided_slice %500 {offsets = [0, 0], sizes = [8, 96], strides = [1, 1]} : vector<8x128xf32> to vector<8x96xf32>
        %506 = arith.negf %505 : vector<8x96xf32>
        %507 = math.exp %506 : vector<8x96xf32>
        %cst_129 = arith.constant 1.000000e+00 : f32
        %508 = vector.broadcast %cst_129 : f32 to vector<8x96xf32>
        %509 = arith.addf %508, %507 : vector<8x96xf32>
        %510 = arith.divf %508, %509 : vector<8x96xf32>
        %511 = vector.extract_strided_slice %510 {offsets = [0, 0], sizes = [8, 32], strides = [1, 1]} : vector<8x96xf32> to vector<8x32xf32>
        %512 = vector.extract_strided_slice %510 {offsets = [0, 32], sizes = [8, 32], strides = [1, 1]} : vector<8x96xf32> to vector<8x32xf32>
        %513 = vector.extract_strided_slice %510 {offsets = [0, 64], sizes = [8, 32], strides = [1, 1]} : vector<8x96xf32> to vector<8x32xf32>
        %514 = vector.extract_strided_slice %500 {offsets = [0, 96], sizes = [8, 32], strides = [1, 1]} : vector<8x128xf32> to vector<8x32xf32>
        %515 = math.tanh %514 : vector<8x32xf32>
        %516 = arith.mulf %512, %486 : vector<8x32xf32>
        %517 = arith.mulf %511, %515 : vector<8x32xf32>
        %518 = arith.addf %516, %517 : vector<8x32xf32>
        %519 = math.tanh %518 : vector<8x32xf32>
        %520 = arith.mulf %513, %519 : vector<8x32xf32>
        %521 = vector.extract_strided_slice %504 {offsets = [0, 0], sizes = [8, 96], strides = [1, 1]} : vector<8x128xf32> to vector<8x96xf32>
        %522 = arith.negf %521 : vector<8x96xf32>
        %523 = math.exp %522 : vector<8x96xf32>
        %cst_130 = arith.constant 1.000000e+00 : f32
        %524 = vector.broadcast %cst_130 : f32 to vector<8x96xf32>
        %525 = arith.addf %524, %523 : vector<8x96xf32>
        %526 = arith.divf %524, %525 : vector<8x96xf32>
        %527 = vector.extract_strided_slice %526 {offsets = [0, 0], sizes = [8, 32], strides = [1, 1]} : vector<8x96xf32> to vector<8x32xf32>
        %528 = vector.extract_strided_slice %526 {offsets = [0, 32], sizes = [8, 32], strides = [1, 1]} : vector<8x96xf32> to vector<8x32xf32>
        %529 = vector.extract_strided_slice %526 {offsets = [0, 64], sizes = [8, 32], strides = [1, 1]} : vector<8x96xf32> to vector<8x32xf32>
        %530 = vector.extract_strided_slice %504 {offsets = [0, 96], sizes = [8, 32], strides = [1, 1]} : vector<8x128xf32> to vector<8x32xf32>
        %531 = math.tanh %530 : vector<8x32xf32>
        %532 = arith.mulf %528, %492 : vector<8x32xf32>
        %533 = arith.mulf %527, %531 : vector<8x32xf32>
        %534 = arith.addf %532, %533 : vector<8x32xf32>
        %535 = math.tanh %534 : vector<8x32xf32>
        %536 = arith.mulf %529, %535 : vector<8x32xf32>
        %537 = vector.broadcast %493 : i32 to vector<8x1xi32>
        %538 = arith.cmpi slt, %537, %20 : vector<8x1xi32>
        %539 = vector.broadcast %494 : i32 to vector<8x1xi32>
        %540 = arith.cmpi slt, %539, %22 : vector<8x1xi32>
        %cst_131 = arith.constant 0.000000e+00 : f32
        %541 = vector.shape_cast %538 : vector<8x1xi1> to vector<8x1xi1>
        %542 = vector.broadcast %541 : vector<8x1xi1> to vector<8x32xi1>
        %543 = vector.broadcast %cst_131 : f32 to vector<8x32xf32>
        %544 = arith.select %542, %520, %543 : vector<8x32xi1>, vector<8x32xf32>
        %545 = arith.index_cast %493 : i32 to index
        %c0_132 = arith.constant 0 : index
        %c0_133 = arith.constant 0 : index
        %546 = vector.load %arg7[%545, %c0_132, %c0_133] : memref<16x8x32xf32, #tpu.memory_space<vmem>>, vector<1x8x32xf32>
        %547 = vector.shape_cast %546 : vector<1x8x32xf32> to vector<8x32xf32>
        %548 = vector.shape_cast %544 : vector<8x32xf32> to vector<1x8x32xf32>
        tpu.vector_store %arg7[%545, %c0_132, %c0_133], %548 {strides = array<i32>} : memref<16x8x32xf32, #tpu.memory_space<vmem>>, vector<1x8x32xf32>,
        %cst_134 = arith.constant 0.000000e+00 : f32
        %549 = vector.shape_cast %540 : vector<8x1xi1> to vector<8x1xi1>
        %550 = vector.broadcast %549 : vector<8x1xi1> to vector<8x32xi1>
        %551 = vector.broadcast %cst_134 : f32 to vector<8x32xf32>
        %552 = arith.select %550, %536, %551 : vector<8x32xi1>, vector<8x32xf32>
        %553 = arith.index_cast %494 : i32 to index
        %c0_135 = arith.constant 0 : index
        %c0_136 = arith.constant 0 : index
        %554 = vector.load %arg8[%553, %c0_135, %c0_136] : memref<16x8x32xf32, #tpu.memory_space<vmem>>, vector<1x8x32xf32>
        %555 = vector.shape_cast %554 : vector<1x8x32xf32> to vector<8x32xf32>
        %556 = vector.shape_cast %552 : vector<8x32xf32> to vector<1x8x32xf32>
        tpu.vector_store %arg8[%553, %c0_135, %c0_136], %556 {strides = array<i32>} : memref<16x8x32xf32, #tpu.memory_space<vmem>>, vector<1x8x32xf32>,
        %557 = vector.shape_cast %538 : vector<8x1xi1> to vector<8x1xi1>
        %558 = vector.broadcast %557 : vector<8x1xi1> to vector<8x32xi1>
        %559 = arith.select %558, %520, %483 : vector<8x32xi1>, vector<8x32xf32>
        %560 = vector.shape_cast %538 : vector<8x1xi1> to vector<8x1xi1>
        %561 = vector.broadcast %560 : vector<8x1xi1> to vector<8x32xi1>
        %562 = arith.select %561, %518, %486 : vector<8x32xi1>, vector<8x32xf32>
        %563 = vector.shape_cast %540 : vector<8x1xi1> to vector<8x1xi1>
        %564 = vector.broadcast %563 : vector<8x1xi1> to vector<8x32xi1>
        %565 = arith.select %564, %536, %489 : vector<8x32xi1>, vector<8x32xf32>
        %566 = vector.shape_cast %540 : vector<8x1xi1> to vector<8x1xi1>
        %567 = vector.broadcast %566 : vector<8x1xi1> to vector<8x32xi1>
        %568 = arith.select %567, %534, %492 : vector<8x32xi1>, vector<8x32xf32>
        %c7_i32 = arith.constant 7 : i32
        %569 = arith.addi %36, %c7_i32 : i32
        %c15_i32_137 = arith.constant 15 : i32
        %570 = arith.subi %c15_i32_137, %569 : i32
        %cst_138 = arith.constant dense<0.000000e+00> : vector<8x128xf32>
        %571 = tpu.matmul %559, %23, %cst_138 {dimension_numbers = #tpu.dot_dimension_numbers<[1], [0], [0], [1], [0, 0, 1, 1], [], []>} : vector<8x32xf32>, vector<32x128xf32>, vector<8x128xf32> -> vector<8x128xf32>
        %cst_139 = arith.constant dense<0.000000e+00> : vector<8x128xf32>
        %572 = tpu.matmul %565, %24, %cst_139 {dimension_numbers = #tpu.dot_dimension_numbers<[1], [0], [0], [1], [0, 0, 1, 1], [], []>} : vector<8x32xf32>, vector<32x128xf32>, vector<8x128xf32> -> vector<8x128xf32>
        %573 = arith.index_cast %569 : i32 to index
        %c0_140 = arith.constant 0 : index
        %c0_141 = arith.constant 0 : index
        %574 = vector.load %arg2[%573, %c0_140, %c0_141] : memref<16x8x128xf32, #tpu.memory_space<vmem>>, vector<1x8x128xf32>
        %575 = vector.shape_cast %574 : vector<1x8x128xf32> to vector<8x128xf32>
        %576 = arith.addf %575, %571 : vector<8x128xf32>
        %577 = arith.index_cast %570 : i32 to index
        %c0_142 = arith.constant 0 : index
        %c0_143 = arith.constant 0 : index
        %578 = vector.load %arg3[%577, %c0_142, %c0_143] : memref<16x8x128xf32, #tpu.memory_space<vmem>>, vector<1x8x128xf32>
        %579 = vector.shape_cast %578 : vector<1x8x128xf32> to vector<8x128xf32>
        %580 = arith.addf %579, %572 : vector<8x128xf32>
        %581 = vector.extract_strided_slice %576 {offsets = [0, 0], sizes = [8, 96], strides = [1, 1]} : vector<8x128xf32> to vector<8x96xf32>
        %582 = arith.negf %581 : vector<8x96xf32>
        %583 = math.exp %582 : vector<8x96xf32>
        %cst_144 = arith.constant 1.000000e+00 : f32
        %584 = vector.broadcast %cst_144 : f32 to vector<8x96xf32>
        %585 = arith.addf %584, %583 : vector<8x96xf32>
        %586 = arith.divf %584, %585 : vector<8x96xf32>
        %587 = vector.extract_strided_slice %586 {offsets = [0, 0], sizes = [8, 32], strides = [1, 1]} : vector<8x96xf32> to vector<8x32xf32>
        %588 = vector.extract_strided_slice %586 {offsets = [0, 32], sizes = [8, 32], strides = [1, 1]} : vector<8x96xf32> to vector<8x32xf32>
        %589 = vector.extract_strided_slice %586 {offsets = [0, 64], sizes = [8, 32], strides = [1, 1]} : vector<8x96xf32> to vector<8x32xf32>
        %590 = vector.extract_strided_slice %576 {offsets = [0, 96], sizes = [8, 32], strides = [1, 1]} : vector<8x128xf32> to vector<8x32xf32>
        %591 = math.tanh %590 : vector<8x32xf32>
        %592 = arith.mulf %588, %562 : vector<8x32xf32>
        %593 = arith.mulf %587, %591 : vector<8x32xf32>
        %594 = arith.addf %592, %593 : vector<8x32xf32>
        %595 = math.tanh %594 : vector<8x32xf32>
        %596 = arith.mulf %589, %595 : vector<8x32xf32>
        %597 = vector.extract_strided_slice %580 {offsets = [0, 0], sizes = [8, 96], strides = [1, 1]} : vector<8x128xf32> to vector<8x96xf32>
        %598 = arith.negf %597 : vector<8x96xf32>
        %599 = math.exp %598 : vector<8x96xf32>
        %cst_145 = arith.constant 1.000000e+00 : f32
        %600 = vector.broadcast %cst_145 : f32 to vector<8x96xf32>
        %601 = arith.addf %600, %599 : vector<8x96xf32>
        %602 = arith.divf %600, %601 : vector<8x96xf32>
        %603 = vector.extract_strided_slice %602 {offsets = [0, 0], sizes = [8, 32], strides = [1, 1]} : vector<8x96xf32> to vector<8x32xf32>
        %604 = vector.extract_strided_slice %602 {offsets = [0, 32], sizes = [8, 32], strides = [1, 1]} : vector<8x96xf32> to vector<8x32xf32>
        %605 = vector.extract_strided_slice %602 {offsets = [0, 64], sizes = [8, 32], strides = [1, 1]} : vector<8x96xf32> to vector<8x32xf32>
        %606 = vector.extract_strided_slice %580 {offsets = [0, 96], sizes = [8, 32], strides = [1, 1]} : vector<8x128xf32> to vector<8x32xf32>
        %607 = math.tanh %606 : vector<8x32xf32>
        %608 = arith.mulf %604, %568 : vector<8x32xf32>
        %609 = arith.mulf %603, %607 : vector<8x32xf32>
        %610 = arith.addf %608, %609 : vector<8x32xf32>
        %611 = math.tanh %610 : vector<8x32xf32>
        %612 = arith.mulf %605, %611 : vector<8x32xf32>
        %613 = vector.broadcast %569 : i32 to vector<8x1xi32>
        %614 = arith.cmpi slt, %613, %20 : vector<8x1xi32>
        %615 = vector.broadcast %570 : i32 to vector<8x1xi32>
        %616 = arith.cmpi slt, %615, %22 : vector<8x1xi32>
        %cst_146 = arith.constant 0.000000e+00 : f32
        %617 = vector.shape_cast %614 : vector<8x1xi1> to vector<8x1xi1>
        %618 = vector.broadcast %617 : vector<8x1xi1> to vector<8x32xi1>
        %619 = vector.broadcast %cst_146 : f32 to vector<8x32xf32>
        %620 = arith.select %618, %596, %619 : vector<8x32xi1>, vector<8x32xf32>
        %621 = arith.index_cast %569 : i32 to index
        %c0_147 = arith.constant 0 : index
        %c0_148 = arith.constant 0 : index
        %622 = vector.load %arg7[%621, %c0_147, %c0_148] : memref<16x8x32xf32, #tpu.memory_space<vmem>>, vector<1x8x32xf32>
        %623 = vector.shape_cast %622 : vector<1x8x32xf32> to vector<8x32xf32>
        %624 = vector.shape_cast %620 : vector<8x32xf32> to vector<1x8x32xf32>
        tpu.vector_store %arg7[%621, %c0_147, %c0_148], %624 {strides = array<i32>} : memref<16x8x32xf32, #tpu.memory_space<vmem>>, vector<1x8x32xf32>,
        %cst_149 = arith.constant 0.000000e+00 : f32
        %625 = vector.shape_cast %616 : vector<8x1xi1> to vector<8x1xi1>
        %626 = vector.broadcast %625 : vector<8x1xi1> to vector<8x32xi1>
        %627 = vector.broadcast %cst_149 : f32 to vector<8x32xf32>
        %628 = arith.select %626, %612, %627 : vector<8x32xi1>, vector<8x32xf32>
        %629 = arith.index_cast %570 : i32 to index
        %c0_150 = arith.constant 0 : index
        %c0_151 = arith.constant 0 : index
        %630 = vector.load %arg8[%629, %c0_150, %c0_151] : memref<16x8x32xf32, #tpu.memory_space<vmem>>, vector<1x8x32xf32>
        %631 = vector.shape_cast %630 : vector<1x8x32xf32> to vector<8x32xf32>
        %632 = vector.shape_cast %628 : vector<8x32xf32> to vector<1x8x32xf32>
        tpu.vector_store %arg8[%629, %c0_150, %c0_151], %632 {strides = array<i32>} : memref<16x8x32xf32, #tpu.memory_space<vmem>>, vector<1x8x32xf32>,
        %633 = vector.shape_cast %614 : vector<8x1xi1> to vector<8x1xi1>
        %634 = vector.broadcast %633 : vector<8x1xi1> to vector<8x32xi1>
        %635 = arith.select %634, %596, %559 : vector<8x32xi1>, vector<8x32xf32>
        %636 = vector.shape_cast %614 : vector<8x1xi1> to vector<8x1xi1>
        %637 = vector.broadcast %636 : vector<8x1xi1> to vector<8x32xi1>
        %638 = arith.select %637, %594, %562 : vector<8x32xi1>, vector<8x32xf32>
        %639 = vector.shape_cast %616 : vector<8x1xi1> to vector<8x1xi1>
        %640 = vector.broadcast %639 : vector<8x1xi1> to vector<8x32xi1>
        %641 = arith.select %640, %612, %565 : vector<8x32xi1>, vector<8x32xf32>
        %642 = vector.shape_cast %616 : vector<8x1xi1> to vector<8x1xi1>
        %643 = vector.broadcast %642 : vector<8x1xi1> to vector<8x32xi1>
        %644 = arith.select %643, %610, %568 : vector<8x32xi1>, vector<8x32xf32>
        scf.yield %635, %638, %641, %644 : vector<8x32xf32>, vector<8x32xf32>, vector<8x32xf32>, vector<8x32xf32>
      }
      %c2_i32_22 = arith.constant 2 : i32
      %c0_23 = arith.constant 0 : index
      %c0_24 = arith.constant 0 : index
      %31 = vector.load %arg13[%c0_23, %c0_24] : memref<8x32xf32, #tpu.memory_space<vmem>>, vector<8x32xf32>
      tpu.vector_store %arg13[%c0_23, %c0_24], %30#0 {strides = array<i32>} : memref<8x32xf32, #tpu.memory_space<vmem>>, vector<8x32xf32>,
      %c0_25 = arith.constant 0 : index
      %c0_26 = arith.constant 0 : index
      %32 = vector.load %arg14[%c0_25, %c0_26] : memref<8x32xf32, #tpu.memory_space<vmem>>, vector<8x32xf32>
      tpu.vector_store %arg14[%c0_25, %c0_26], %30#1 {strides = array<i32>} : memref<8x32xf32, #tpu.memory_space<vmem>>, vector<8x32xf32>,
      %c0_27 = arith.constant 0 : index
      %c0_28 = arith.constant 0 : index
      %33 = vector.load %arg15[%c0_27, %c0_28] : memref<8x32xf32, #tpu.memory_space<vmem>>, vector<8x32xf32>
      tpu.vector_store %arg15[%c0_27, %c0_28], %30#2 {strides = array<i32>} : memref<8x32xf32, #tpu.memory_space<vmem>>, vector<8x32xf32>,
      %c0_29 = arith.constant 0 : index
      %c0_30 = arith.constant 0 : index
      %34 = vector.load %arg16[%c0_29, %c0_30] : memref<8x32xf32, #tpu.memory_space<vmem>>, vector<8x32xf32>
      tpu.vector_store %arg16[%c0_29, %c0_30], %30#3 {strides = array<i32>} : memref<8x32xf32, #tpu.memory_space<vmem>>, vector<8x32xf32>,
    } else {
    }
    %true = arith.constant true
    %12 = arith.xori %9, %true : i1
    %13 = arith.extui %12 : i1 to i32
    %c0_i32_4 = arith.constant 0 : i32
    %14 = arith.cmpi ne, %13, %c0_i32_4 : i32
    scf.if %14 {
      %cst = arith.constant 0.000000e+00 : f32
      %18 = vector.broadcast %cst : f32 to vector<16x8x32xf32>
      %c0_7 = arith.constant 0 : index
      %c0_8 = arith.constant 0 : index
      %c0_9 = arith.constant 0 : index
      %19 = vector.load %arg7[%c0_7, %c0_8, %c0_9] : memref<16x8x32xf32, #tpu.memory_space<vmem>>, vector<16x8x32xf32>
      tpu.vector_store %arg7[%c0_7, %c0_8, %c0_9], %18 {strides = array<i32>} : memref<16x8x32xf32, #tpu.memory_space<vmem>>, vector<16x8x32xf32>,
      %cst_10 = arith.constant 0.000000e+00 : f32
      %20 = vector.broadcast %cst_10 : f32 to vector<16x8x32xf32>
      %c0_11 = arith.constant 0 : index
      %c0_12 = arith.constant 0 : index
      %c0_13 = arith.constant 0 : index
      %21 = vector.load %arg8[%c0_11, %c0_12, %c0_13] : memref<16x8x32xf32, #tpu.memory_space<vmem>>, vector<16x8x32xf32>
      tpu.vector_store %arg8[%c0_11, %c0_12, %c0_13], %20 {strides = array<i32>} : memref<16x8x32xf32, #tpu.memory_space<vmem>>, vector<16x8x32xf32>,
    } else {
    }
    %c0_i32_5 = arith.constant 0 : i32
    %15 = arith.cmpi eq, %arg0, %c0_i32_5 : i32
    %16 = arith.extui %15 : i1 to i32
    %c0_i32_6 = arith.constant 0 : i32
    %17 = arith.cmpi ne, %16, %c0_i32_6 : i32
    scf.if %17 {
      %c0_7 = arith.constant 0 : index
      %c0_8 = arith.constant 0 : index
      %18 = vector.load %arg13[%c0_7, %c0_8] : memref<8x32xf32, #tpu.memory_space<vmem>>, vector<8x32xf32>
      %c0_9 = arith.constant 0 : index
      %c0_10 = arith.constant 0 : index
      %19 = vector.load %arg9[%c0_9, %c0_10] : memref<8x32xf32, #tpu.memory_space<vmem>>, vector<8x32xf32>
      tpu.vector_store %arg9[%c0_9, %c0_10], %18 {strides = array<i32>} : memref<8x32xf32, #tpu.memory_space<vmem>>, vector<8x32xf32>,
      %c0_11 = arith.constant 0 : index
      %c0_12 = arith.constant 0 : index
      %20 = vector.load %arg14[%c0_11, %c0_12] : memref<8x32xf32, #tpu.memory_space<vmem>>, vector<8x32xf32>
      %c0_13 = arith.constant 0 : index
      %c0_14 = arith.constant 0 : index
      %21 = vector.load %arg10[%c0_13, %c0_14] : memref<8x32xf32, #tpu.memory_space<vmem>>, vector<8x32xf32>
      tpu.vector_store %arg10[%c0_13, %c0_14], %20 {strides = array<i32>} : memref<8x32xf32, #tpu.memory_space<vmem>>, vector<8x32xf32>,
      %c0_15 = arith.constant 0 : index
      %c0_16 = arith.constant 0 : index
      %22 = vector.load %arg15[%c0_15, %c0_16] : memref<8x32xf32, #tpu.memory_space<vmem>>, vector<8x32xf32>
      %c0_17 = arith.constant 0 : index
      %c0_18 = arith.constant 0 : index
      %23 = vector.load %arg11[%c0_17, %c0_18] : memref<8x32xf32, #tpu.memory_space<vmem>>, vector<8x32xf32>
      tpu.vector_store %arg11[%c0_17, %c0_18], %22 {strides = array<i32>} : memref<8x32xf32, #tpu.memory_space<vmem>>, vector<8x32xf32>,
      %c0_19 = arith.constant 0 : index
      %c0_20 = arith.constant 0 : index
      %24 = vector.load %arg16[%c0_19, %c0_20] : memref<8x32xf32, #tpu.memory_space<vmem>>, vector<8x32xf32>
      %c0_21 = arith.constant 0 : index
      %c0_22 = arith.constant 0 : index
      %25 = vector.load %arg12[%c0_21, %c0_22] : memref<8x32xf32, #tpu.memory_space<vmem>>, vector<8x32xf32>
      tpu.vector_store %arg12[%c0_21, %c0_22], %24 {strides = array<i32>} : memref<8x32xf32, #tpu.memory_space<vmem>>, vector<8x32xf32>,
    } else {
    }
    return
  }
  func.func @transform_0(%arg0: i32, %arg1: memref<1xi32, #tpu.memory_space<smem>>) -> (i32, i32, i32) {
    %c0_i32 = arith.constant 0 : i32
    %c0_i32_0 = arith.constant 0 : i32
    %c0_i32_1 = arith.constant 0 : i32
    return %arg0, %c0_i32, %c0_i32_0 : i32, i32, i32
  }
  func.func @transform_1(%arg0: i32, %arg1: memref<1xi32, #tpu.memory_space<smem>>) -> (i32, i32, i32) {
    %c0_i32 = arith.constant 0 : i32
    %0 = arith.subi %c0_i32, %arg0 : i32
    %c0_i32_0 = arith.constant 0 : i32
    %c1_i32 = arith.constant 1 : i32
    %c0_i32_1 = arith.constant 0 : i32
    return %0, %c0_i32_0, %c1_i32 : i32, i32, i32
  }
  func.func @transform_2(%arg0: i32, %arg1: memref<1xi32, #tpu.memory_space<smem>>) -> (i32, i32) {
    %c0_i32 = arith.constant 0 : i32
    %c0_i32_0 = arith.constant 0 : i32
    %c0_i32_1 = arith.constant 0 : i32
    return %c0_i32, %c0_i32_0 : i32, i32
  }
  func.func @transform_3(%arg0: i32, %arg1: memref<1xi32, #tpu.memory_space<smem>>) -> (i32, i32) {
    %c0_i32 = arith.constant 0 : i32
    %c0_i32_0 = arith.constant 0 : i32
    %c0_i32_1 = arith.constant 0 : i32
    return %c0_i32, %c0_i32_0 : i32, i32
  }
  func.func @transform_4(%arg0: i32, %arg1: memref<1xi32, #tpu.memory_space<smem>>) -> (i32, i32) {
    %c0_i32 = arith.constant 0 : i32
    %c0_i32_0 = arith.constant 0 : i32
    %c0_i32_1 = arith.constant 0 : i32
    return %c0_i32, %c0_i32_0 : i32, i32
  }
  func.func @transform_5(%arg0: i32, %arg1: memref<1xi32, #tpu.memory_space<smem>>) -> (i32, i32, i32) {
    %c0_i32 = arith.constant 0 : i32
    %c0_i32_0 = arith.constant 0 : i32
    %c0_i32_1 = arith.constant 0 : i32
    return %arg0, %c0_i32, %c0_i32_0 : i32, i32, i32
  }
  func.func @transform_6(%arg0: i32, %arg1: memref<1xi32, #tpu.memory_space<smem>>) -> (i32, i32, i32) {
    %c0_i32 = arith.constant 0 : i32
    %0 = arith.subi %c0_i32, %arg0 : i32
    %c0_i32_0 = arith.constant 0 : i32
    %c0_i32_1 = arith.constant 0 : i32
    %c0_i32_2 = arith.constant 0 : i32
    return %0, %c0_i32_0, %c0_i32_1 : i32, i32, i32
  }
  func.func @transform_7(%arg0: i32, %arg1: memref<1xi32, #tpu.memory_space<smem>>) -> (i32, i32) {
    %c0_i32 = arith.constant 0 : i32
    %c0_i32_0 = arith.constant 0 : i32
    %c0_i32_1 = arith.constant 0 : i32
    return %c0_i32, %c0_i32_0 : i32, i32
  }
  func.func @transform_8(%arg0: i32, %arg1: memref<1xi32, #tpu.memory_space<smem>>) -> (i32, i32) {
    %c0_i32 = arith.constant 0 : i32
    %c0_i32_0 = arith.constant 0 : i32
    %c0_i32_1 = arith.constant 0 : i32
    return %c0_i32, %c0_i32_0 : i32, i32
  }
  func.func @transform_9(%arg0: i32, %arg1: memref<1xi32, #tpu.memory_space<smem>>) -> (i32, i32) {
    %c0_i32 = arith.constant 0 : i32
    %c0_i32_0 = arith.constant 0 : i32
    %c0_i32_1 = arith.constant 0 : i32
    return %c0_i32, %c0_i32_0 : i32, i32
  }
  func.func @transform_10(%arg0: i32, %arg1: memref<1xi32, #tpu.memory_space<smem>>) -> (i32, i32) {
    %c0_i32 = arith.constant 0 : i32
    %c0_i32_0 = arith.constant 0 : i32
    %c0_i32_1 = arith.constant 0 : i32
    return %c0_i32, %c0_i32_0 : i32, i32
  }
}

</mosaic_0001>

<bundles_post_ra>
// kernel: rnn_encoder_forward.1
= control target key start
LH: loop header
LB: loop body
LE: loop exit
PB: predicated region body
PF: predicated region fallthrough
CT: control target
= control target key end

     0   :  { %vm4275_vm0 = vcmask 261120   ;;  %v3044_v6 = vmov 0.0   ;;  %s4263_s0 = inlined_call_operand.<no memory space> [shape: s32[1], index: 0, kind: input, shape index: {}]   ;;  %s4264_s1 = inlined_call_operand.vmem [shape: f32[16,8,256], index: 1, kind: input, shape index: {}, may-alias: {1,2}]   ;;  %s4265_s2 = inlined_call_operand.vmem [shape: f32[16,8,256], index: 2, kind: input, shape index: {}, may-alias: {1,2}]   ;;  %s4266_s3 = inlined_call_operand.vmem [shape: s32[8,1], index: 3, kind: input, shape index: {}]   ;;  %s4267_s4 = inlined_call_operand.vmem [shape: f32[32,128], index: 4, kind: input, shape index: {}]   ;;  %s4268_s5 = inlined_call_operand.vmem [shape: f32[32,128], index: 5, kind: input, shape index: {}]   ;;  %s4269_s6 = inlined_call_operand.vmem [shape: f32[16,8,32], index: 6, kind: output, shape index: {0}]   ;;  %s4270_s7 = inlined_call_operand.vmem [shape: f32[16,8,32], index: 7, kind: output, shape index: {1}]   ;;  %s4271_s8 = inlined_call_operand.vmem [shape: f32[8,32], index: 8, kind: output, shape index: {2}]   ;;  %s4272_s9 = inlined_call_operand.vmem [shape: f32[8,32], index: 9, kind: output, shape index: {3}]   ;;  %s4273_s10 = inlined_call_operand.vmem [shape: f32[8,32], index: 10, kind: output, shape index: {4}]   ;;  %s4274_s11 = inlined_call_operand.vmem [shape: f32[8,32], index: 11, kind: output, shape index: {5}]  }
   0x1   :  { %v78_v0 = vld [vmem:[%s4264_s1] sm:$0xff]  ;;  %v80_v1 = vld [vmem:[%s4264_s1 + $0x10] sm:$0xff]  ;;  %p2469_p0 = scmp.gt.s32.totalorder %s4263_s0, 0  ;;  %245 = vst.msk [vmem:[#allocation2] sm:$0xff] %vm4275_vm0, %v3044_v6  ;;  %246 = vst.msk [vmem:[#allocation3] sm:$0xff] %vm4275_vm0, %v3044_v6 }
   0x2   :  { %v82_v2 = vld [vmem:[%s4264_s1 + $0x20] sm:$0xff]  ;;  %79 = vst [vmem:[#allocation8] sm:$0xff] %v78_v0  ;;  %81 = vst [vmem:[#allocation8 + $0x8] sm:$0xff] %v80_v1  ;;  %v84_v3 = vld [vmem:[%s4264_s1 + $0x30] sm:$0xff] }
   0x3   :  { %83 = vst [vmem:[#allocation8 + $0x10] sm:$0xff] %v82_v2  ;;  %v86_v4 = vld [vmem:[%s4264_s1 + $0x40] sm:$0xff]  ;;  %v88_v5 = vld [vmem:[%s4264_s1 + $0x50] sm:$0xff]  ;;  %247 = vst.msk [vmem:[#allocation4] sm:$0xff] %vm4275_vm0, %v3044_v6  ;;  %p3151_p1 = por %p2469_p0, %p2469_p0 }
   0x4   :  { %248 = vst.msk [vmem:[#allocation5] sm:$0xff] %vm4275_vm0, %v3044_v6  ;;  %85 = vst [vmem:[#allocation8 + $0x18] sm:$0xff] %v84_v3  ;;  %v90_v7 = vld [vmem:[%s4264_s1 + $0x60] sm:$0xff]  ;;  %v92_v8 = vld [vmem:[%s4264_s1 + $0x70] sm:$0xff] }
   0x5   :  { %87 = vst [vmem:[#allocation8 + $0x20] sm:$0xff] %v86_v4  ;;  %89 = vst [vmem:[#allocation8 + $0x28] sm:$0xff] %v88_v5  ;;  %v94_v9 = vld [vmem:[%s4264_s1 + $0x80] sm:$0xff]  ;;  %v96_v10 = vld [vmem:[%s4264_s1 + $0x90] sm:$0xff] }
   0x6   :  { %91 = vst [vmem:[#allocation8 + $0x30] sm:$0xff] %v90_v7  ;;  %93 = vst [vmem:[#allocation8 + $0x38] sm:$0xff] %v92_v8  ;;  %v98_v11 = vld [vmem:[%s4264_s1 + $0xa0] sm:$0xff]  ;;  %v100_v12 = vld [vmem:[%s4264_s1 + $0xb0] sm:$0xff] }
   0x7   :  { %95 = vst [vmem:[#allocation8 + $0x40] sm:$0xff] %v94_v9  ;;  %97 = vst [vmem:[#allocation8 + $0x48] sm:$0xff] %v96_v10  ;;  %v102_v13 = vld [vmem:[%s4264_s1 + $0xc0] sm:$0xff]  ;;  %v104_v14 = vld [vmem:[%s4264_s1 + $0xd0] sm:$0xff] }
   0x8   :  { %99 = vst [vmem:[#allocation8 + $0x50] sm:$0xff] %v98_v11  ;;  %101 = vst [vmem:[#allocation8 + $0x58] sm:$0xff] %v100_v12  ;;  %v106_v15 = vld [vmem:[%s4264_s1 + $0xe0] sm:$0xff]  ;;  %v108_v16 = vld [vmem:[%s4264_s1 + $0xf0] sm:$0xff] }
   0x9   :  { %103 = vst [vmem:[#allocation8 + $0x60] sm:$0xff] %v102_v13  ;;  %105 = vst [vmem:[#allocation8 + $0x68] sm:$0xff] %v104_v14  ;;  %v2453_v17 = vld [vmem:[%s4265_s2 + $0x8] sm:$0xff]  ;;  %v2454_v18 = vld [vmem:[%s4265_s2 + $0x18] sm:$0xff] }
   0xa   :  { %107 = vst [vmem:[#allocation8 + $0x70] sm:$0xff] %v106_v15  ;;  %109 = vst [vmem:[#allocation8 + $0x78] sm:$0xff] %v108_v16  ;;  %v2455_v19 = vld [vmem:[%s4265_s2 + $0x28] sm:$0xff]  ;;  %v2456_v20 = vld [vmem:[%s4265_s2 + $0x38] sm:$0xff] }
   0xb   :  { %180 = vst [vmem:[#allocation9] sm:$0xff] %v2453_v17  ;;  %182 = vst [vmem:[#allocation9 + $0x8] sm:$0xff] %v2454_v18  ;;  %v2457_v21 = vld [vmem:[%s4265_s2 + $0x48] sm:$0xff]  ;;  %v2458_v22 = vld [vmem:[%s4265_s2 + $0x58] sm:$0xff] }
   0xc   :  { %184 = vst [vmem:[#allocation9 + $0x10] sm:$0xff] %v2455_v19  ;;  %186 = vst [vmem:[#allocation9 + $0x18] sm:$0xff] %v2456_v20  ;;  %v2459_v23 = vld [vmem:[%s4265_s2 + $0x68] sm:$0xff]  ;;  %v2460_v24 = vld [vmem:[%s4265_s2 + $0x78] sm:$0xff] }
   0xd   :  { %188 = vst [vmem:[#allocation9 + $0x20] sm:$0xff] %v2457_v21  ;;  %190 = vst [vmem:[#allocation9 + $0x28] sm:$0xff] %v2458_v22  ;;  %v2461_v25 = vld [vmem:[%s4265_s2 + $0x88] sm:$0xff]  ;;  %v2462_v26 = vld [vmem:[%s4265_s2 + $0x98] sm:$0xff] }
   0xe   :  { %192 = vst [vmem:[#allocation9 + $0x30] sm:$0xff] %v2459_v23  ;;  %194 = vst [vmem:[#allocation9 + $0x38] sm:$0xff] %v2460_v24  ;;  %v2463_v27 = vld [vmem:[%s4265_s2 + $0xa8] sm:$0xff]  ;;  %v2464_v28 = vld [vmem:[%s4265_s2 + $0xb8] sm:$0xff]  ;;  %258 = sbr.rel (!%p3151_p1) target bundleno = 5563 (0x15bb), region = 105 }
   0xf   :  { %196 = vst [vmem:[#allocation9 + $0x40] sm:$0xff] %v2461_v25  ;;  %198 = vst [vmem:[#allocation9 + $0x48] sm:$0xff] %v2462_v26  ;;  %v2465_v29 = vld [vmem:[%s4265_s2 + $0xc8] sm:$0xff]  ;;  %v2466_v30 = vld [vmem:[%s4265_s2 + $0xd8] sm:$0xff] }
  0x10   :  { %200 = vst [vmem:[#allocation9 + $0x50] sm:$0xff] %v2463_v27  ;;  %202 = vst [vmem:[#allocation9 + $0x58] sm:$0xff] %v2464_v28  ;;  %v2467_v31 = vld [vmem:[%s4265_s2 + $0xe8] sm:$0xff]  ;;  %v2468_v32 = vld [vmem:[%s4265_s2 + $0xf8] sm:$0xff] }
  0x11   :  { %204 = vst [vmem:[#allocation9 + $0x60] sm:$0xff] %v2465_v29  ;;  %206 = vst [vmem:[#allocation9 + $0x68] sm:$0xff] %v2466_v30  ;;  %v3229_v33 = vld [vmem:[%s4266_s3] sm:$0xff] (%p3151_p1)  ;;  %v3239_v35 = vld [vmem:[%s4267_s4 + $0x8] sm:$0xff] (%p3151_p1) }
  0x12   :  { %208 = vst [vmem:[#allocation9 + $0x70] sm:$0xff] %v2467_v31  ;;  %210 = vst [vmem:[#allocation9 + $0x78] sm:$0xff] %v2468_v32  ;;  %v3234_v34 = vld [vmem:[%s4267_s4] sm:$0xff] (%p3151_p1)  ;;  %v3244_v36 = vld [vmem:[%s4267_s4 + $0x10] sm:$0xff] (%p3151_p1) }
  0x13   :  { %v3249_v37 = vld [vmem:[%s4267_s4 + $0x18] sm:$0xff]  ;;  %v3254_v38 = vld [vmem:[%s4268_s5] sm:$0xff]  ;;  %v3259_v39 = vld [vmem:[%s4268_s5 + $0x8] sm:$0xff]  ;;  %s3279_s4 = smov 0  }
  0x14   :  { %v3264_v40 = vld [vmem:[%s4268_s5 + $0x10] sm:$0xff]  ;;  %v3269_v41 = vld [vmem:[%s4268_s5 + $0x18] sm:$0xff]  ;;  %v272_v42 = vld [vmem:[#allocation2] sm:$0xff]  }
  0x15   :  { %v273_v43 = vld [vmem:[#allocation3] sm:$0xff]   ;;  %v274_v44 = vld [vmem:[#allocation4] sm:$0xff]   ;;  %v275_v45 = vld [vmem:[#allocation5] sm:$0xff]  }
  0x16 LB: > { %v3045_v46 = vmov 0.0   ;;  %vm3046_vm1 = vmmov 0   ;;  %vm4277_vm0 = vcmask 261120   ;;  %s3047_s5 = smov 32   ;;  %s3341_s1 = sshll.u32 %s3042_s4, 3  ;;  %v3048_v55 = vmov 0   ;;  %s3042_s4 = sphi %s3279_s4, %s281_s4   ;;  %v3038_v42 = vphi %v272_v42, %v4297_v42   ;;  %v3034_v43 = vphi %v273_v43, %v4296_v43   ;;  %v3030_v44 = vphi %v274_v44, %v4295_v44   ;;  %v3026_v45 = vphi %v275_v45, %v4294_v45  }
  0x17   : > { %2650 = vmatprep.subr.mxu0 %v3045_v46  ;;  %2661 = vmatprep.subr.mxu1 %v3045_v46  ;;  %s287_s24 = ssub.s32 15, %s3341_s1  ;;  %s2555_s25 = sshll.u32 %s3042_s4, 6  ;;  %v499_v0 = vstv %s3341_s1 }
  0x18   : > { %2651 = vmatpush3.msra.mxu0 %v3249_v37  ;;  %2662 = vmatpush3.msra.mxu1 %v3269_v41  ;;  %s3347_s26 = sshll.u32 %s287_s24, 3  ;;  %s3351_s0 = scalar_lea.vmem [#allocation8], %s2555_s25  ;;  %vm500_vm2 = vcmp.lt.s32.totalorder %v499_v0, %v3229_v33  ;;  %v501_v4 = vstv %s287_s24 }
  0x19   : > { %2652 = vmatprep.subr.mxu0 %v3045_v46  ;;  %2663 = vmatprep.subr.mxu1 %v3045_v46  ;;  %v437_v47 = vld [vmem:[%s3351_s0] sm:$0xff]  ;;  %s440_s27 = scalar_lea.vmem [#allocation9], %s3347_s26  ;;  %v503_v7 = vsel %vm500_vm2, 1, %v3048_v55  ;;  %vm502_vm3 = vcmp.lt.s32.totalorder %v501_v4, %v3229_v33  ;;  %s3049_s28 = smov 64   ;;  %v2482_v32 = vld [vmem:[%s3351_s0 + $0x8] sm:$0xff] }
  0x1a   : > { %2653 = vmatpush3.msra.mxu0 %v3244_v36  ;;  %2664 = vmatpush3.msra.mxu1 %v3264_v40  ;;  %v441_v49 = vld [vmem:[%s440_s27] sm:$0xff]  ;;  %v515_v9 = vsel %vm502_vm3, 1, %v3048_v55  ;;  %s538_s29 = ssub.s32 14, %s3341_s1  ;;  %s537_s2 = sadd.s32 1, %s3341_s1 }
  0x1b   : > { %2654 = vmatprep.subr.mxu0 %v3045_v46  ;;  %2665 = vmatprep.subr.mxu1 %v3045_v46  ;;  %s3435_s30 = sshll.u32 %s538_s29, 3  ;;  %s778_s13 = ssub.s32 13, %s3341_s1 }
  0x1c   : > { %2655 = vmatpush3.msra.mxu0 %v3239_v35  ;;  %2658 = vmatprep.mubr.msk.f32.mxu0 %vm3046_vm1, %v3045_v46  ;;  %s694_s12 = scalar_lea.vmem [#allocation9], %s3435_s30  ;;  %s3523_s14 = sshll.u32 %s778_s13, 3 }
  0x1d   : > { %2656 = vmatprep.subr.mxu0 %v3045_v46  ;;  %2666 = vmatpush3.msra.mxu1 %v3259_v39  ;;  %s934_s15 = scalar_lea.vmem [#allocation9], %s3523_s14  ;;  %s777_s3 = sadd.s32 2, %s3341_s1 }
  0x1e   : > { %2657 = vmatpush3.msra.mxu0 %v3234_v34  ;;  %2667 = vmatprep.subr.mxu1 %v3045_v46  ;;  %s1018_s16 = ssub.s32 12, %s3341_s1  ;;  %s1017_s19 = sadd.s32 3, %s3341_s1 }
  0x1f   : > { %2659 = vmatmul.mubr.msk.f32.vlgmr.msra.gmra.mxu0 %vm4277_vm0, %v3038_v42  ;;  %2668 = vmatpush3.msra.mxu1 %v3254_v38  ;;  %s3611_s17 = sshll.u32 %s1018_s16, 3  ;;  %s1258_s21 = ssub.s32 11, %s3341_s1 }
  0x20   : > { %2669 = vmatprep.mubr.msk.f32.mxu1 %vm3046_vm1, %v3045_v46  ;;  %451 = vrot.lane.b32.xlu1 %v3034_v43, %s3047_s5  ;;  %s1174_s18 = scalar_lea.vmem [#allocation9], %s3611_s17  ;;  %s3699_s22 = sshll.u32 %s1258_s21, 3 }
  0x21   : > { %2670 = vmatmul.mubr.msk.f32.vlgmr.msra.gmra.mxu1 %vm4277_vm0, %v3030_v44  ;;  %2672 = vmatprep.subr.mxu0 %v3045_v46  ;;  %s1414_s23 = scalar_lea.vmem [#allocation9], %s3699_s22  ;;  %s1257_s24 = sadd.s32 4, %s3341_s1 }
  0x22   : > { %2673 = vmatpush3.msra.mxu0 %v3249_v37  ;;  %2683 = vmatprep.subr.mxu1 %v3045_v46  ;;  %s1498_s27 = ssub.s32 10, %s3341_s1  ;;  %s281_s4 = sadd.s32 1, %s3042_s4  }
  0x23   : > { %2674 = vmatprep.subr.mxu0 %v3045_v46  ;;  %2684 = vmatpush3.msra.mxu1 %v3269_v41  ;;  %p278_p2 = scmp.ge.s32.totalorder %s281_s4, 2  }
  0x24   : > { %479 = vrot.lane.b32.xlu1 %v3026_v45, %s3047_s5  ;;  %2675 = vmatpush3.msra.mxu0 %v3244_v36  ;;  %v695_v45 = vld [vmem:[%s694_s12] sm:$0xff] }
  0x25   : > { %2676 = vmatprep.subr.mxu0 %v3045_v46  ;;  %2685 = vmatprep.subr.mxu1 %v3045_v46 }
  0x26   : > { %2677 = vmatpush3.msra.mxu0 %v3239_v35  ;;  %2680 = vmatprep.mubr.msk.f32.mxu0 %vm3046_vm1, %v3045_v46 }
  0x27   : > { %2678 = vmatprep.subr.mxu0 %v3045_v46  ;;  %2686 = vmatpush3.msra.mxu1 %v3264_v40 }
  0x28   : > { %2679 = vmatpush3.msra.mxu0 %v3234_v34  ;;  %2687 = vmatprep.subr.mxu1 %v3045_v46 }
  0x29   : > { %2688 = vmatpush3.msra.mxu1 %v3259_v39  ;;  %2691 = vmatprep.mubr.msk.f32.mxu1 %vm3046_vm1, %v3045_v46 }
  0x2a   : > { %2689 = vmatprep.subr.mxu1 %v3045_v46  ;;  %2694 = vmatprep.subr.mxu0 %v3045_v46 }
  0x2b   : > { %2690 = vmatpush3.msra.mxu1 %v3254_v38  ;;  %2874 = vset.pattern.permute.xlu0 %v3048_v55 }
  0x2c   : > { %2705 = vmatprep.subr.mxu1 %v3045_v46  ;;  %2875 = vset.pattern.permute.xlu1 %v3048_v55 }
  0x92   : > { %v3368_v10 = vpop.permute.xlu1 %451 }
  0x96   : > { %v3371_v12 = vpop.permute.xlu1 %479 }
  0xdf   : > { %v358_v48 = vpop.f32.mrf.mxu0 }
  0xe0   : > { %v438_v50 = vadd.f32 %v437_v47, %v358_v48 }
  0xe1   : > { %v2660_v51 = vpop.f32.mrf.mxu0  ;;  %v431_v52 = vpop.f32.mrf.mxu1 }
  0xe2   : > { %2876 = vtanh.f32 %v438_v50  ;;  %v442_v53 = vadd.f32 %v441_v49, %v431_v52  ;;  %v2476_v58 = vmul.f32 -1.442695, %v438_v50 }
  0xe3   : > { %v2671_v54 = vpop.f32.mrf.mxu1 }
  0xe4   : > { %2878 = vtanh.f32 %v442_v53  ;;  %v2477_v59 = vmul.f32 -1.442695, %v442_v53 }
  0xe5   : > { %2880 = vpow2.f32 %v2476_v58 }
  0xe6   : > { %2882 = vpow2.f32 %v2477_v59  ;;  %v745_v59 = vstv %s537_s2  ;;  %s1497_s2 = sadd.s32 5, %s3341_s1 }
  0xe7   : > { %vm746_vm6 = vcmp.lt.s32.totalorder %v745_v59, %v3229_v33 }
  0xef   : > { %v2877_v56 = vpop.eup %2876 }
  0xf0   : > { %456 = vrot.lane.b32.xlu0 %v2877_v56, %s3047_s5 }
  0xf1   : > { %v2879_v57 = vpop.eup %2878 }
  0xf2   : > { %v2881_v60 = vpop.eup %2880 }
  0xf3   : > { %v446_v61 = vadd.f32 1.0, %v2881_v60  ;;  %v2883_v62 = vpop.eup %2882 }
  0xf4   : > { %484 = vrot.lane.b32.xlu0 %v2879_v57, %s3047_s5  ;;  %v474_v63 = vadd.f32 1.0, %v2883_v62 }
  0xf5   : > { %2884 = vrcp.f32 %v446_v61 }
  0xf6   : > { %2886 = vrcp.f32 %v474_v63  ;;  %v747_v63 = vstv %s538_s29  ;;  %s3787_s29 = sshll.u32 %s1498_s27, 3 }
  0xf7   : > { %vm748_vm7 = vcmp.lt.s32.totalorder %v747_v63, %v3229_v33  ;;  %s1654_s12 = scalar_lea.vmem [#allocation9], %s3787_s29 }
  0xf8   : > { %v761_v4 = vsel %vm748_vm7, 1, %v3048_v55 }
 0x102   : > { %v2885_v1 = vpop.eup %2884 }
 0x103   : > { %v2887_v5 = vpop.eup %2886  ;;  %v454_v11 = vmul.f32 %v2885_v1, %v3368_v10 }
 0x104   : > { %v482_v15 = vmul.f32 %v2887_v5, %v3371_v12 }
 0x162   : > { %v457_v2 = vpop.permute.xlu0 %456 }
 0x163   : > { %v459_v3 = vmul.f32 %v2885_v1, %v457_v2  ;;  %v749_v2 = vsel %vm746_vm6, 1, %v3048_v55 }
 0x165   : > { %461 = vrot.lane.b32.xlu0 %v459_v3, %s3047_s5 }
 0x166   : > { %v485_v6 = vpop.permute.xlu0 %484 }
 0x167   : > { %v487_v8 = vmul.f32 %v2887_v5, %v485_v6 }
 0x169   : > { %505 = vperm.xlu0 %2874, %v503_v7   ;;  %489 = vrot.lane.b32.xlu1 %v487_v8, %s3047_s5 }
 0x16d   : > { %517 = vperm.xlu1 %2875, %v515_v9  }
 0x1d7   : > { %v462_v13 = vpop.permute.xlu0 %461 }
 0x1d8   : > { %v3373_v14 = vadd.f32 %v462_v13, %v454_v11 }
 0x1da   : > { %2888 = vtanh.f32 %v3373_v14 }
 0x1db   : > { %v490_v16 = vpop.permute.xlu1 %489 }
 0x1dc   : > { %v3377_v17 = vadd.f32 %v490_v16, %v482_v15 }
 0x1de   : > { %2890 = vtanh.f32 %v3377_v17 }
 0x1e4   : > { %v3388_v21 = vpop.permute.xlu0 %505 }
 0x1e5   : > { %vm507_vm4 = vcmp.eq.s32.totalorder %v3388_v21, 1 }
 0x1e7   : > { %v2889_v18 = vpop.eup %2888 }
 0x1e8   : > { %467 = vrot.lane.b32.xlu1 %v2889_v18, %s3047_s5  ;;  %v3386_v20 = vpop.permute.xlu1 %517 }
 0x1e9   : > { %vm519_vm5 = vcmp.eq.s32.totalorder %v3386_v20, 1 }
 0x1ea   : > { %v3463_v9 = vsel %vm519_vm5, %v3377_v17, %v3371_v12 }
 0x1eb   : > { %v2891_v19 = vpop.eup %2890 }
 0x1ec   : > { %527 = vrot.lane.b32.xlu1 %v3038_v42, %s3049_s28  ;;  %495 = vrot.lane.b32.xlu0 %v2891_v19, %s3047_s5 }
 0x1f0   : > { %532 = vrot.lane.b32.xlu0 %v3030_v44, %s3049_s28 }
 0x25a   : > { %v468_v22 = vpop.permute.xlu1 %467 }
 0x25b   : > { %v3390_v23 = vmul.f32 %v2885_v1, %v468_v22 }
 0x25e   : > { %v496_v24 = vpop.permute.xlu0 %495  ;;  %v528_v25 = vpop.permute.xlu1 %527 }
 0x25f   : > { %v3396_v26 = vsel %vm507_vm4, %v3390_v23, %v528_v25  ;;  %v3400_v27 = vmul.f32 %v2887_v5, %v496_v24  ;;  %v3454_v5 = vsel %vm507_vm4, %v3373_v14, %v3368_v10 }
 0x260   : > { %540 = vrot.lane.b32.xlu1 %v3396_v26, %s3049_s28 }
 0x262   : > { %v533_v28 = vpop.permute.xlu0 %532 }
 0x263   : > { %v3406_v29 = vsel %vm519_vm5, %v3400_v27, %v533_v28 }
 0x264   : > { %615 = vrot.lane.b32.xlu0 %v3406_v29, %s3049_s28 }
 0x2d2   : > { %v541_v30 = vpop.permute.xlu1 %540 }
 0x2d3   : > { %2681 = vmatmul.mubr.msk.f32.vlgmr.msra.gmra.mxu0 %vm4277_vm0, %v541_v30 }
 0x2d4   : > { %2695 = vmatpush3.msra.mxu0 %v3249_v37  ;;  %2702 = vmatprep.mubr.msk.f32.mxu0 %vm3046_vm1, %v3045_v46 }
 0x2d5   : > { %2696 = vmatprep.subr.mxu0 %v3045_v46 }
 0x2d6   : > { %v616_v31 = vpop.permute.xlu0 %615  ;;  %2697 = vmatpush3.msra.mxu0 %v3244_v36 }
 0x2d7   : > { %2692 = vmatmul.mubr.msk.f32.vlgmr.msra.gmra.mxu1 %vm4277_vm0, %v616_v31  ;;  %2698 = vmatprep.subr.mxu0 %v3045_v46 }
 0x2d8   : > { %2699 = vmatpush3.msra.mxu0 %v3239_v35  ;;  %2706 = vmatpush3.msra.mxu1 %v3269_v41 }
 0x2d9   : > { %2700 = vmatprep.subr.mxu0 %v3045_v46  ;;  %2707 = vmatprep.subr.mxu1 %v3045_v46 }
 0x2da   : > { %2701 = vmatpush3.msra.mxu0 %v3234_v34  ;;  %2708 = vmatpush3.msra.mxu1 %v3264_v40 }
 0x2db   : > { %2709 = vmatprep.subr.mxu1 %v3045_v46  ;;  %2713 = vmatprep.mubr.msk.f32.mxu1 %vm3046_vm1, %v3045_v46 }
 0x2dc   : > { %2710 = vmatpush3.msra.mxu1 %v3259_v39  ;;  %2716 = vmatprep.subr.mxu0 %v3045_v46 }
 0x2dd   : > { %2711 = vmatprep.subr.mxu1 %v3045_v46 }
 0x2de   : > { %2712 = vmatpush3.msra.mxu1 %v3254_v38 }
 0x2df   : > { %2727 = vmatprep.subr.mxu1 %v3045_v46 }
 0x393   : > { %v610_v42 = vpop.f32.mrf.mxu0 }
 0x394   : > { %v692_v43 = vadd.f32 %v2482_v32, %v610_v42  ;;  %v935_v42 = vld [vmem:[%s934_s15] sm:$0xff] }
 0x395   : > { %v2682_v44 = vpop.f32.mrf.mxu0 }
 0x396   : > { %2892 = vtanh.f32 %v692_v43  ;;  %v2484_v52 = vmul.f32 -1.442695, %v692_v43 }
 0x397   : > { %v685_v47 = vpop.f32.mrf.mxu1 }
 0x398   : > { %v696_v48 = vadd.f32 %v695_v45, %v685_v47 }
 0x399   : > { %v2693_v49 = vpop.f32.mrf.mxu1 }
 0x39a   : > { %2894 = vtanh.f32 %v696_v48  ;;  %v2485_v53 = vmul.f32 -1.442695, %v696_v48 }
 0x39b   : > { %2896 = vpow2.f32 %v2484_v52 }
 0x39c   : > { %2898 = vpow2.f32 %v2485_v53 }
 0x3a3   : > { %v2893_v50 = vpop.eup %2892 }
 0x3a4   : > { %706 = vrot.lane.b32.xlu1 %v2893_v50, %s3047_s5 }
 0x3a7   : > { %v2895_v51 = vpop.eup %2894 }
 0x3a8   : > { %730 = vrot.lane.b32.xlu0 %v2895_v51, %s3047_s5  ;;  %v2897_v54 = vpop.eup %2896 }
 0x3a9   : > { %v700_v56 = vadd.f32 1.0, %v2897_v54  ;;  %v2899_v57 = vpop.eup %2898 }
 0x3aa   : > { %v724_v58 = vadd.f32 1.0, %v2899_v57 }
 0x3ab   : > { %2900 = vrcp.f32 %v700_v56  ;;  %v985_v56 = vstv %s777_s3 }
 0x3ac   : > { %2902 = vrcp.f32 %v724_v58  ;;  %vm986_vm10 = vcmp.lt.s32.totalorder %v985_v56, %v3229_v33 }
 0x3ad   : > { %v989_v63 = vsel %vm986_vm10, 1, %v3048_v55 }
 0x3b8   : > { %v2901_v60 = vpop.eup %2900 }
 0x3b9   : > { %v2903_v0 = vpop.eup %2902  ;;  %v704_v6 = vmul.f32 %v2901_v60, %v3454_v5 }
 0x3ba   : > { %v728_v11 = vmul.f32 %v2903_v0, %v3463_v9 }
 0x416   : > { %v707_v61 = vpop.permute.xlu1 %706 }
 0x417   : > { %v709_v62 = vmul.f32 %v2901_v60, %v707_v61 }
 0x419   : > { %711 = vrot.lane.b32.xlu1 %v709_v62, %s3047_s5 }
 0x41a   : > { %v731_v1 = vpop.permute.xlu0 %730 }
 0x41b   : > { %v733_v3 = vmul.f32 %v2903_v0, %v731_v1 }
 0x41d   : > { %735 = vrot.lane.b32.xlu0 %v733_v3, %s3047_s5  ;;  %751 = vperm.xlu1 %2875, %v749_v2  }
 0x421   : > { %763 = vperm.xlu0 %2874, %v761_v4  }
 0x48b   : > { %v712_v7 = vpop.permute.xlu1 %711 }
 0x48c   : > { %v3457_v8 = vadd.f32 %v712_v7, %v704_v6 }
 0x48e   : > { %2904 = vtanh.f32 %v3457_v8 }
 0x48f   : > { %v736_v13 = vpop.permute.xlu0 %735 }
 0x490   : > { %v3467_v15 = vadd.f32 %v736_v13, %v728_v11 }
 0x492   : > { %2906 = vtanh.f32 %v3467_v15 }
 0x498   : > { %v3472_v16 = vpop.permute.xlu1 %751 }
 0x499   : > { %vm753_vm8 = vcmp.eq.s32.totalorder %v3472_v16, 1 }
 0x49a   : > { %v3542_v2 = vsel %vm753_vm8, %v3457_v8, %v3454_v5 }
 0x49b   : > { %v2905_v10 = vpop.eup %2904 }
 0x49c   : > { %717 = vrot.lane.b32.xlu1 %v2905_v10, %s3047_s5  ;;  %v3474_v18 = vpop.permute.xlu0 %763 }
 0x49d   : > { %vm765_vm9 = vcmp.eq.s32.totalorder %v3474_v18, 1 }
 0x49e   : > { %v3551_v7 = vsel %vm765_vm9, %v3467_v15, %v3463_v9 }
 0x49f   : > { %v2907_v14 = vpop.eup %2906 }
 0x4a0   : > { %741 = vrot.lane.b32.xlu0 %v2907_v14, %s3047_s5 }
 0x50e   : > { %v718_v12 = vpop.permute.xlu1 %717 }
 0x50f   : > { %v3476_v17 = vmul.f32 %v2901_v60, %v718_v12  ;;  %v987_v60 = vstv %s778_s13  ;;  %s1738_s13 = ssub.s32 9, %s3341_s1 }
 0x510   : > { %vm988_vm11 = vcmp.lt.s32.totalorder %v987_v60, %v3229_v33  ;;  %s3873_s15 = sshll.u32 %s1738_s13, 3 }
 0x511   : > { %v3483_v19 = vsel %vm753_vm8, %v3476_v17, %v3396_v26  ;;  %v1001_v1 = vsel %vm988_vm11, 1, %v3048_v55  ;;  %s1894_s3 = scalar_lea.vmem [#allocation9], %s3873_s15 }
 0x512   : > { %v742_v22 = vpop.permute.xlu0 %741  ;;  %780 = vrot.lane.b32.xlu1 %v3483_v19, %s3049_s28 }
 0x513   : > { %v3487_v24 = vmul.f32 %v2903_v0, %v742_v22 }
 0x515   : > { %v3494_v25 = vsel %vm765_vm9, %v3487_v24, %v3406_v29  ;;  %v2493_v29 = vld [vmem:[%s3351_s0 + $0x10] sm:$0xff] }
 0x516   : > { %855 = vrot.lane.b32.xlu0 %v3494_v25, %s3049_s28 }
 0x584   : > { %v781_v28 = vpop.permute.xlu1 %780 }
 0x585   : > { %2703 = vmatmul.mubr.msk.f32.vlgmr.msra.gmra.mxu0 %vm4277_vm0, %v781_v28 }
 0x586   : > { %2717 = vmatpush3.msra.mxu0 %v3249_v37  ;;  %2724 = vmatprep.mubr.msk.f32.mxu0 %vm3046_vm1, %v3045_v46 }
 0x587   : > { %2718 = vmatprep.subr.mxu0 %v3045_v46 }
 0x588   : > { %v856_v26 = vpop.permute.xlu0 %855  ;;  %2719 = vmatpush3.msra.mxu0 %v3244_v36 }
 0x589   : > { %2714 = vmatmul.mubr.msk.f32.vlgmr.msra.gmra.mxu1 %vm4277_vm0, %v856_v26  ;;  %2720 = vmatprep.subr.mxu0 %v3045_v46 }
 0x58a   : > { %2721 = vmatpush3.msra.mxu0 %v3239_v35  ;;  %2728 = vmatpush3.msra.mxu1 %v3269_v41 }
 0x58b   : > { %2722 = vmatprep.subr.mxu0 %v3045_v46  ;;  %2729 = vmatprep.subr.mxu1 %v3045_v46 }
 0x58c   : > { %2723 = vmatpush3.msra.mxu0 %v3234_v34  ;;  %2730 = vmatpush3.msra.mxu1 %v3264_v40 }
 0x58d   : > { %2731 = vmatprep.subr.mxu1 %v3045_v46  ;;  %2735 = vmatprep.mubr.msk.f32.mxu1 %vm3046_vm1, %v3045_v46 }
 0x58e   : > { %2732 = vmatpush3.msra.mxu1 %v3259_v39  ;;  %2738 = vmatprep.subr.mxu0 %v3045_v46 }
 0x58f   : > { %2733 = vmatprep.subr.mxu1 %v3045_v46 }
 0x590   : > { %2734 = vmatpush3.msra.mxu1 %v3254_v38 }
 0x591   : > { %2749 = vmatprep.subr.mxu1 %v3045_v46 }
 0x645   : > { %v850_v30 = vpop.f32.mrf.mxu0 }
 0x646   : > { %v932_v31 = vadd.f32 %v2493_v29, %v850_v30 }
 0x647   : > { %v2704_v32 = vpop.f32.mrf.mxu0 }
 0x648   : > { %2908 = vtanh.f32 %v932_v31  ;;  %v2495_v49 = vmul.f32 -1.442695, %v932_v31 }
 0x649   : > { %v925_v43 = vpop.f32.mrf.mxu1 }
 0x64a   : > { %v936_v44 = vadd.f32 %v935_v42, %v925_v43  ;;  %v1175_v43 = vld [vmem:[%s1174_s18] sm:$0xff]  ;;  %s1978_s18 = ssub.s32 8, %s3341_s1 }
 0x64b   : > { %v2715_v45 = vpop.f32.mrf.mxu1 }
 0x64c   : > { %2910 = vtanh.f32 %v936_v44  ;;  %v2496_v50 = vmul.f32 -1.442695, %v936_v44 }
 0x64d   : > { %2912 = vpow2.f32 %v2495_v49 }
 0x64e   : > { %2914 = vpow2.f32 %v2496_v50 }
 0x655   : > { %v2909_v47 = vpop.eup %2908 }
 0x656   : > { %946 = vrot.lane.b32.xlu1 %v2909_v47, %s3047_s5 }
 0x659   : > { %v2911_v48 = vpop.eup %2910 }
 0x65a   : > { %970 = vrot.lane.b32.xlu0 %v2911_v48, %s3047_s5  ;;  %v2913_v51 = vpop.eup %2912 }
 0x65b   : > { %v940_v52 = vadd.f32 1.0, %v2913_v51  ;;  %v2915_v53 = vpop.eup %2914 }
 0x65c   : > { %v964_v54 = vadd.f32 1.0, %v2915_v53 }
 0x65d   : > { %2916 = vrcp.f32 %v940_v52 }
 0x65e   : > { %2918 = vrcp.f32 %v964_v54 }
 0x66a   : > { %v2917_v57 = vpop.eup %2916 }
 0x66b   : > { %v2919_v61 = vpop.eup %2918  ;;  %v944_v3 = vmul.f32 %v2917_v57, %v3542_v2 }
 0x66c   : > { %v968_v11 = vmul.f32 %v2919_v61, %v3551_v7 }
 0x6c8   : > { %v947_v58 = vpop.permute.xlu1 %946 }
 0x6c9   : > { %v949_v59 = vmul.f32 %v2917_v57, %v947_v58 }
 0x6cb   : > { %951 = vrot.lane.b32.xlu1 %v949_v59, %s3047_s5 }
 0x6cc   : > { %v971_v62 = vpop.permute.xlu0 %970 }
 0x6cd   : > { %v973_v0 = vmul.f32 %v2919_v61, %v971_v62 }
 0x6cf   : > { %975 = vrot.lane.b32.xlu0 %v973_v0, %s3047_s5  ;;  %991 = vperm.xlu1 %2875, %v989_v63  }
 0x6d3   : > { %1003 = vperm.xlu0 %2874, %v1001_v1  }
 0x73d   : > { %v952_v4 = vpop.permute.xlu1 %951 }
 0x73e   : > { %v3545_v6 = vadd.f32 %v952_v4, %v944_v3 }
 0x740   : > { %2920 = vtanh.f32 %v3545_v6 }
 0x741   : > { %v976_v13 = vpop.permute.xlu0 %975 }
 0x742   : > { %v3555_v10 = vadd.f32 %v976_v13, %v968_v11 }
 0x744   : > { %2922 = vtanh.f32 %v3555_v10 }
 0x74a   : > { %v3560_v14 = vpop.permute.xlu1 %991 }
 0x74b   : > { %vm993_vm12 = vcmp.eq.s32.totalorder %v3560_v14, 1 }
 0x74c   : > { %v3630_v4 = vsel %vm993_vm12, %v3545_v6, %v3542_v2 }
 0x74d   : > { %v2921_v5 = vpop.eup %2920 }
 0x74e   : > { %957 = vrot.lane.b32.xlu1 %v2921_v5, %s3047_s5  ;;  %v3562_v12 = vpop.permute.xlu0 %1003 }
 0x74f   : > { %vm1005_vm13 = vcmp.eq.s32.totalorder %v3562_v12, 1  ;;  %v508_v12 = vsel %vm507_vm4, %v3390_v23, 0.0  ;;  %vm4278_vm4 = vcmask 261120  }
 0x751   : > { %v2923_v8 = vpop.eup %2922 }
 0x752   : > { %981 = vrot.lane.b32.xlu0 %v2923_v8, %s3047_s5  ;;  %v3639_v8 = vsel %vm1005_vm13, %v3555_v10, %v3551_v7 }
 0x7c0   : > { %v958_v9 = vpop.permute.xlu1 %957 }
 0x7c1   : > { %v3564_v15 = vmul.f32 %v2917_v57, %v958_v9  ;;  %v1225_v57 = vstv %s1017_s19  ;;  %s3941_s19 = sshll.u32 %s1978_s18, 3 }
 0x7c2   : > { %vm1226_vm14 = vcmp.lt.s32.totalorder %v1225_v57, %v3229_v33 }
 0x7c3   : > { %v3571_v22 = vsel %vm993_vm12, %v3564_v15, %v3483_v19  ;;  %v1229_v0 = vsel %vm1226_vm14, 1, %v3048_v55 }
 0x7c4   : > { %v982_v28 = vpop.permute.xlu0 %981  ;;  %1020 = vrot.lane.b32.xlu1 %v3571_v22, %s3049_s28 }
 0x7c5   : > { %v3575_v26 = vmul.f32 %v2919_v61, %v982_v28  ;;  %v1227_v61 = vstv %s1018_s16  ;;  %s1737_s16 = sadd.s32 6, %s3341_s1 }
 0x7c6   : > { %vm1228_vm15 = vcmp.lt.s32.totalorder %v1227_v61, %v3229_v33 }
 0x7c7   : > { %v3582_v29 = vsel %vm1005_vm13, %v3575_v26, %v3494_v25  ;;  %v2504_v25 = vld [vmem:[%s3351_s0 + $0x18] sm:$0xff]  ;;  %v1241_v3 = vsel %vm1228_vm15, 1, %v3048_v55 }
 0x7c8   : > { %1095 = vrot.lane.b32.xlu0 %v3582_v29, %s3049_s28 }
 0x836   : > { %v1021_v30 = vpop.permute.xlu1 %1020 }
 0x837   : > { %2725 = vmatmul.mubr.msk.f32.vlgmr.msra.gmra.mxu0 %vm4277_vm0, %v1021_v30 }
 0x838   : > { %2739 = vmatpush3.msra.mxu0 %v3249_v37  ;;  %2746 = vmatprep.mubr.msk.f32.mxu0 %vm3046_vm1, %v3045_v46 }
 0x839   : > { %2740 = vmatprep.subr.mxu0 %v3045_v46 }
 0x83a   : > { %v1096_v19 = vpop.permute.xlu0 %1095  ;;  %2741 = vmatpush3.msra.mxu0 %v3244_v36 }
 0x83b   : > { %2736 = vmatmul.mubr.msk.f32.vlgmr.msra.gmra.mxu1 %vm4277_vm0, %v1096_v19  ;;  %2742 = vmatprep.subr.mxu0 %v3045_v46 }
 0x83c   : > { %2743 = vmatpush3.msra.mxu0 %v3239_v35  ;;  %2750 = vmatpush3.msra.mxu1 %v3269_v41 }
 0x83d   : > { %2744 = vmatprep.subr.mxu0 %v3045_v46  ;;  %2751 = vmatprep.subr.mxu1 %v3045_v46 }
 0x83e   : > { %2745 = vmatpush3.msra.mxu0 %v3234_v34  ;;  %2752 = vmatpush3.msra.mxu1 %v3264_v40 }
 0x83f   : > { %2753 = vmatprep.subr.mxu1 %v3045_v46  ;;  %2757 = vmatprep.mubr.msk.f32.mxu1 %vm3046_vm1, %v3045_v46 }
 0x840   : > { %2754 = vmatpush3.msra.mxu1 %v3259_v39  ;;  %2760 = vmatprep.subr.mxu0 %v3045_v46 }
 0x841   : > { %2755 = vmatprep.subr.mxu1 %v3045_v46 }
 0x842   : > { %2756 = vmatpush3.msra.mxu1 %v3254_v38 }
 0x843   : > { %2771 = vmatprep.subr.mxu1 %v3045_v46 }
 0x8f7   : > { %v1090_v31 = vpop.f32.mrf.mxu0 }
 0x8f8   : > { %v1172_v32 = vadd.f32 %v2504_v25, %v1090_v31 }
 0x8f9   : > { %v2726_v42 = vpop.f32.mrf.mxu0 }
 0x8fa   : > { %2924 = vtanh.f32 %v1172_v32  ;;  %v2506_v50 = vmul.f32 -1.442695, %v1172_v32 }
 0x8fb   : > { %v1165_v44 = vpop.f32.mrf.mxu1 }
 0x8fc   : > { %v1176_v45 = vadd.f32 %v1175_v43, %v1165_v44 }
 0x8fd   : > { %v2737_v47 = vpop.f32.mrf.mxu1 }
 0x8fe   : > { %2926 = vtanh.f32 %v1176_v45  ;;  %v2507_v51 = vmul.f32 -1.442695, %v1176_v45 }
 0x8ff   : > { %2928 = vpow2.f32 %v2506_v50 }
 0x900   : > { %2930 = vpow2.f32 %v2507_v51 }
 0x907   : > { %v2925_v48 = vpop.eup %2924 }
 0x908   : > { %1186 = vrot.lane.b32.xlu1 %v2925_v48, %s3047_s5 }
 0x90b   : > { %v2927_v49 = vpop.eup %2926 }
 0x90c   : > { %1210 = vrot.lane.b32.xlu0 %v2927_v49, %s3047_s5  ;;  %v2929_v52 = vpop.eup %2928  ;;  %v1415_v49 = vld [vmem:[%s1414_s23] sm:$0xff]  ;;  %s1731_s23 = scalar_lea.vmem %s4270_s7, %s3787_s29 }
 0x90d   : > { %v1180_v53 = vadd.f32 1.0, %v2929_v52  ;;  %v2931_v54 = vpop.eup %2930 }
 0x90e   : > { %v1204_v56 = vadd.f32 1.0, %v2931_v54 }
 0x90f   : > { %2932 = vrcp.f32 %v1180_v53 }
 0x910   : > { %2934 = vrcp.f32 %v1204_v56 }
 0x91c   : > { %v2933_v58 = vpop.eup %2932 }
 0x91d   : > { %v2935_v62 = vpop.eup %2934  ;;  %v1184_v11 = vmul.f32 %v2933_v58, %v3630_v4 }
 0x91e   : > { %v1208_v9 = vmul.f32 %v2935_v62, %v3639_v8 }
 0x97a   : > { %v1187_v59 = vpop.permute.xlu1 %1186 }
 0x97b   : > { %v1189_v60 = vmul.f32 %v2933_v58, %v1187_v59 }
 0x97d   : > { %1191 = vrot.lane.b32.xlu1 %v1189_v60, %s3047_s5 }
 0x97e   : > { %v1211_v63 = vpop.permute.xlu0 %1210 }
 0x97f   : > { %v1213_v1 = vmul.f32 %v2935_v62, %v1211_v63 }
 0x981   : > { %1215 = vrot.lane.b32.xlu0 %v1213_v1, %s3047_s5  ;;  %1231 = vperm.xlu1 %2875, %v1229_v0  }
 0x985   : > { %1243 = vperm.xlu0 %2874, %v1241_v3   ;;  %v1467_v3 = vstv %s1258_s21  ;;  %s2134_s21 = scalar_lea.vmem [#allocation9], %s3941_s19 }
 0x986   : > { %vm1468_vm7 = vcmp.lt.s32.totalorder %v1467_v3, %v3229_v33 }
 0x9ef   : > { %v1192_v13 = vpop.permute.xlu1 %1191 }
 0x9f0   : > { %v3633_v5 = vadd.f32 %v1192_v13, %v1184_v11 }
 0x9f2   : > { %2936 = vtanh.f32 %v3633_v5 }
 0x9f3   : > { %v1216_v28 = vpop.permute.xlu0 %1215 }
 0x9f4   : > { %v3643_v30 = vadd.f32 %v1216_v28, %v1208_v9 }
 0x9f6   : > { %2938 = vtanh.f32 %v3643_v30 }
 0x9fc   : > { %v3648_v19 = vpop.permute.xlu1 %1231 }
 0x9fd   : > { %vm1233_vm2 = vcmp.eq.s32.totalorder %v3648_v19, 1 }
 0x9ff   : > { %v2937_v2 = vpop.eup %2936 }
 0xa00   : > { %1197 = vrot.lane.b32.xlu1 %v2937_v2, %s3047_s5  ;;  %v3650_v25 = vpop.permute.xlu0 %1243  ;;  %v1481_v2 = vsel %vm1468_vm7, 1, %v3048_v55 }
 0xa01   : > { %vm1245_vm3 = vcmp.eq.s32.totalorder %v3650_v25, 1  ;;  %v994_v25 = vsel %vm993_vm12, %v3564_v15, 0.0  ;;  %vm4281_vm12 = vmmov %vm4278_vm4 }
 0xa03   : > { %v2939_v6 = vpop.eup %2938 }
 0xa04   : > { %1221 = vrot.lane.b32.xlu0 %v2939_v6, %s3047_s5  ;;  %v3718_v6 = vsel %vm1233_vm2, %v3633_v5, %v3630_v4 }
 0xa72   : > { %v1198_v7 = vpop.permute.xlu1 %1197 }
 0xa73   : > { %v3652_v10 = vmul.f32 %v2933_v58, %v1198_v7 }
 0xa75   : > { %v3659_v31 = vsel %vm1233_vm2, %v3652_v10, %v3571_v22 }
 0xa76   : > { %v1222_v32 = vpop.permute.xlu0 %1221  ;;  %1260 = vrot.lane.b32.xlu1 %v3659_v31, %s3049_s28 }
 0xa77   : > { %v3663_v42 = vmul.f32 %v2935_v62, %v1222_v32  ;;  %v1465_v62 = vstv %s1257_s24  ;;  %s525_s24 = scalar_lea.vmem %s4270_s7, %s3347_s26  ;;  %s1011_s26 = scalar_lea.vmem %s4270_s7, %s3523_s14 }
 0xa78   : > { %vm1466_vm6 = vcmp.lt.s32.totalorder %v1465_v62, %v3229_v33 }
 0xa79   : > { %v3670_v43 = vsel %vm1245_vm3, %v3663_v42, %v3582_v29  ;;  %v2515_v29 = vld [vmem:[%s3351_s0 + $0x20] sm:$0xff]  ;;  %v1469_v9 = vsel %vm1466_vm6, 1, %v3048_v55  ;;  %v1246_v20 = vsel %vm1245_vm3, %v3663_v42, 0.0  ;;  %v1234_v42 = vsel %vm1233_vm2, %v3652_v10, 0.0  ;;  %vm4283_vm2 = vmmov %vm4278_vm4 }
 0xa7a   : > { %1335 = vrot.lane.b32.xlu0 %v3670_v43, %s3049_s28 }
 0xae8   : > { %v1261_v44 = vpop.permute.xlu1 %1260 }
 0xae9   : > { %2747 = vmatmul.mubr.msk.f32.vlgmr.msra.gmra.mxu0 %vm4277_vm0, %v1261_v44 }
 0xaea   : > { %2761 = vmatpush3.msra.mxu0 %v3249_v37  ;;  %2768 = vmatprep.mubr.msk.f32.mxu0 %vm3046_vm1, %v3045_v46 }
 0xaeb   : > { %2762 = vmatprep.subr.mxu0 %v3045_v46 }
 0xaec   : > { %v1336_v22 = vpop.permute.xlu0 %1335  ;;  %2763 = vmatpush3.msra.mxu0 %v3244_v36 }
 0xaed   : > { %2758 = vmatmul.mubr.msk.f32.vlgmr.msra.gmra.mxu1 %vm4277_vm0, %v1336_v22  ;;  %2764 = vmatprep.subr.mxu0 %v3045_v46  ;;  %v3727_v22 = vsel %vm1245_vm3, %v3643_v30, %v3639_v8  ;;  %vm4284_vm3 = vmmov %vm4283_vm2 }
 0xaee   : > { %2765 = vmatpush3.msra.mxu0 %v3239_v35  ;;  %2772 = vmatpush3.msra.mxu1 %v3269_v41 }
 0xaef   : > { %2766 = vmatprep.subr.mxu0 %v3045_v46  ;;  %2773 = vmatprep.subr.mxu1 %v3045_v46 }
 0xaf0   : > { %2767 = vmatpush3.msra.mxu0 %v3234_v34  ;;  %2774 = vmatpush3.msra.mxu1 %v3264_v40 }
 0xaf1   : > { %2775 = vmatprep.subr.mxu1 %v3045_v46  ;;  %2779 = vmatprep.mubr.msk.f32.mxu1 %vm3046_vm1, %v3045_v46 }
 0xaf2   : > { %2776 = vmatpush3.msra.mxu1 %v3259_v39  ;;  %2782 = vmatprep.subr.mxu0 %v3045_v46 }
 0xaf3   : > { %2777 = vmatprep.subr.mxu1 %v3045_v46 }
 0xaf4   : > { %2778 = vmatpush3.msra.mxu1 %v3254_v38 }
 0xaf5   : > { %2793 = vmatprep.subr.mxu1 %v3045_v46 }
 0xba9   : > { %v1330_v45 = vpop.f32.mrf.mxu0 }
 0xbaa   : > { %v1412_v47 = vadd.f32 %v2515_v29, %v1330_v45 }
 0xbab   : > { %v2748_v48 = vpop.f32.mrf.mxu0 }
 0xbac   : > { %2940 = vtanh.f32 %v1412_v47  ;;  %v2517_v56 = vmul.f32 -1.442695, %v1412_v47 }
 0xbad   : > { %v1405_v50 = vpop.f32.mrf.mxu1 }
 0xbae   : > { %v1416_v51 = vadd.f32 %v1415_v49, %v1405_v50 }
 0xbaf   : > { %v2759_v52 = vpop.f32.mrf.mxu1 }
 0xbb0   : > { %2942 = vtanh.f32 %v1416_v51  ;;  %v2518_v57 = vmul.f32 -1.442695, %v1416_v51 }
 0xbb1   : > { %2944 = vpow2.f32 %v2517_v56 }
 0xbb2   : > { %2946 = vpow2.f32 %v2518_v57 }
 0xbb9   : > { %v2941_v53 = vpop.eup %2940 }
 0xbba   : > { %1426 = vrot.lane.b32.xlu1 %v2941_v53, %s3047_s5 }
 0xbbd   : > { %v2943_v54 = vpop.eup %2942 }
 0xbbe   : > { %1450 = vrot.lane.b32.xlu0 %v2943_v54, %s3047_s5  ;;  %v2945_v58 = vpop.eup %2944 }
 0xbbf   : > { %v1420_v59 = vadd.f32 1.0, %v2945_v58  ;;  %v2947_v60 = vpop.eup %2946 }
 0xbc0   : > { %v1444_v61 = vadd.f32 1.0, %v2947_v60 }
 0xbc1   : > { %2948 = vrcp.f32 %v1420_v59  ;;  %v1655_v59 = vld [vmem:[%s1654_s12] sm:$0xff]  ;;  %s513_s12 = scalar_lea.vmem %s4269_s6, %s2555_s25 }
 0xbc2   : > { %2950 = vrcp.f32 %v1444_v61 }
 0xbce   : > { %v2949_v63 = vpop.eup %2948 }
 0xbcf   : > { %v2951_v11 = vpop.eup %2950  ;;  %v1424_v7 = vmul.f32 %v2949_v63, %v3718_v6 }
 0xbd0   : > { %v1448_v29 = vmul.f32 %v2951_v11, %v3727_v22 }
 0xc2c   : > { %v1427_v0 = vpop.permute.xlu1 %1426 }
 0xc2d   : > { %v1429_v1 = vmul.f32 %v2949_v63, %v1427_v0 }
 0xc2f   : > { %1431 = vrot.lane.b32.xlu1 %v1429_v1, %s3047_s5 }
 0xc30   : > { %v1451_v13 = vpop.permute.xlu0 %1450 }
 0xc31   : > { %v1453_v28 = vmul.f32 %v2951_v11, %v1451_v13 }
 0xc33   : > { %1455 = vrot.lane.b32.xlu0 %v1453_v28, %s3047_s5  ;;  %1471 = vperm.xlu1 %2875, %v1469_v9  }
 0xc37   : > { %1483 = vperm.xlu0 %2874, %v1481_v2   ;;  %v1705_v2 = vstv %s1497_s2  ;;  %s771_s2 = scalar_lea.vmem %s4270_s7, %s3435_s30 }
 0xc38   : > { %vm1706_vm14 = vcmp.lt.s32.totalorder %v1705_v2, %v3229_v33 }
 0xca1   : > { %v1432_v32 = vpop.permute.xlu1 %1431 }
 0xca2   : > { %v3721_v44 = vadd.f32 %v1432_v32, %v1424_v7 }
 0xca4   : > { %2952 = vtanh.f32 %v3721_v44 }
 0xca5   : > { %v1456_v45 = vpop.permute.xlu0 %1455 }
 0xca6   : > { %v3731_v47 = vadd.f32 %v1456_v45, %v1448_v29  ;;  %v1707_v45 = vstv %s1498_s27  ;;  %s1971_s27 = scalar_lea.vmem %s4270_s7, %s3873_s15  ;;  %s2211_s15 = scalar_lea.vmem %s4270_s7, %s3941_s19 }
 0xca7   : > { %vm1708_vm15 = vcmp.lt.s32.totalorder %v1707_v45, %v3229_v33 }
 0xca8   : > { %2954 = vtanh.f32 %v3731_v47 }
 0xcae   : > { %v3736_v48 = vpop.permute.xlu1 %1471 }
 0xcaf   : > { %vm1473_vm10 = vcmp.eq.s32.totalorder %v3736_v48, 1 }
 0xcb1   : > { %v2953_v4 = vpop.eup %2952 }
 0xcb2   : > { %1437 = vrot.lane.b32.xlu1 %v2953_v4, %s3047_s5  ;;  %v3738_v49 = vpop.permute.xlu0 %1483 }
 0xcb3   : > { %vm1485_vm11 = vcmp.eq.s32.totalorder %v3738_v49, 1 }
 0xcb5   : > { %v2955_v5 = vpop.eup %2954 }
 0xcb6   : > { %1461 = vrot.lane.b32.xlu0 %v2955_v5, %s3047_s5 }
 0xd24   : > { %v1438_v8 = vpop.permute.xlu1 %1437 }
 0xd25   : > { %v3740_v30 = vmul.f32 %v2949_v63, %v1438_v8  ;;  %v1709_v8 = vsel %vm1706_vm14, 1, %v3048_v55 }
 0xd27   : > { %v3747_v50 = vsel %vm1473_vm10, %v3740_v30, %v3659_v31  ;;  %v1474_v21 = vsel %vm1473_vm10, %v3740_v30, 0.0 }
 0xd28   : > { %v1462_v51 = vpop.permute.xlu0 %1461  ;;  %1500 = vrot.lane.b32.xlu1 %v3747_v50, %s3049_s28 }
 0xd29   : > { %v3751_v52 = vmul.f32 %v2951_v11, %v1462_v51 }
 0xd2b   : > { %v3758_v53 = vsel %vm1485_vm11, %v3751_v52, %v3670_v43  ;;  %v2526_v43 = vld [vmem:[%s3351_s0 + $0x28] sm:$0xff] }
 0xd2c   : > { %1575 = vrot.lane.b32.xlu0 %v3758_v53, %s3049_s28 }
 0xd9a   : > { %v1501_v54 = vpop.permute.xlu1 %1500 }
 0xd9b   : > { %2769 = vmatmul.mubr.msk.f32.vlgmr.msra.gmra.mxu0 %vm4277_vm0, %v1501_v54  ;;  %v1721_v54 = vsel %vm1708_vm15, 1, %v3048_v55 }
 0xd9c   : > { %2783 = vmatpush3.msra.mxu0 %v3249_v37  ;;  %2790 = vmatprep.mubr.msk.f32.mxu0 %vm3046_vm1, %v3045_v46 }
 0xd9d   : > { %2784 = vmatprep.subr.mxu0 %v3045_v46 }
 0xd9e   : > { %v1576_v31 = vpop.permute.xlu0 %1575  ;;  %2785 = vmatpush3.msra.mxu0 %v3244_v36 }
 0xd9f   : > { %2780 = vmatmul.mubr.msk.f32.vlgmr.msra.gmra.mxu1 %vm4277_vm0, %v1576_v31  ;;  %2786 = vmatprep.subr.mxu0 %v3045_v46  ;;  %v3806_v31 = vsel %vm1473_vm10, %v3721_v44, %v3718_v6  ;;  %vm4285_vm10 = vmmov %vm4283_vm2 }
 0xda0   : > { %2787 = vmatpush3.msra.mxu0 %v3239_v35  ;;  %2794 = vmatpush3.msra.mxu1 %v3269_v41 }
 0xda1   : > { %2788 = vmatprep.subr.mxu0 %v3045_v46  ;;  %2795 = vmatprep.subr.mxu1 %v3045_v46 }
 0xda2   : > { %2789 = vmatpush3.msra.mxu0 %v3234_v34  ;;  %2796 = vmatpush3.msra.mxu1 %v3264_v40 }
 0xda3   : > { %2797 = vmatprep.subr.mxu1 %v3045_v46  ;;  %2801 = vmatprep.mubr.msk.f32.mxu1 %vm3046_vm1, %v3045_v46 }
 0xda4   : > { %2798 = vmatpush3.msra.mxu1 %v3259_v39  ;;  %2804 = vmatprep.subr.mxu0 %v3045_v46 }
 0xda5   : > { %2799 = vmatprep.subr.mxu1 %v3045_v46 }
 0xda6   : > { %2800 = vmatpush3.msra.mxu1 %v3254_v38 }
 0xda7   : > { %2815 = vmatprep.subr.mxu1 %v3045_v46 }
 0xe5b   : > { %v1570_v56 = vpop.f32.mrf.mxu0 }
 0xe5c   : > { %v1652_v57 = vadd.f32 %v2526_v43, %v1570_v56 }
 0xe5d   : > { %v2770_v58 = vpop.f32.mrf.mxu0 }
 0xe5e   : > { %2956 = vtanh.f32 %v1652_v57  ;;  %v2528_v1 = vmul.f32 -1.442695, %v1652_v57  ;;  %v3815_v58 = vsel %vm1485_vm11, %v3731_v47, %v3727_v22 }
 0xe5f   : > { %v1645_v60 = vpop.f32.mrf.mxu1 }
 0xe60   : > { %v1656_v61 = vadd.f32 %v1655_v59, %v1645_v60 }
 0xe61   : > { %v2781_v62 = vpop.f32.mrf.mxu1 }
 0xe62   : > { %2958 = vtanh.f32 %v1656_v61  ;;  %v2529_v3 = vmul.f32 -1.442695, %v1656_v61 }
 0xe63   : > { %2960 = vpow2.f32 %v2528_v1 }
 0xe64   : > { %2962 = vpow2.f32 %v2529_v3 }
 0xe6b   : > { %v2957_v63 = vpop.eup %2956 }
 0xe6c   : > { %1666 = vrot.lane.b32.xlu1 %v2957_v63, %s3047_s5 }
 0xe6f   : > { %v2959_v0 = vpop.eup %2958 }
 0xe70   : > { %1690 = vrot.lane.b32.xlu0 %v2959_v0, %s3047_s5  ;;  %v2961_v11 = vpop.eup %2960 }
 0xe71   : > { %v1660_v13 = vadd.f32 1.0, %v2961_v11  ;;  %v2963_v9 = vpop.eup %2962 }
 0xe72   : > { %v1684_v28 = vadd.f32 1.0, %v2963_v9 }
 0xe73   : > { %2964 = vrcp.f32 %v1660_v13 }
 0xe74   : > { %2966 = vrcp.f32 %v1684_v28 }
 0xe80   : > { %v2965_v7 = vpop.eup %2964 }
 0xe81   : > { %v2967_v4 = vpop.eup %2966  ;;  %v1664_v43 = vmul.f32 %v2965_v7, %v3806_v31 }
 0xe82   : > { %v1688_v59 = vmul.f32 %v2967_v4, %v3815_v58 }
 0xede   : > { %v1667_v32 = vpop.permute.xlu1 %1666 }
 0xedf   : > { %v1669_v29 = vmul.f32 %v2965_v7, %v1667_v32 }
 0xee1   : > { %1671 = vrot.lane.b32.xlu1 %v1669_v29, %s3047_s5 }
 0xee2   : > { %v1691_v5 = vpop.permute.xlu0 %1690 }
 0xee3   : > { %v1693_v51 = vmul.f32 %v2967_v4, %v1691_v5 }
 0xee5   : > { %1695 = vrot.lane.b32.xlu0 %v1693_v51, %s3047_s5  ;;  %1711 = vperm.xlu1 %2875, %v1709_v8  }
 0xee9   : > { %1723 = vperm.xlu0 %2874, %v1721_v54  }
 0xf53   : > { %v1672_v56 = vpop.permute.xlu1 %1671 }
 0xf54   : > { %v3809_v57 = vadd.f32 %v1672_v56, %v1664_v43 }
 0xf56   : > { %2968 = vtanh.f32 %v3809_v57 }
 0xf57   : > { %v1696_v60 = vpop.permute.xlu0 %1695 }
 0xf58   : > { %v3819_v61 = vadd.f32 %v1696_v60, %v1688_v59  ;;  %v1945_v59 = vstv %s1737_s16 }
 0xf5a   : > { %2970 = vtanh.f32 %v3819_v61 }
 0xf60   : > { %v3824_v62 = vpop.permute.xlu1 %1711 }
 0xf61   : > { %vm1713_vm6 = vcmp.eq.s32.totalorder %v3824_v62, 1 }
 0xf63   : > { %v2969_v6 = vpop.eup %2968 }
 0xf64   : > { %1677 = vrot.lane.b32.xlu1 %v2969_v6, %s3047_s5  ;;  %v3826_v63 = vpop.permute.xlu0 %1723 }
 0xf65   : > { %vm1725_vm7 = vcmp.eq.s32.totalorder %v3826_v63, 1 }
 0xf67   : > { %v2971_v44 = vpop.eup %2970 }
 0xf68   : > { %1701 = vrot.lane.b32.xlu0 %v2971_v44, %s3047_s5 }
 0xfd6   : > { %v1678_v22 = vpop.permute.xlu1 %1677 }
 0xfd7   : > { %v3828_v47 = vmul.f32 %v2965_v7, %v1678_v22  ;;  %v1895_v7 = vld [vmem:[%s1894_s3] sm:$0xff]  ;;  %v1947_v22 = vstv %s1738_s13 }
 0xfd8   : > { %vm1948_vm14 = vcmp.lt.s32.totalorder %v1947_v22, %v3229_v33 }
 0xfd9   : > { %v3835_v0 = vsel %vm1713_vm6, %v3828_v47, %v3747_v50  ;;  %v1714_v23 = vsel %vm1713_vm6, %v3828_v47, 0.0 }
 0xfda   : > { %v1702_v1 = vpop.permute.xlu0 %1701  ;;  %1740 = vrot.lane.b32.xlu1 %v3835_v0, %s3049_s28 }
 0xfdb   : > { %v3839_v3 = vmul.f32 %v2967_v4, %v1702_v1 }
 0xfdd   : > { %v3846_v11 = vsel %vm1725_vm7, %v3839_v3, %v3758_v53  ;;  %v2537_v53 = vld [vmem:[%s3351_s0 + $0x30] sm:$0xff]  ;;  %v1726_v18 = vsel %vm1725_vm7, %v3839_v3, 0.0 }
 0xfde   : > { %1815 = vrot.lane.b32.xlu0 %v3846_v11, %s3049_s28 }
0x104c   : > { %v1741_v13 = vpop.permute.xlu1 %1740 }
0x104d   : > { %2791 = vmatmul.mubr.msk.f32.vlgmr.msra.gmra.mxu0 %vm4277_vm0, %v1741_v13 }
0x104e   : > { %2805 = vmatpush3.msra.mxu0 %v3249_v37  ;;  %2812 = vmatprep.mubr.msk.f32.mxu0 %vm3046_vm1, %v3045_v46 }
0x104f   : > { %2806 = vmatprep.subr.mxu0 %v3045_v46 }
0x1050   : > { %v1816_v50 = vpop.permute.xlu0 %1815  ;;  %2807 = vmatpush3.msra.mxu0 %v3244_v36 }
0x1051   : > { %2802 = vmatmul.mubr.msk.f32.vlgmr.msra.gmra.mxu1 %vm4277_vm0, %v1816_v50  ;;  %2808 = vmatprep.subr.mxu0 %v3045_v46 }
0x1052   : > { %2809 = vmatpush3.msra.mxu0 %v3239_v35  ;;  %2816 = vmatpush3.msra.mxu1 %v3269_v41 }
0x1053   : > { %2810 = vmatprep.subr.mxu0 %v3045_v46  ;;  %2817 = vmatprep.subr.mxu1 %v3045_v46 }
0x1054   : > { %2811 = vmatpush3.msra.mxu0 %v3234_v34  ;;  %2818 = vmatpush3.msra.mxu1 %v3264_v40 }
0x1055   : > { %2819 = vmatprep.subr.mxu1 %v3045_v46  ;;  %2823 = vmatprep.mubr.msk.f32.mxu1 %vm3046_vm1, %v3045_v46  ;;  %vm1946_vm1 = vcmp.lt.s32.totalorder %v1945_v59, %v3229_v33 }
0x1056   : > { %2820 = vmatpush3.msra.mxu1 %v3259_v39  ;;  %v1949_v50 = vsel %vm1946_vm1, 1, %v3048_v55 }
0x1057   : > { %2821 = vmatprep.subr.mxu1 %v3045_v46 }
0x1058   : > { %2822 = vmatpush3.msra.mxu1 %v3254_v38 }
0x110d   : > { %v1810_v9 = vpop.f32.mrf.mxu0 }
0x110e   : > { %v1892_v28 = vadd.f32 %v2537_v53, %v1810_v9  ;;  %v1961_v9 = vsel %vm1948_vm14, 1, %v3048_v55 }
0x110f   : > { %v2792_v2 = vpop.f32.mrf.mxu0 }
0x1110   : > { %2972 = vtanh.f32 %v1892_v28  ;;  %v2539_v5 = vmul.f32 -1.442695, %v1892_v28  ;;  %v3892_v28 = vsel %vm1713_vm6, %v3809_v57, %v3806_v31  ;;  %vm4287_vm6 = vmmov %vm4283_vm2 }
0x1111   : > { %v1885_v32 = vpop.f32.mrf.mxu1 }
0x1112   : > { %v1896_v29 = vadd.f32 %v1895_v7, %v1885_v32 }
0x1113   : > { %v2803_v45 = vpop.f32.mrf.mxu1 }
0x1114   : > { %2974 = vtanh.f32 %v1896_v29  ;;  %v2540_v8 = vmul.f32 -1.442695, %v1896_v29  ;;  %v3901_v29 = vsel %vm1725_vm7, %v3819_v61, %v3815_v58  ;;  %vm4288_vm7 = vmmov %vm4283_vm2 }
0x1115   : > { %2976 = vpow2.f32 %v2539_v5 }
0x1116   : > { %2978 = vpow2.f32 %v2540_v8 }
0x111d   : > { %v2973_v46 = vpop.eup %2972 }
0x111e   : > { %1906 = vrot.lane.b32.xlu1 %v2973_v46, %s3047_s5 }
0x1121   : > { %v2975_v4 = vpop.eup %2974 }
0x1122   : > { %1930 = vrot.lane.b32.xlu0 %v2975_v4, %s3047_s5  ;;  %v2977_v51 = vpop.eup %2976 }
0x1123   : > { %v1900_v54 = vadd.f32 1.0, %v2977_v51  ;;  %v2979_v43 = vpop.eup %2978 }
0x1124   : > { %v1924_v56 = vadd.f32 1.0, %v2979_v43 }
0x1125   : > { %2980 = vrcp.f32 %v1900_v54 }
0x1126   : > { %2982 = vrcp.f32 %v1924_v56 }
0x1132   : > { %v2981_v60 = vpop.eup %2980 }
0x1133   : > { %v2983_v1 = vpop.eup %2982  ;;  %v1904_v2 = vmul.f32 %v2981_v60, %v3892_v28 }
0x1134   : > { %v1928_v45 = vmul.f32 %v2983_v1, %v3901_v29 }
0x1190   : > { %v1907_v6 = vpop.permute.xlu1 %1906 }
0x1191   : > { %v1909_v44 = vmul.f32 %v2981_v60, %v1907_v6 }
0x1193   : > { %1911 = vrot.lane.b32.xlu1 %v1909_v44, %s3047_s5 }
0x1194   : > { %v1931_v13 = vpop.permute.xlu0 %1930 }
0x1195   : > { %v1933_v53 = vmul.f32 %v2983_v1, %v1931_v13 }
0x1197   : > { %1935 = vrot.lane.b32.xlu0 %v1933_v53, %s3047_s5  ;;  %1951 = vperm.xlu1 %2875, %v1949_v50  }
0x119b   : > { %1963 = vperm.xlu0 %2874, %v1961_v9  }
0x1205   : > { %v1912_v7 = vpop.permute.xlu1 %1911 }
0x1206   : > { %v3895_v32 = vadd.f32 %v1912_v7, %v1904_v2 }
0x1208   : > { %2984 = vtanh.f32 %v3895_v32 }
0x1209   : > { %v1936_v46 = vpop.permute.xlu0 %1935 }
0x120a   : > { %v3905_v4 = vadd.f32 %v1936_v46, %v1928_v45 }
0x120c   : > { %2986 = vtanh.f32 %v3905_v4 }
0x1212   : > { %v3910_v5 = vpop.permute.xlu1 %1951 }
0x1213   : > { %vm1953_vm15 = vcmp.eq.s32.totalorder %v3910_v5, 1 }
0x1215   : > { %v2985_v31 = vpop.eup %2984 }
0x1216   : > { %1917 = vrot.lane.b32.xlu1 %v2985_v31, %s3047_s5  ;;  %v3912_v58 = vpop.permute.xlu0 %1963 }
0x1217   : > { %vm1965_vm1 = vcmp.eq.s32.totalorder %v3912_v58, 1 }
0x1219   : > { %v2987_v57 = vpop.eup %2986 }
0x121a   : > { %1941 = vrot.lane.b32.xlu0 %v2987_v57, %s3047_s5 }
0x1288   : > { %v1918_v61 = vpop.permute.xlu1 %1917 }
0x1289   : > { %v3914_v8 = vmul.f32 %v2981_v60, %v1918_v61  ;;  %v2548_v60 = vld [vmem:[%s3351_s0 + $0x38] sm:$0xff]  ;;  %s1977_s0 = sadd.s32 7, %s3341_s1 }
0x128a   : > { %v2185_v61 = vstv %s1977_s0  ;;  %s1491_s0 = scalar_lea.vmem %s4270_s7, %s3699_s22 }
0x128b   : > { %v3921_v51 = vsel %vm1953_vm15, %v3914_v8, %v3835_v0  ;;  %vm2186_vm14 = vcmp.lt.s32.totalorder %v2185_v61, %v3229_v33 }
0x128c   : > { %v1942_v54 = vpop.permute.xlu0 %1941  ;;  %1980 = vrot.lane.b32.xlu1 %v3921_v51, %s3049_s28 }
0x128d   : > { %v3925_v43 = vmul.f32 %v2983_v1, %v1942_v54 }
0x128f   : > { %v3932_v56 = vsel %vm1965_vm1, %v3925_v43, %v3846_v11  ;;  %v2135_v11 = vld [vmem:[%s2134_s21] sm:$0xff] }
0x1290   : > { %2055 = vrot.lane.b32.xlu0 %v3932_v56, %s3049_s28 }
0x12fe   : > { %v1981_v59 = vpop.permute.xlu1 %1980 }
0x12ff   : > { %2813 = vmatmul.mubr.msk.f32.vlgmr.msra.gmra.mxu0 %vm4277_vm0, %v1981_v59 }
0x1302   : > { %v2056_v0 = vpop.permute.xlu0 %2055 }
0x1303   : > { %2824 = vmatmul.mubr.msk.f32.vlgmr.msra.gmra.mxu1 %vm4277_vm0, %v2056_v0 }
0x13bf   : > { %v2050_v6 = vpop.f32.mrf.mxu0 }
0x13c0   : > { %v2132_v44 = vadd.f32 %v2548_v60, %v2050_v6  ;;  %v2187_v60 = vstv %s1978_s18  ;;  %s1251_s18 = scalar_lea.vmem %s4270_s7, %s3611_s17 }
0x13c1   : > { %v2814_v22 = vpop.f32.mrf.mxu0  ;;  %vm2188_vm0 = vcmp.lt.s32.totalorder %v2187_v60, %v3229_v33 }
0x13c2   : > { %2988 = vtanh.f32 %v2132_v44  ;;  %v2550_v2 = vmul.f32 -1.442695, %v2132_v44  ;;  %v2189_v22 = vsel %vm2186_vm14, 1, %v3048_v55 }
0x13c3   : > { %v2125_v1 = vpop.f32.mrf.mxu1 }
0x13c4   : > { %v2136_v13 = vadd.f32 %v2135_v11, %v2125_v1  ;;  %v2201_v1 = vsel %vm2188_vm0, 1, %v3048_v55 }
0x13c5   : > { %v2825_v50 = vpop.f32.mrf.mxu1 }
0x13c6   : > { %2990 = vtanh.f32 %v2136_v13  ;;  %v2551_v7 = vmul.f32 -1.442695, %v2136_v13  ;;  %v1974_v13 = vsel %vm1953_vm15, %v3895_v32, %v3892_v28 }
0x13c7   : > { %2992 = vpow2.f32 %v2550_v2  ;;  %v3971_v2 = vsel %vm1965_vm1, %v3905_v4, %v3901_v29  ;;  %v766_v29 = vsel %vm765_vm9, %v3487_v24, 0.0  ;;  %v1006_v4 = vsel %vm1005_vm13, %v3575_v26, 0.0  ;;  %vm4280_vm9 = vmmov %vm4278_vm4 }
0x13c8   : > { %2994 = vpow2.f32 %v2551_v7  ;;  %v1966_v24 = vsel %vm1965_vm1, %v3925_v43, 0.0  ;;  %v754_v26 = vsel %vm753_vm8, %v3476_v17, 0.0  ;;  %v1954_v17 = vsel %vm1953_vm15, %v3914_v8, 0.0  ;;  %vm4279_vm8 = vmmov %vm4278_vm4 }
0x13c9   : > { %vm4282_vm13 = vmmov %vm4278_vm4 }
0x13ca   : > { %vm4289_vm15 = vmmov %vm4283_vm2 }
0x13cb   : > { %vm4290_vm1 = vmmov %vm4283_vm2 }
0x13cc   : > { %vm4291_vm14 = vmmov %vm4290_vm1 }
0x13cf   : > { %v2989_v53 = vpop.eup %2988 }
0x13d0   : > { %2146 = vrot.lane.b32.xlu1 %v2989_v53, %s3047_s5 }
0x13d3   : > { %v2991_v9 = vpop.eup %2990 }
0x13d4   : > { %2170 = vrot.lane.b32.xlu0 %v2991_v9, %s3047_s5  ;;  %v2993_v45 = vpop.eup %2992 }
0x13d5   : > { %v2140_v46 = vadd.f32 1.0, %v2993_v45  ;;  %v2995_v31 = vpop.eup %2994 }
0x13d6   : > { %v2164_v57 = vadd.f32 1.0, %v2995_v31 }
0x13d7   : > { %2996 = vrcp.f32 %v2140_v46  ;;  %v520_v46 = vsel %vm519_vm5, %v3400_v27, 0.0  ;;  %v1486_v27 = vsel %vm1485_vm11, %v3751_v52, 0.0  ;;  %vm4286_vm11 = vmmov %vm4283_vm2 }
0x13d8   : > { %2998 = vrcp.f32 %v2164_v57 }
0x13e4   : > { %v3948_v54 = vpop.eup %2996 }
0x13e5   : > { %v3955_v6 = vpop.eup %2998  ;;  %v2144_v50 = vmul.f32 %v3948_v54, %v1974_v13 }
0x13e6   : > { %v2168_v55 = vmul.f32 %v3955_v6, %v3971_v2 }
0x1442   : > { %v2147_v59 = vpop.permute.xlu1 %2146 }
0x1443   : > { %v2149_v0 = vmul.f32 %v3948_v54, %v2147_v59 }
0x1445   : > { %2151 = vrot.lane.b32.xlu1 %v2149_v0, %s3047_s5 }
0x1446   : > { %v2171_v44 = vpop.permute.xlu0 %2170 }
0x1447   : > { %v2173_v11 = vmul.f32 %v3955_v6, %v2171_v44 }
0x1449   : > { %2175 = vrot.lane.b32.xlu0 %v2173_v11, %s3047_s5  ;;  %2191 = vperm.xlu1 %2875, %v2189_v22  }
0x144d   : > { %2203 = vperm.xlu0 %2874, %v2201_v1  }
0x14b7   : > { %v2152_v53 = vpop.permute.xlu1 %2151 }
0x14b8   : > { %v2154_v9 = vadd.f32 %v2152_v53, %v2144_v50 }
0x14ba   : > { %3000 = vtanh.f32 %v2154_v9 }
0x14bb   : > { %v2176_v7 = vpop.permute.xlu0 %2175 }
0x14bc   : > { %v3975_v45 = vadd.f32 %v2176_v7, %v2168_v55 }
0x14be   : > { %3002 = vtanh.f32 %v3975_v45 }
0x14c4   : > { %v2192_v16 = vpop.permute.xlu1 %2191 }
0x14c5   : > { %vm2193_vm0 = vcmp.eq.s32.totalorder %v2192_v16, 1 }
0x14c6   : > { %v2214_v14 = vsel %vm2193_vm0, %v2154_v9, %v1974_v13 }
0x14c7   : > { %v3001_v28 = vpop.eup %3000 }
0x14c8   : > { %2157 = vrot.lane.b32.xlu1 %v3001_v28, %s3047_s5  ;;  %v2204_v15 = vpop.permute.xlu0 %2203 }
0x14c9   : > { %vm2205_vm5 = vcmp.eq.s32.totalorder %v2204_v15, 1 }
0x14ca   : > { %v2216_v5 = vsel %vm2205_vm5, %v3975_v45, %v3971_v2 }
0x14cb   : > { %v3003_v32 = vpop.eup %3002 }
0x14cc   : > { %2181 = vrot.lane.b32.xlu0 %v3003_v32, %s3047_s5  ;;  %522 = vrot.lane.b32.xlu1 %v520_v46, %s3049_s28  ;;  %s3050_s5 = smov 96  }
0x14d0   : > { %768 = vrot.lane.b32.xlu0 %v766_v29, %s3049_s28  ;;  %1008 = vrot.lane.b32.xlu1 %v1006_v4, %s3049_s28 }
0x14d4   : > { %1248 = vrot.lane.b32.xlu0 %v1246_v20, %s3049_s28  ;;  %1488 = vrot.lane.b32.xlu1 %v1486_v27, %s3049_s28 }
0x14d8   : > { %1728 = vrot.lane.b32.xlu0 %v1726_v18, %s3049_s28  ;;  %1968 = vrot.lane.b32.xlu1 %v1966_v24, %s3049_s28 }
0x14dc   : > { %510 = vrot.lane.b32.xlu0 %v508_v12, %s3049_s28  ;;  %756 = vrot.lane.b32.xlu1 %v754_v26, %s3049_s28 }
0x14e0   : > { %996 = vrot.lane.b32.xlu0 %v994_v25, %s3049_s28  ;;  %1236 = vrot.lane.b32.xlu1 %v1234_v42, %s3049_s28 }
0x14e4   : > { %1476 = vrot.lane.b32.xlu0 %v1474_v21, %s3049_s28  ;;  %1716 = vrot.lane.b32.xlu1 %v1714_v23, %s3049_s28 }
0x14e8   : > { %1956 = vrot.lane.b32.xlu0 %v1954_v17, %s3049_s28 }
0x14ec   : > { %2222 = vrot.lane.b32.xlu0 %v2214_v14, %s3050_s5 }
0x153a   : > { %v2158_v19 = vpop.permute.xlu1 %2157 }
0x153b   : > { %v2160_v10 = vmul.f32 %v3948_v54, %v2158_v19 }
0x153d   : > { %v2194_v48 = vsel %vm2193_vm0, %v2160_v10, 0.0  ;;  %v2213_v63 = vsel %vm2193_vm0, %v2160_v10, %v3921_v51  ;;  %vm4292_vm0 = vmmov %vm4290_vm1 }
0x153e   : > { %v2182_v49 = vpop.permute.xlu0 %2181  ;;  %2196 = vrot.lane.b32.xlu1 %v2194_v48, %s3049_s28  ;;  %v523_v30 = vpop.permute.xlu1 %522 }
0x153f   : > { %v2184_v52 = vmul.f32 %v3955_v6, %v2182_v49  ;;  %526 = vst.msk [vmem:[%s525_s24] sm:$0xff] %vm4278_vm4, %v523_v30  ;;  %vm4293_vm4 = vmmov %vm4292_vm0 }
0x1541   : > { %v2206_v62 = vsel %vm2205_vm5, %v2184_v52, 0.0  ;;  %v2215_v58 = vsel %vm2205_vm5, %v2184_v52, %v3932_v56  ;;  %vm4298_vm5 = vcmask (%p278_p2), 261120  }
0x1542   : > { %v769_v47 = vpop.permute.xlu0 %768  ;;  %2208 = vrot.lane.b32.xlu0 %v2206_v62, %s3049_s28  ;;  %2218 = vrot.lane.b32.xlu1 %v2213_v63, %s3049_s28  ;;  %v1009_v3 = vpop.permute.xlu1 %1008 }
0x1543   : > { %772 = vst.msk [vmem:[%s771_s2] sm:$0xff] %vm4279_vm8, %v769_v47  ;;  %vm4299_vm8 = vmmov (%p278_p2), %vm4298_vm5 }
0x1544   : > { %1012 = vst.msk [vmem:[%s1011_s26] sm:$0xff] %vm4280_vm9, %v1009_v3  ;;  %vm4300_vm9 = vmmov (%p278_p2), %vm4298_vm5 }
0x1546   : > { %v1249_v8 = vpop.permute.xlu0 %1248  ;;  %2230 = vrot.lane.b32.xlu0 %v2216_v5, %s3050_s5  ;;  %2226 = vrot.lane.b32.xlu1 %v2215_v58, %s3049_s28  ;;  %v1489_v51 = vpop.permute.xlu1 %1488 }
0x1547   : > { %1252 = vst.msk [vmem:[%s1251_s18] sm:$0xff] %vm4281_vm12, %v1249_v8  ;;  %vm4301_vm12 = vmmov (%p278_p2), %vm4298_vm5 }
0x1548   : > { %1492 = vst.msk [vmem:[%s1491_s0] sm:$0xff] %vm4282_vm13, %v1489_v51 }
0x154a   : > { %v1729_v43 = vpop.permute.xlu0 %1728  ;;  %v1969_v31 = vpop.permute.xlu1 %1968 }
0x154b   : > { %1732 = vst.msk [vmem:[%s1731_s23] sm:$0xff] %vm4283_vm2, %v1729_v43 }
0x154c   : > { %1972 = vst.msk [vmem:[%s1971_s27] sm:$0xff] %vm4284_vm3, %v1969_v31 }
0x154e   : > { %v511_v56 = vpop.permute.xlu0 %510  ;;  %v757_v57 = vpop.permute.xlu1 %756 }
0x154f   : > { %514 = vst.msk [vmem:[%s513_s12] sm:$0xff] %vm4285_vm10, %v511_v56 }
0x1550   : > { %2488 = vst.msk [vmem:[%s513_s12 + $0x8] sm:$0xff] %vm4286_vm11, %v757_v57 }
0x1552   : > { %v997_v61 = vpop.permute.xlu0 %996  ;;  %v1237_v54 = vpop.permute.xlu1 %1236 }
0x1553   : > { %2499 = vst.msk [vmem:[%s513_s12 + $0x10] sm:$0xff] %vm4287_vm6, %v997_v61 }
0x1554   : > { %2510 = vst.msk [vmem:[%s513_s12 + $0x18] sm:$0xff] %vm4288_vm7, %v1237_v54 }
0x1556   : > { %v1477_v59 = vpop.permute.xlu0 %1476  ;;  %v1717_v0 = vpop.permute.xlu1 %1716 }
0x1557   : > { %2521 = vst.msk [vmem:[%s513_s12 + $0x20] sm:$0xff] %vm4289_vm15, %v1477_v59 }
0x1558   : > { %2532 = vst.msk [vmem:[%s513_s12 + $0x28] sm:$0xff] %vm4290_vm1, %v1717_v0 }
0x155a   : > { %v1957_v60 = vpop.permute.xlu0 %1956 }
0x155b   : > { %2543 = vst.msk [vmem:[%s513_s12 + $0x30] sm:$0xff] %vm4291_vm14, %v1957_v60 }
0x155e   : > { %v2223_v6 = vpop.permute.xlu0 %2222  }
0x155f   : > { %v4296_v43 = vmov %v2223_v6  ;;  %2235 = vst.msk [vmem:[#allocation3] sm:$0xff] (%p278_p2), %vm4299_vm8, %v2223_v6 }
0x15b0   : > { %v2197_v44 = vpop.permute.xlu1 %2196 }
0x15b1   : > { %2554 = vst.msk [vmem:[%s513_s12 + $0x38] sm:$0xff] %vm4292_vm0, %v2197_v44 }
0x15b4   : > { %v2209_v22 = vpop.permute.xlu0 %2208  ;;  %v2219_v11 = vpop.permute.xlu1 %2218  }
0x15b5   : > { %2212 = vst.msk [vmem:[%s2211_s15] sm:$0xff] %vm4293_vm4, %v2209_v22  ;;  %v4297_v42 = vmov %v2219_v11  ;;  %280 = sbr.rel (!%p278_p2) target bundleno = 22 (0x16), region = 224 }
0x15b6   :  { %2234 = vst.msk [vmem:[#allocation2] sm:$0xff] (%p278_p2), %vm4298_vm5, %v2219_v11 }
0x15b8   : > { %v2231_v1 = vpop.permute.xlu0 %2230   ;;  %v2227_v13 = vpop.permute.xlu1 %2226  }
0x15b9   : > { %v4294_v45 = vmov %v2231_v1  ;;  %v4295_v44 = vmov %v2227_v13  ;;  %2236 = vst.msk [vmem:[#allocation4] sm:$0xff] (%p278_p2), %vm4300_vm9, %v2227_v13 }
0x15ba   :  { %2237 = vst.msk [vmem:[#allocation5] sm:$0xff] %vm4301_vm12, %v2231_v1 }
0x15bb PF:  { %2240 = sbr.rel (%p3151_p1) target bundleno = 5601 (0x15e1), region = 116 }
0x15c0   :  { %v3051_v50 = vmov 0.0   ;;  %vm4302_vm13 = vcmask 261120  }
0x15c1   :  { %2242 = vst.msk [vmem:[%s4269_s6] sm:$0xff] %vm4302_vm13, %v3051_v50  ;;  %vm4303_vm2 = vmmov %vm4302_vm13 }
0x15c2   :  { %2243 = vst.msk [vmem:[%s4269_s6 + $0x8] sm:$0xff] %vm4303_vm2, %v3051_v50  ;;  %vm4304_vm3 = vmmov %vm4303_vm2 }
0x15c3   :  { %2244 = vst.msk [vmem:[%s4269_s6 + $0x10] sm:$0xff] %vm4304_vm3, %v3051_v50  ;;  %vm4305_vm10 = vmmov %vm4303_vm2 }
0x15c4   :  { %2245 = vst.msk [vmem:[%s4269_s6 + $0x18] sm:$0xff] %vm4305_vm10, %v3051_v50  ;;  %vm4306_vm11 = vmmov %vm4303_vm2 }
0x15c5   :  { %2246 = vst.msk [vmem:[%s4269_s6 + $0x20] sm:$0xff] %vm4306_vm11, %v3051_v50  ;;  %vm4307_vm6 = vmmov %vm4303_vm2 }
0x15c6   :  { %2247 = vst.msk [vmem:[%s4269_s6 + $0x28] sm:$0xff] %vm4307_vm6, %v3051_v50  ;;  %vm4308_vm7 = vmmov %vm4303_vm2 }
0x15c7   :  { %2248 = vst.msk [vmem:[%s4269_s6 + $0x30] sm:$0xff] %vm4308_vm7, %v3051_v50  ;;  %vm4309_vm15 = vmmov %vm4303_vm2 }
0x15c8   :  { %2249 = vst.msk [vmem:[%s4269_s6 + $0x38] sm:$0xff] %vm4309_vm15, %v3051_v50  ;;  %vm4310_vm1 = vmmov %vm4303_vm2 }
0x15c9   :  { %2250 = vst.msk [vmem:[%s4269_s6 + $0x40] sm:$0xff] %vm4310_vm1, %v3051_v50  ;;  %vm4311_vm14 = vmmov %vm4310_vm1 }
0x15ca   :  { %2251 = vst.msk [vmem:[%s4269_s6 + $0x48] sm:$0xff] %vm4311_vm14, %v3051_v50  ;;  %vm4312_vm0 = vmmov %vm4310_vm1 }
0x15cb   :  { %2252 = vst.msk [vmem:[%s4269_s6 + $0x50] sm:$0xff] %vm4312_vm0, %v3051_v50  ;;  %vm4313_vm4 = vmmov %vm4312_vm0 }
0x15cc   :  { %2253 = vst.msk [vmem:[%s4269_s6 + $0x58] sm:$0xff] %vm4313_vm4, %v3051_v50  ;;  %vm4314_vm5 = vmmov %vm4312_vm0 }
0x15cd   :  { %2254 = vst.msk [vmem:[%s4269_s6 + $0x60] sm:$0xff] %vm4314_vm5, %v3051_v50  ;;  %vm4315_vm8 = vmmov %vm4312_vm0 }
0x15ce   :  { %2255 = vst.msk [vmem:[%s4269_s6 + $0x68] sm:$0xff] %vm4315_vm8, %v3051_v50  ;;  %vm4316_vm9 = vmmov %vm4312_vm0 }
0x15cf   :  { %2256 = vst.msk [vmem:[%s4269_s6 + $0x70] sm:$0xff] %vm4316_vm9, %v3051_v50  ;;  %vm4317_vm12 = vmmov %vm4312_vm0 }
0x15d0   :  { %2257 = vst.msk [vmem:[%s4269_s6 + $0x78] sm:$0xff] %vm4317_vm12, %v3051_v50  ;;  %vm4318_vm13 = vmmov %vm4312_vm0 }
0x15d1   :  { %2258 = vst.msk [vmem:[%s4270_s7] sm:$0xff] %vm4318_vm13, %v3051_v50  ;;  %vm4319_vm2 = vmmov %vm4312_vm0 }
0x15d2   :  { %2259 = vst.msk [vmem:[%s4270_s7 + $0x8] sm:$0xff] %vm4319_vm2, %v3051_v50  ;;  %vm4320_vm3 = vmmov %vm4312_vm0 }
0x15d3   :  { %2260 = vst.msk [vmem:[%s4270_s7 + $0x10] sm:$0xff] %vm4320_vm3, %v3051_v50  ;;  %vm4321_vm10 = vmmov %vm4312_vm0 }
0x15d4   :  { %2261 = vst.msk [vmem:[%s4270_s7 + $0x18] sm:$0xff] %vm4321_vm10, %v3051_v50  ;;  %vm4322_vm11 = vmmov %vm4312_vm0 }
0x15d5   :  { %2262 = vst.msk [vmem:[%s4270_s7 + $0x20] sm:$0xff] %vm4322_vm11, %v3051_v50  ;;  %vm4323_vm6 = vmmov %vm4312_vm0 }
0x15d6   :  { %2263 = vst.msk [vmem:[%s4270_s7 + $0x28] sm:$0xff] %vm4323_vm6, %v3051_v50  ;;  %vm4324_vm7 = vmmov %vm4312_vm0 }
0x15d7   :  { %2264 = vst.msk [vmem:[%s4270_s7 + $0x30] sm:$0xff] %vm4324_vm7, %v3051_v50  ;;  %vm4325_vm15 = vmmov %vm4312_vm0 }
0x15d8   :  { %2265 = vst.msk [vmem:[%s4270_s7 + $0x38] sm:$0xff] %vm4325_vm15, %v3051_v50  ;;  %vm4326_vm1 = vmmov %vm4312_vm0 }
0x15d9   :  { %2266 = vst.msk [vmem:[%s4270_s7 + $0x40] sm:$0xff] %vm4326_vm1, %v3051_v50  ;;  %vm4327_vm14 = vmmov %vm4312_vm0 }
0x15da   :  { %2267 = vst.msk [vmem:[%s4270_s7 + $0x48] sm:$0xff] %vm4327_vm14, %v3051_v50  ;;  %vm4328_vm4 = vmmov %vm4312_vm0 }
0x15db   :  { %2268 = vst.msk [vmem:[%s4270_s7 + $0x50] sm:$0xff] %vm4312_vm0, %v3051_v50  ;;  %vm4329_vm5 = vmmov %vm4312_vm0 }
0x15dc   :  { %2269 = vst.msk [vmem:[%s4270_s7 + $0x58] sm:$0xff] %vm4328_vm4, %v3051_v50  ;;  %vm4330_vm8 = vmmov %vm4312_vm0 }
0x15dd   :  { %2270 = vst.msk [vmem:[%s4270_s7 + $0x60] sm:$0xff] %vm4329_vm5, %v3051_v50  ;;  %vm4331_vm9 = vmmov %vm4312_vm0 }
0x15de   :  { %2271 = vst.msk [vmem:[%s4270_s7 + $0x68] sm:$0xff] %vm4330_vm8, %v3051_v50  ;;  %vm4332_vm12 = vmmov %vm4312_vm0 }
0x15df   :  { %2272 = vst.msk [vmem:[%s4270_s7 + $0x70] sm:$0xff] %vm4331_vm9, %v3051_v50 }
0x15e0   :  { %2273 = vst.msk [vmem:[%s4270_s7 + $0x78] sm:$0xff] %vm4332_vm12, %v3051_v50 }
0x15e1 PF:  { %v2277_v33 = vld [vmem:[#allocation2] sm:$0xff]  ;;  %v2280_v34 = vld [vmem:[#allocation3] sm:$0xff]  ;;  %v2282_v35 = vld [vmem:[#allocation4] sm:$0xff]  ;;  %vm4333_vm13 = vcmask 261120  }
0x15e2   :  { %2279 = vst.msk [vmem:[%s4271_s8] sm:$0xff] %vm4333_vm13, %v2277_v33  ;;  %vm4334_vm2 = vmmov %vm4333_vm13  ;;  %v2284_v36 = vld [vmem:[#allocation5] sm:$0xff] }
0x15e3   :  { %2281 = vst.msk [vmem:[%s4272_s9] sm:$0xff] %vm4334_vm2, %v2280_v34  ;;  %vm4335_vm3 = vmmov %vm4334_vm2 }
0x15e4   :  { %2283 = vst.msk [vmem:[%s4273_s10] sm:$0xff] %vm4335_vm3, %v2282_v35  ;;  %vm4336_vm10 = vmmov %vm4334_vm2 }
0x15e5   :  { %2285 = vst.msk [vmem:[%s4274_s11] sm:$0xff] %vm4336_vm10, %v2284_v36 }

</bundles_post_ra>
